<compile_context>
chip_gen: v5e
topology: v5e:2x2
jax: 0.10.0
libtpu: 0.0.40
codegen_flags: <defaults>
</compile_context>

<pallas_src>
import functools

import numpy as np
import jax
import jax.numpy as jnp
from jax.experimental import pallas as pl
from jax.experimental.pallas import tpu as pltpu

_EPS = 1e-5

_STAGES = (("enc1", "pool"), ("enc2", "pool"),
           ("dec1", "up"), ("dec2", "up"), ("dec3", "up"), ("dec4", "pool"))


# ----------------------- structural (shape-only) constant matrices ----------

def _same_channel_mat(C, W):
    """P[l, l'] = 1 iff lanes l and l' belong to the same channel."""
    c = np.arange(C * W) // W
    return jnp.asarray((c[:, None] == c[None, :]).astype(np.float32))


def _pool_mats(N, C, H, W):
    """2x2 stride-2 max pool (after roll+max pairing):
    reven (N*Ho, N*H) selects row 2*ho of image n;
    c0    (C*W, C*Wo) selects lane (c, 2*wo)."""
    Ho, Wo = H // 2, W // 2
    ro, ri = np.arange(N * Ho), np.arange(N * H)
    reven = ((ri[None, :] // H == ro[:, None] // Ho)
             & (ri[None, :] % H == 2 * (ro[:, None] % Ho))).astype(np.float32)
    li, lo = np.arange(C * W), np.arange(C * Wo)
    c0 = ((li[:, None] // W == lo[None, :] // Wo)
          & (li[:, None] % W == 2 * (lo[None, :] % Wo))).astype(np.float32)
    return jnp.asarray(reven), jnp.asarray(c0)


def _up_mats(N, C, H, W):
    """Nearest-neighbor 2x upsample: ur (2*N*H, N*H) row duplication (block-
    diagonal over n), uc (C*W, 2*C*W) lane duplication (block-diag over c)."""
    Ho, Wo = 2 * H, 2 * W
    ro, ri = np.arange(N * Ho), np.arange(N * H)
    ur = ((ri[None, :] // H == ro[:, None] // Ho)
          & (ri[None, :] % H == (ro[:, None] % Ho) // 2)).astype(np.float32)
    li, lo = np.arange(C * W), np.arange(C * Wo)
    uc = ((li[:, None] // W == lo[None, :] // Wo)
          & (li[:, None] % W == (lo[None, :] % Wo) // 2)).astype(np.float32)
    return jnp.asarray(ur), jnp.asarray(uc)


# ----------------------- weight-dependent matmul operands -------------------

def _build_conv_mat(K, W):
    """Conv2d(k=3,s=1,p=1) as ONE stacked lane-mixing matrix of shape
    (3*Cin*W, Cout*W).  Row block kh multiplies the slab whose rows hold input
    row h+kh-1; the kw shift and W zero-padding are folded in."""
    Cout, Cin = K.shape[0], K.shape[1]
    wi = np.arange(W)[None, :, None]
    wo = np.arange(W)[None, None, :]
    kw = np.arange(3)[:, None, None]
    S = jnp.asarray((wi == wo + kw - 1).astype(np.float32))        # (3, W, W)
    M = jnp.einsum("oihk,kvw->hivow", K.astype(jnp.float32), S)    # (kh,ci,wi,co,wo)
    return M.reshape(3 * Cin * W, Cout * W)


def _build_rows(gamma, beta, W):
    """Per-channel BN affine params broadcast to lane-dense rows: (2, C*W)."""
    def row(v):
        C = v.shape[0]
        return jnp.broadcast_to(v.astype(jnp.float32)[:, None],
                                (C, W)).reshape(1, C * W)
    return jnp.concatenate([row(gamma), row(beta)], axis=0)


# ----------------------- the single fused kernel ----------------------------

def _fused_net_kernel(*refs, stage_meta, N):
    """refs = (x_slab, *per-stage constant operands..., out_slab)."""
    f32 = jnp.float32
    o_ref = refs[-1]
    const_refs = refs[1:-1]

    def dot(a, b):
        return jnp.dot(a, b, preferred_element_type=f32)

    x = refs[0][...]
    idx = 0
    for (mode, H, W, n_consts) in stage_meta:
        c = const_refs[idx:idx + n_consts]
        idx += n_consts
        m_ref, rows_ref, p_ref = c[0], c[1], c[2]

        NH = N * H
        # ---- 3x3 "same" conv: ONE matmul over a 3*Cin*W contraction --------
        # kh taps = sublane-shifted slab copies (per-image zero padding at
        # h==0 / h==H-1 is a masked row). Shifts ride the XLU/VPU slots.
        h_idx = jax.lax.broadcasted_iota(jnp.int32, (NH, 1), 0) % H
        x_dn = jnp.where(h_idx == 0, 0.0, jnp.roll(x, 1, axis=0))       # row h-1
        x_up = jnp.where(h_idx == H - 1, 0.0, jnp.roll(x, -1, axis=0))  # row h+1
        conv = dot(jnp.concatenate([x_dn, x, x_up], axis=1), m_ref[...])
        # Conv bias intentionally omitted: it cancels exactly under
        # training-mode BatchNorm (mean subtraction) in the forward output.

        # ---- BatchNorm2d (batch stats, biased var) + ReLU -------------------
        inv_cnt = 1.0 / float(N * H * W)
        colsum = jnp.sum(conv, axis=0, keepdims=True)                 # (1, L)
        colsq = jnp.sum(conv * conv, axis=0, keepdims=True)           # (1, L)
        red = dot(jnp.concatenate([colsum, colsq], axis=0), p_ref[...]) * inv_cnt
        mean_row = red[0:1, :]
        var_row = jnp.maximum(red[1:2, :] - mean_row * mean_row, 0.0)
        scale_row = rows_ref[0:1, :] * jax.lax.rsqrt(var_row + _EPS)  # gamma/std
        shift_row = rows_ref[1:2, :] - mean_row * scale_row           # beta - m*s
        act = jnp.maximum(conv * scale_row + shift_row, 0.0)

        # ---- resampling, batched over all (n, c) planes ---------------------
        if mode == "pool":                       # MaxPool2d(2, 2): 2 matmuls
            reven_ref, c0_ref = c[3], c[4]
            rowmax = jnp.maximum(act, jnp.roll(act, -1, axis=0))      # rows h,h+1
            rsel = dot(reven_ref[...], rowmax)                        # keep even h
            lanemax = jnp.maximum(rsel, jnp.roll(rsel, -1, axis=1))   # lanes w,w+1
            x = dot(lanemax, c0_ref[...])                             # keep even w
        else:                                    # nearest Upsample x2: 2 matmuls
            ur_ref, uc_ref = c[3], c[4]
            x = dot(ur_ref[...], dot(act, uc_ref[...]))

    o_ref[...] = x


# ----------------------- wrapper ---------------------------------------------

def net_forward(params, x):
    """x: (N, 1, H, W) f32 NCHW -> (N, 1, H, W), matching the PyTorch Net."""
    f32 = jnp.float32
    N, C, H, W = x.shape
    x = x.astype(f32)

    operands, stage_meta = [], []
    cin, h, w = C, H, W
    for name, mode in _STAGES:
        wgt, _b, gamma, beta = params[name]   # conv bias cancels under BN
        cout = wgt.shape[0]
        consts = [
            _build_conv_mat(wgt, w),          # (3*cin*w, cout*w)
            _build_rows(gamma, beta, w),      # (2, cout*w)
            _same_channel_mat(cout, w),       # (cout*w, cout*w)
        ]
        if mode == "pool":
            consts += list(_pool_mats(N, cout, h, w))
            ho, wo = h // 2, w // 2
        else:
            consts += list(_up_mats(N, cout, h, w))
            ho, wo = 2 * h, 2 * w
        stage_meta.append((mode, h, w, len(consts)))
        operands += consts
        cin, h, w = cout, ho, wo

    # lane-dense slab: (N*H, C*W), sublane = n*H + h, lane = c*W + w
    x_slab = jnp.transpose(x, (0, 2, 1, 3)).reshape(N * H, C * W)

    kern = functools.partial(_fused_net_kernel, stage_meta=tuple(stage_meta), N=N)
    out_slab = pl.pallas_call(
        kern,
        out_shape=jax.ShapeDtypeStruct((N * h, cin * w), f32),
        in_specs=[pl.BlockSpec(memory_space=pltpu.MemorySpace.VMEM)]
        * (1 + len(operands)),
        out_specs=pl.BlockSpec(memory_space=pltpu.MemorySpace.VMEM),
    )(x_slab, *operands)

    return out_slab.reshape(N, h, cin, w).transpose(0, 2, 1, 3)


# ----------------------- params (synthetic, deterministic) -------------------

def convtranspose_to_conv(wt):
    """ConvTranspose2d(k=3,s=1,p=1) weight (Cin,Cout,3,3) -> equivalent
    Conv2d(k=3,s=1,p=1) weight (Cout,Cin,3,3): swap channel axes, flip spatially."""
    return jnp.flip(jnp.transpose(wt, (1, 0, 2, 3)), axis=(2, 3))


def init_params(key):
    def conv_p(k, cout, cin):
        k1, k2 = jax.random.split(k)
        return (0.2 * jax.random.normal(k1, (cout, cin, 3, 3), jnp.float32),
                0.1 * jax.random.normal(k2, (cout,), jnp.float32))

    def convt_p(k, cin, cout):
        k1, k2 = jax.random.split(k)
        return (0.2 * jax.random.normal(k1, (cin, cout, 3, 3), jnp.float32),
                0.1 * jax.random.normal(k2, (cout,), jnp.float32))

    def bn_p(c):  # PyTorch BN default init: gamma=1, beta=0
        return jnp.ones((c,), jnp.float32), jnp.zeros((c,), jnp.float32)

    keys = jax.random.split(key, 6)
    params = {}
    params["enc1"] = conv_p(keys[0], 4, 1) + bn_p(4)
    params["enc2"] = conv_p(keys[1], 8, 4) + bn_p(8)
    wt, bt = convt_p(keys[2], 8, 4)
    params["dec1"] = (convtranspose_to_conv(wt), bt) + bn_p(4)
    wt, bt = convt_p(keys[3], 4, 4)
    params["dec2"] = (convtranspose_to_conv(wt), bt) + bn_p(4)
    wt, bt = convt_p(keys[4], 4, 4)
    params["dec3"] = (convtranspose_to_conv(wt), bt) + bn_p(4)
    params["dec4"] = conv_p(keys[5], 1, 4) + bn_p(1)
    return params


# ----------------------- pure-JAX reference (correctness check) --------------

def _ref_stage(x, w, b, gamma, beta, mode, eps=_EPS):
    y = jax.lax.conv_general_dilated(
        x, w, window_strides=(1, 1), padding=((1, 1), (1, 1)),
        dimension_numbers=("NCHW", "OIHW", "NCHW"))
    y = y + b[None, :, None, None]
    mean = jnp.mean(y, axis=(0, 2, 3), keepdims=True)
    var = jnp.mean(jnp.square(y - mean), axis=(0, 2, 3), keepdims=True)
    y = (y - mean) * jax.lax.rsqrt(var + eps)
    y = y * gamma[None, :, None, None] + beta[None, :, None, None]
    y = jnp.maximum(y, 0.0)
    if mode == "pool":
        y = jax.lax.reduce_window(y, -jnp.inf, jax.lax.max,
                                  (1, 1, 2, 2), (1, 1, 2, 2), "VALID")
    else:
        y = jnp.repeat(jnp.repeat(y, 2, axis=2), 2, axis=3)
    return y


def net_forward_ref(params, x):
    y = x.astype(jnp.float32)
    for name, mode in _STAGES:
        y = _ref_stage(y, *params[name], mode)
    return y


if __name__ == "__main__":
    key = jax.random.PRNGKey(0)
    kx, kp = jax.random.split(key)
    x = jax.random.normal(kx, (2, 1, 16, 16), jnp.float32)   # NCHW, 1 input channel
    params = init_params(kp)

    out = jax.block_until_ready(jax.jit(net_forward)(params, x))
    ref = jax.block_until_ready(jax.jit(net_forward_ref)(params, x))

    assert out.shape == (2, 1, 16, 16), out.shape
    assert out.dtype == jnp.float32
    assert bool(jnp.all(jnp.isfinite(out)))
    assert bool(jnp.all(out >= 0.0))      # final chain ends in ReLU -> maxpool
    err = float(jnp.max(jnp.abs(out - ref)))
    assert err < 5e-2, f"max abs error vs pure-JAX reference: {err}"
    print("KERNEL_OK")
</pallas_src>

<mosaic_0001>
module attributes {stable_mosaic.version = 11 : i64} {
  func.func @_fused_net_kernel(%arg0: memref<32x16xf32, #tpu.memory_space<vmem>>, %arg1: memref<48x64xf32, #tpu.memory_space<vmem>>, %arg2: memref<2x64xf32, #tpu.memory_space<vmem>>, %arg3: memref<64x64xf32, #tpu.memory_space<vmem>>, %arg4: memref<16x32xf32, #tpu.memory_space<vmem>>, %arg5: memref<64x32xf32, #tpu.memory_space<vmem>>, %arg6: memref<96x64xf32, #tpu.memory_space<vmem>>, %arg7: memref<2x64xf32, #tpu.memory_space<vmem>>, %arg8: memref<64x64xf32, #tpu.memory_space<vmem>>, %arg9: memref<8x16xf32, #tpu.memory_space<vmem>>, %arg10: memref<64x32xf32, #tpu.memory_space<vmem>>, %arg11: memref<96x16xf32, #tpu.memory_space<vmem>>, %arg12: memref<2x16xf32, #tpu.memory_space<vmem>>, %arg13: memref<16x16xf32, #tpu.memory_space<vmem>>, %arg14: memref<16x8xf32, #tpu.memory_space<vmem>>, %arg15: memref<16x32xf32, #tpu.memory_space<vmem>>, %arg16: memref<96x32xf32, #tpu.memory_space<vmem>>, %arg17: memref<2x32xf32, #tpu.memory_space<vmem>>, %arg18: memref<32x32xf32, #tpu.memory_space<vmem>>, %arg19: memref<32x16xf32, #tpu.memory_space<vmem>>, %arg20: memref<32x64xf32, #tpu.memory_space<vmem>>, %arg21: memref<192x64xf32, #tpu.memory_space<vmem>>, %arg22: memref<2x64xf32, #tpu.memory_space<vmem>>, %arg23: memref<64x64xf32, #tpu.memory_space<vmem>>, %arg24: memref<64x32xf32, #tpu.memory_space<vmem>>, %arg25: memref<64x128xf32, #tpu.memory_space<vmem>>, %arg26: memref<384x32xf32, #tpu.memory_space<vmem>>, %arg27: memref<2x32xf32, #tpu.memory_space<vmem>>, %arg28: memref<32x32xf32, #tpu.memory_space<vmem>>, %arg29: memref<32x64xf32, #tpu.memory_space<vmem>>, %arg30: memref<32x16xf32, #tpu.memory_space<vmem>>, %arg31: memref<32x16xf32, #tpu.memory_space<vmem>>) attributes {dimension_semantics = [], scalar_prefetch = 0 : i64, scratch_operands = 0 : i64, tpu.core_type = #tpu.core_type<tc>} {
    %c0 = arith.constant 0 : index
    %c0_0 = arith.constant 0 : index
    %0 = vector.load %arg0[%c0, %c0_0] : memref<32x16xf32, #tpu.memory_space<vmem>>, vector<32x16xf32>
    %1 = tpu.iota {dimensions = array<i32: 0>} : vector<32x1xi32>
    %c16_i32 = arith.constant 16 : i32
    %c0_i32 = arith.constant 0 : i32
    %2 = arith.cmpi eq, %c16_i32, %c0_i32 : i32
    %c1_i32 = arith.constant 1 : i32
    %3 = arith.select %2, %c1_i32, %c16_i32 : i32
    %4 = vector.broadcast %3 : i32 to vector<32x1xi32>
    %5 = arith.remsi %1, %4 : vector<32x1xi32>
    %c0_i32_1 = arith.constant 0 : i32
    %6 = vector.broadcast %c0_i32_1 : i32 to vector<32x1xi32>
    %7 = arith.cmpi ne, %5, %6 : vector<32x1xi32>
    %c0_i32_2 = arith.constant 0 : i32
    %8 = vector.broadcast %c0_i32_2 : i32 to vector<32x1xi32>
    %9 = arith.cmpi slt, %5, %8 : vector<32x1xi32>
    %c0_i32_3 = arith.constant 0 : i32
    %10 = arith.cmpi slt, %3, %c0_i32_3 : i32
    %11 = vector.broadcast %10 : i1 to vector<32x1xi1>
    %12 = vector.broadcast %11 : vector<32x1xi1> to vector<32x1xi1>
    %13 = arith.xori %9, %12 : vector<32x1xi1>
    %14 = arith.andi %13, %7 : vector<32x1xi1>
    %15 = vector.broadcast %3 : i32 to vector<32x1xi32>
    %16 = arith.addi %5, %15 : vector<32x1xi32>
    %17 = arith.select %14, %16, %5 : vector<32x1xi1>, vector<32x1xi32>
    %c0_i32_4 = arith.constant 0 : i32
    %18 = vector.broadcast %c0_i32_4 : i32 to vector<32x1xi32>
    %19 = arith.cmpi eq, %17, %18 : vector<32x1xi32>
    %20 = vector.extract_strided_slice %0 {offsets = [31, 0], sizes = [1, 16], strides = [1, 1]} : vector<32x16xf32> to vector<1x16xf32>
    %21 = vector.extract_strided_slice %0 {offsets = [0, 0], sizes = [31, 16], strides = [1, 1]} : vector<32x16xf32> to vector<31x16xf32>
    %22 = tpu.concatenate %20, %21 in 0 : vector<1x16xf32>, vector<31x16xf32> -> vector<32x16xf32>
    %cst = arith.constant 0.000000e+00 : f32
    %23 = vector.shape_cast %19 : vector<32x1xi1> to vector<32x1xi1>
    %24 = vector.broadcast %23 : vector<32x1xi1> to vector<32x16xi1>
    %25 = vector.broadcast %cst : f32 to vector<32x16xf32>
    %26 = arith.select %24, %25, %22 : vector<32x16xi1>, vector<32x16xf32>
    %c15_i32 = arith.constant 15 : i32
    %27 = vector.broadcast %c15_i32 : i32 to vector<32x1xi32>
    %28 = arith.cmpi eq, %17, %27 : vector<32x1xi32>
    %29 = vector.extract_strided_slice %0 {offsets = [1, 0], sizes = [31, 16], strides = [1, 1]} : vector<32x16xf32> to vector<31x16xf32>
    %30 = vector.extract_strided_slice %0 {offsets = [0, 0], sizes = [1, 16], strides = [1, 1]} : vector<32x16xf32> to vector<1x16xf32>
    %31 = tpu.concatenate %29, %30 in 0 : vector<31x16xf32>, vector<1x16xf32> -> vector<32x16xf32>
    %cst_5 = arith.constant 0.000000e+00 : f32
    %32 = vector.shape_cast %28 : vector<32x1xi1> to vector<32x1xi1>
    %33 = vector.broadcast %32 : vector<32x1xi1> to vector<32x16xi1>
    %34 = vector.broadcast %cst_5 : f32 to vector<32x16xf32>
    %35 = arith.select %33, %34, %31 : vector<32x16xi1>, vector<32x16xf32>
    %36 = tpu.concatenate %26, %0, %35 in 1 : vector<32x16xf32>, vector<32x16xf32>, vector<32x16xf32> -> vector<32x48xf32>
    %c0_6 = arith.constant 0 : index
    %c0_7 = arith.constant 0 : index
    %37 = vector.load %arg1[%c0_6, %c0_7] : memref<48x64xf32, #tpu.memory_space<vmem>>, vector<48x64xf32>
    %cst_8 = arith.constant dense<0.000000e+00> : vector<32x64xf32>
    %38 = tpu.matmul %36, %37, %cst_8 {dimension_numbers = #tpu.dot_dimension_numbers<[1], [0], [0], [1], [0, 0, 1, 1], [], []>} : vector<32x48xf32>, vector<48x64xf32>, vector<32x64xf32> -> vector<32x64xf32>
    %cst_9 = arith.constant dense<0.000000e+00> : vector<64xf32>
    %39 = vector.multi_reduction <add>, %38, %cst_9 [0] : vector<32x64xf32> to vector<64xf32>
    %40 = vector.shape_cast %39 : vector<64xf32> to vector<1x64xf32>
    %41 = arith.mulf %38, %38 : vector<32x64xf32>
    %cst_10 = arith.constant dense<0.000000e+00> : vector<64xf32>
    %42 = vector.multi_reduction <add>, %41, %cst_10 [0] : vector<32x64xf32> to vector<64xf32>
    %43 = vector.shape_cast %42 : vector<64xf32> to vector<1x64xf32>
    %44 = tpu.concatenate %40, %43 in 0 : vector<1x64xf32>, vector<1x64xf32> -> vector<2x64xf32>
    %c0_11 = arith.constant 0 : index
    %c0_12 = arith.constant 0 : index
    %45 = vector.load %arg3[%c0_11, %c0_12] : memref<64x64xf32, #tpu.memory_space<vmem>>, vector<64x64xf32>
    %cst_13 = arith.constant dense<0.000000e+00> : vector<2x64xf32>
    %46 = tpu.matmul %44, %45, %cst_13 {dimension_numbers = #tpu.dot_dimension_numbers<[1], [0], [0], [1], [0, 0, 1, 1], [], []>} : vector<2x64xf32>, vector<64x64xf32>, vector<2x64xf32> -> vector<2x64xf32>
    %cst_14 = arith.constant 0.001953125 : f32
    %47 = vector.broadcast %cst_14 : f32 to vector<2x64xf32>
    %48 = arith.mulf %46, %47 : vector<2x64xf32>
    %49 = vector.extract_strided_slice %48 {offsets = [0, 0], sizes = [1, 64], strides = [1, 1]} : vector<2x64xf32> to vector<1x64xf32>
    %50 = vector.extract_strided_slice %48 {offsets = [1, 0], sizes = [1, 64], strides = [1, 1]} : vector<2x64xf32> to vector<1x64xf32>
    %51 = arith.mulf %49, %49 : vector<1x64xf32>
    %52 = arith.subf %50, %51 : vector<1x64xf32>
    %cst_15 = arith.constant 0.000000e+00 : f32
    %53 = vector.broadcast %cst_15 : f32 to vector<1x64xf32>
    %54 = arith.maximumf %52, %53 : vector<1x64xf32>
    %c0_16 = arith.constant 0 : index
    %c0_17 = arith.constant 0 : index
    %55 = vector.load %arg2[%c0_16, %c0_17] : memref<2x64xf32, #tpu.memory_space<vmem>>, vector<1x64xf32>
    %cst_18 = arith.constant 9.99999974E-6 : f32
    %56 = vector.broadcast %cst_18 : f32 to vector<1x64xf32>
    %57 = arith.addf %54, %56 : vector<1x64xf32>
    %58 = math.rsqrt %57 : vector<1x64xf32>
    %59 = arith.mulf %55, %58 : vector<1x64xf32>
    %c1 = arith.constant 1 : index
    %c0_19 = arith.constant 0 : index
    %60 = vector.load %arg2[%c1, %c0_19] : memref<2x64xf32, #tpu.memory_space<vmem>>, vector<1x64xf32>
    %61 = arith.mulf %49, %59 : vector<1x64xf32>
    %62 = arith.subf %60, %61 : vector<1x64xf32>
    %63 = vector.broadcast %59 : vector<1x64xf32> to vector<32x64xf32>
    %64 = arith.mulf %38, %63 : vector<32x64xf32>
    %65 = vector.broadcast %62 : vector<1x64xf32> to vector<32x64xf32>
    %66 = arith.addf %64, %65 : vector<32x64xf32>
    %cst_20 = arith.constant 0.000000e+00 : f32
    %67 = vector.broadcast %cst_20 : f32 to vector<32x64xf32>
    %68 = arith.maximumf %66, %67 : vector<32x64xf32>
    %69 = vector.extract_strided_slice %68 {offsets = [1, 0], sizes = [31, 64], strides = [1, 1]} : vector<32x64xf32> to vector<31x64xf32>
    %70 = vector.extract_strided_slice %68 {offsets = [0, 0], sizes = [1, 64], strides = [1, 1]} : vector<32x64xf32> to vector<1x64xf32>
    %71 = tpu.concatenate %69, %70 in 0 : vector<31x64xf32>, vector<1x64xf32> -> vector<32x64xf32>
    %72 = arith.maximumf %68, %71 : vector<32x64xf32>
    %c0_21 = arith.constant 0 : index
    %c0_22 = arith.constant 0 : index
    %73 = vector.load %arg4[%c0_21, %c0_22] : memref<16x32xf32, #tpu.memory_space<vmem>>, vector<16x32xf32>
    %cst_23 = arith.constant dense<0.000000e+00> : vector<16x64xf32>
    %74 = tpu.matmul %73, %72, %cst_23 {dimension_numbers = #tpu.dot_dimension_numbers<[1], [0], [0], [1], [0, 0, 1, 1], [], []>} : vector<16x32xf32>, vector<32x64xf32>, vector<16x64xf32> -> vector<16x64xf32>
    %75 = vector.extract_strided_slice %74 {offsets = [0, 1], sizes = [16, 63], strides = [1, 1]} : vector<16x64xf32> to vector<16x63xf32>
    %76 = vector.extract_strided_slice %74 {offsets = [0, 0], sizes = [16, 1], strides = [1, 1]} : vector<16x64xf32> to vector<16x1xf32>
    %77 = tpu.concatenate %75, %76 in 1 : vector<16x63xf32>, vector<16x1xf32> -> vector<16x64xf32>
    %78 = arith.maximumf %74, %77 : vector<16x64xf32>
    %c0_24 = arith.constant 0 : index
    %c0_25 = arith.constant 0 : index
    %79 = vector.load %arg5[%c0_24, %c0_25] : memref<64x32xf32, #tpu.memory_space<vmem>>, vector<64x32xf32>
    %cst_26 = arith.constant dense<0.000000e+00> : vector<16x32xf32>
    %80 = tpu.matmul %78, %79, %cst_26 {dimension_numbers = #tpu.dot_dimension_numbers<[1], [0], [0], [1], [0, 0, 1, 1], [], []>} : vector<16x64xf32>, vector<64x32xf32>, vector<16x32xf32> -> vector<16x32xf32>
    %81 = tpu.iota {dimensions = array<i32: 0>} : vector<16x1xi32>
    %c8_i32 = arith.constant 8 : i32
    %c0_i32_27 = arith.constant 0 : i32
    %82 = arith.cmpi eq, %c8_i32, %c0_i32_27 : i32
    %c1_i32_28 = arith.constant 1 : i32
    %83 = arith.select %82, %c1_i32_28, %c8_i32 : i32
    %84 = vector.broadcast %83 : i32 to vector<16x1xi32>
    %85 = arith.remsi %81, %84 : vector<16x1xi32>
    %c0_i32_29 = arith.constant 0 : i32
    %86 = vector.broadcast %c0_i32_29 : i32 to vector<16x1xi32>
    %87 = arith.cmpi ne, %85, %86 : vector<16x1xi32>
    %c0_i32_30 = arith.constant 0 : i32
    %88 = vector.broadcast %c0_i32_30 : i32 to vector<16x1xi32>
    %89 = arith.cmpi slt, %85, %88 : vector<16x1xi32>
    %c0_i32_31 = arith.constant 0 : i32
    %90 = arith.cmpi slt, %83, %c0_i32_31 : i32
    %91 = vector.broadcast %90 : i1 to vector<16x1xi1>
    %92 = vector.broadcast %91 : vector<16x1xi1> to vector<16x1xi1>
    %93 = arith.xori %89, %92 : vector<16x1xi1>
    %94 = arith.andi %93, %87 : vector<16x1xi1>
    %95 = vector.broadcast %83 : i32 to vector<16x1xi32>
    %96 = arith.addi %85, %95 : vector<16x1xi32>
    %97 = arith.select %94, %96, %85 : vector<16x1xi1>, vector<16x1xi32>
    %c0_i32_32 = arith.constant 0 : i32
    %98 = vector.broadcast %c0_i32_32 : i32 to vector<16x1xi32>
    %99 = arith.cmpi eq, %97, %98 : vector<16x1xi32>
    %100 = vector.extract_strided_slice %80 {offsets = [15, 0], sizes = [1, 32], strides = [1, 1]} : vector<16x32xf32> to vector<1x32xf32>
    %101 = vector.extract_strided_slice %80 {offsets = [0, 0], sizes = [15, 32], strides = [1, 1]} : vector<16x32xf32> to vector<15x32xf32>
    %102 = tpu.concatenate %100, %101 in 0 : vector<1x32xf32>, vector<15x32xf32> -> vector<16x32xf32>
    %cst_33 = arith.constant 0.000000e+00 : f32
    %103 = vector.shape_cast %99 : vector<16x1xi1> to vector<16x1xi1>
    %104 = vector.broadcast %103 : vector<16x1xi1> to vector<16x32xi1>
    %105 = vector.broadcast %cst_33 : f32 to vector<16x32xf32>
    %106 = arith.select %104, %105, %102 : vector<16x32xi1>, vector<16x32xf32>
    %c7_i32 = arith.constant 7 : i32
    %107 = vector.broadcast %c7_i32 : i32 to vector<16x1xi32>
    %108 = arith.cmpi eq, %97, %107 : vector<16x1xi32>
    %109 = vector.extract_strided_slice %80 {offsets = [1, 0], sizes = [15, 32], strides = [1, 1]} : vector<16x32xf32> to vector<15x32xf32>
    %110 = vector.extract_strided_slice %80 {offsets = [0, 0], sizes = [1, 32], strides = [1, 1]} : vector<16x32xf32> to vector<1x32xf32>
    %111 = tpu.concatenate %109, %110 in 0 : vector<15x32xf32>, vector<1x32xf32> -> vector<16x32xf32>
    %cst_34 = arith.constant 0.000000e+00 : f32
    %112 = vector.shape_cast %108 : vector<16x1xi1> to vector<16x1xi1>
    %113 = vector.broadcast %112 : vector<16x1xi1> to vector<16x32xi1>
    %114 = vector.broadcast %cst_34 : f32 to vector<16x32xf32>
    %115 = arith.select %113, %114, %111 : vector<16x32xi1>, vector<16x32xf32>
    %116 = tpu.concatenate %106, %80, %115 in 1 : vector<16x32xf32>, vector<16x32xf32>, vector<16x32xf32> -> vector<16x96xf32>
    %c0_35 = arith.constant 0 : index
    %c0_36 = arith.constant 0 : index
    %117 = vector.load %arg6[%c0_35, %c0_36] : memref<96x64xf32, #tpu.memory_space<vmem>>, vector<96x64xf32>
    %cst_37 = arith.constant dense<0.000000e+00> : vector<16x64xf32>
    %118 = tpu.matmul %116, %117, %cst_37 {dimension_numbers = #tpu.dot_dimension_numbers<[1], [0], [0], [1], [0, 0, 1, 1], [], []>} : vector<16x96xf32>, vector<96x64xf32>, vector<16x64xf32> -> vector<16x64xf32>
    %cst_38 = arith.constant dense<0.000000e+00> : vector<64xf32>
    %119 = vector.multi_reduction <add>, %118, %cst_38 [0] : vector<16x64xf32> to vector<64xf32>
    %120 = vector.shape_cast %119 : vector<64xf32> to vector<1x64xf32>
    %121 = arith.mulf %118, %118 : vector<16x64xf32>
    %cst_39 = arith.constant dense<0.000000e+00> : vector<64xf32>
    %122 = vector.multi_reduction <add>, %121, %cst_39 [0] : vector<16x64xf32> to vector<64xf32>
    %123 = vector.shape_cast %122 : vector<64xf32> to vector<1x64xf32>
    %124 = tpu.concatenate %120, %123 in 0 : vector<1x64xf32>, vector<1x64xf32> -> vector<2x64xf32>
    %c0_40 = arith.constant 0 : index
    %c0_41 = arith.constant 0 : index
    %125 = vector.load %arg8[%c0_40, %c0_41] : memref<64x64xf32, #tpu.memory_space<vmem>>, vector<64x64xf32>
    %cst_42 = arith.constant dense<0.000000e+00> : vector<2x64xf32>
    %126 = tpu.matmul %124, %125, %cst_42 {dimension_numbers = #tpu.dot_dimension_numbers<[1], [0], [0], [1], [0, 0, 1, 1], [], []>} : vector<2x64xf32>, vector<64x64xf32>, vector<2x64xf32> -> vector<2x64xf32>
    %cst_43 = arith.constant 7.812500e-03 : f32
    %127 = vector.broadcast %cst_43 : f32 to vector<2x64xf32>
    %128 = arith.mulf %126, %127 : vector<2x64xf32>
    %129 = vector.extract_strided_slice %128 {offsets = [0, 0], sizes = [1, 64], strides = [1, 1]} : vector<2x64xf32> to vector<1x64xf32>
    %130 = vector.extract_strided_slice %128 {offsets = [1, 0], sizes = [1, 64], strides = [1, 1]} : vector<2x64xf32> to vector<1x64xf32>
    %131 = arith.mulf %129, %129 : vector<1x64xf32>
    %132 = arith.subf %130, %131 : vector<1x64xf32>
    %cst_44 = arith.constant 0.000000e+00 : f32
    %133 = vector.broadcast %cst_44 : f32 to vector<1x64xf32>
    %134 = arith.maximumf %132, %133 : vector<1x64xf32>
    %c0_45 = arith.constant 0 : index
    %c0_46 = arith.constant 0 : index
    %135 = vector.load %arg7[%c0_45, %c0_46] : memref<2x64xf32, #tpu.memory_space<vmem>>, vector<1x64xf32>
    %cst_47 = arith.constant 9.99999974E-6 : f32
    %136 = vector.broadcast %cst_47 : f32 to vector<1x64xf32>
    %137 = arith.addf %134, %136 : vector<1x64xf32>
    %138 = math.rsqrt %137 : vector<1x64xf32>
    %139 = arith.mulf %135, %138 : vector<1x64xf32>
    %c1_48 = arith.constant 1 : index
    %c0_49 = arith.constant 0 : index
    %140 = vector.load %arg7[%c1_48, %c0_49] : memref<2x64xf32, #tpu.memory_space<vmem>>, vector<1x64xf32>
    %141 = arith.mulf %129, %139 : vector<1x64xf32>
    %142 = arith.subf %140, %141 : vector<1x64xf32>
    %143 = vector.broadcast %139 : vector<1x64xf32> to vector<16x64xf32>
    %144 = arith.mulf %118, %143 : vector<16x64xf32>
    %145 = vector.broadcast %142 : vector<1x64xf32> to vector<16x64xf32>
    %146 = arith.addf %144, %145 : vector<16x64xf32>
    %cst_50 = arith.constant 0.000000e+00 : f32
    %147 = vector.broadcast %cst_50 : f32 to vector<16x64xf32>
    %148 = arith.maximumf %146, %147 : vector<16x64xf32>
    %149 = vector.extract_strided_slice %148 {offsets = [1, 0], sizes = [15, 64], strides = [1, 1]} : vector<16x64xf32> to vector<15x64xf32>
    %150 = vector.extract_strided_slice %148 {offsets = [0, 0], sizes = [1, 64], strides = [1, 1]} : vector<16x64xf32> to vector<1x64xf32>
    %151 = tpu.concatenate %149, %150 in 0 : vector<15x64xf32>, vector<1x64xf32> -> vector<16x64xf32>
    %152 = arith.maximumf %148, %151 : vector<16x64xf32>
    %c0_51 = arith.constant 0 : index
    %c0_52 = arith.constant 0 : index
    %153 = vector.load %arg9[%c0_51, %c0_52] : memref<8x16xf32, #tpu.memory_space<vmem>>, vector<8x16xf32>
    %cst_53 = arith.constant dense<0.000000e+00> : vector<8x64xf32>
    %154 = tpu.matmul %153, %152, %cst_53 {dimension_numbers = #tpu.dot_dimension_numbers<[1], [0], [0], [1], [0, 0, 1, 1], [], []>} : vector<8x16xf32>, vector<16x64xf32>, vector<8x64xf32> -> vector<8x64xf32>
    %155 = vector.extract_strided_slice %154 {offsets = [0, 1], sizes = [8, 63], strides = [1, 1]} : vector<8x64xf32> to vector<8x63xf32>
    %156 = vector.extract_strided_slice %154 {offsets = [0, 0], sizes = [8, 1], strides = [1, 1]} : vector<8x64xf32> to vector<8x1xf32>
    %157 = tpu.concatenate %155, %156 in 1 : vector<8x63xf32>, vector<8x1xf32> -> vector<8x64xf32>
    %158 = arith.maximumf %154, %157 : vector<8x64xf32>
    %c0_54 = arith.constant 0 : index
    %c0_55 = arith.constant 0 : index
    %159 = vector.load %arg10[%c0_54, %c0_55] : memref<64x32xf32, #tpu.memory_space<vmem>>, vector<64x32xf32>
    %cst_56 = arith.constant dense<0.000000e+00> : vector<8x32xf32>
    %160 = tpu.matmul %158, %159, %cst_56 {dimension_numbers = #tpu.dot_dimension_numbers<[1], [0], [0], [1], [0, 0, 1, 1], [], []>} : vector<8x64xf32>, vector<64x32xf32>, vector<8x32xf32> -> vector<8x32xf32>
    %161 = tpu.iota {dimensions = array<i32: 0>} : vector<8x1xi32>
    %c4_i32 = arith.constant 4 : i32
    %c0_i32_57 = arith.constant 0 : i32
    %162 = arith.cmpi eq, %c4_i32, %c0_i32_57 : i32
    %c1_i32_58 = arith.constant 1 : i32
    %163 = arith.select %162, %c1_i32_58, %c4_i32 : i32
    %164 = vector.broadcast %163 : i32 to vector<8x1xi32>
    %165 = arith.remsi %161, %164 : vector<8x1xi32>
    %c0_i32_59 = arith.constant 0 : i32
    %166 = vector.broadcast %c0_i32_59 : i32 to vector<8x1xi32>
    %167 = arith.cmpi ne, %165, %166 : vector<8x1xi32>
    %c0_i32_60 = arith.constant 0 : i32
    %168 = vector.broadcast %c0_i32_60 : i32 to vector<8x1xi32>
    %169 = arith.cmpi slt, %165, %168 : vector<8x1xi32>
    %c0_i32_61 = arith.constant 0 : i32
    %170 = arith.cmpi slt, %163, %c0_i32_61 : i32
    %171 = vector.broadcast %170 : i1 to vector<8x1xi1>
    %172 = vector.broadcast %171 : vector<8x1xi1> to vector<8x1xi1>
    %173 = arith.xori %169, %172 : vector<8x1xi1>
    %174 = arith.andi %173, %167 : vector<8x1xi1>
    %175 = vector.broadcast %163 : i32 to vector<8x1xi32>
    %176 = arith.addi %165, %175 : vector<8x1xi32>
    %177 = arith.select %174, %176, %165 : vector<8x1xi1>, vector<8x1xi32>
    %c0_i32_62 = arith.constant 0 : i32
    %178 = vector.broadcast %c0_i32_62 : i32 to vector<8x1xi32>
    %179 = arith.cmpi eq, %177, %178 : vector<8x1xi32>
    %180 = vector.extract_strided_slice %160 {offsets = [7, 0], sizes = [1, 32], strides = [1, 1]} : vector<8x32xf32> to vector<1x32xf32>
    %181 = vector.extract_strided_slice %160 {offsets = [0, 0], sizes = [7, 32], strides = [1, 1]} : vector<8x32xf32> to vector<7x32xf32>
    %182 = tpu.concatenate %180, %181 in 0 : vector<1x32xf32>, vector<7x32xf32> -> vector<8x32xf32>
    %cst_63 = arith.constant 0.000000e+00 : f32
    %183 = vector.shape_cast %179 : vector<8x1xi1> to vector<8x1xi1>
    %184 = vector.broadcast %183 : vector<8x1xi1> to vector<8x32xi1>
    %185 = vector.broadcast %cst_63 : f32 to vector<8x32xf32>
    %186 = arith.select %184, %185, %182 : vector<8x32xi1>, vector<8x32xf32>
    %c3_i32 = arith.constant 3 : i32
    %187 = vector.broadcast %c3_i32 : i32 to vector<8x1xi32>
    %188 = arith.cmpi eq, %177, %187 : vector<8x1xi32>
    %189 = vector.extract_strided_slice %160 {offsets = [1, 0], sizes = [7, 32], strides = [1, 1]} : vector<8x32xf32> to vector<7x32xf32>
    %190 = vector.extract_strided_slice %160 {offsets = [0, 0], sizes = [1, 32], strides = [1, 1]} : vector<8x32xf32> to vector<1x32xf32>
    %191 = tpu.concatenate %189, %190 in 0 : vector<7x32xf32>, vector<1x32xf32> -> vector<8x32xf32>
    %cst_64 = arith.constant 0.000000e+00 : f32
    %192 = vector.shape_cast %188 : vector<8x1xi1> to vector<8x1xi1>
    %193 = vector.broadcast %192 : vector<8x1xi1> to vector<8x32xi1>
    %194 = vector.broadcast %cst_64 : f32 to vector<8x32xf32>
    %195 = arith.select %193, %194, %191 : vector<8x32xi1>, vector<8x32xf32>
    %196 = tpu.concatenate %186, %160, %195 in 1 : vector<8x32xf32>, vector<8x32xf32>, vector<8x32xf32> -> vector<8x96xf32>
    %c0_65 = arith.constant 0 : index
    %c0_66 = arith.constant 0 : index
    %197 = vector.load %arg11[%c0_65, %c0_66] : memref<96x16xf32, #tpu.memory_space<vmem>>, vector<96x16xf32>
    %cst_67 = arith.constant dense<0.000000e+00> : vector<8x16xf32>
    %198 = tpu.matmul %196, %197, %cst_67 {dimension_numbers = #tpu.dot_dimension_numbers<[1], [0], [0], [1], [0, 0, 1, 1], [], []>} : vector<8x96xf32>, vector<96x16xf32>, vector<8x16xf32> -> vector<8x16xf32>
    %cst_68 = arith.constant dense<0.000000e+00> : vector<16xf32>
    %199 = vector.multi_reduction <add>, %198, %cst_68 [0] : vector<8x16xf32> to vector<16xf32>
    %200 = vector.shape_cast %199 : vector<16xf32> to vector<1x16xf32>
    %201 = arith.mulf %198, %198 : vector<8x16xf32>
    %cst_69 = arith.constant dense<0.000000e+00> : vector<16xf32>
    %202 = vector.multi_reduction <add>, %201, %cst_69 [0] : vector<8x16xf32> to vector<16xf32>
    %203 = vector.shape_cast %202 : vector<16xf32> to vector<1x16xf32>
    %204 = tpu.concatenate %200, %203 in 0 : vector<1x16xf32>, vector<1x16xf32> -> vector<2x16xf32>
    %c0_70 = arith.constant 0 : index
    %c0_71 = arith.constant 0 : index
    %205 = vector.load %arg13[%c0_70, %c0_71] : memref<16x16xf32, #tpu.memory_space<vmem>>, vector<16x16xf32>
    %cst_72 = arith.constant dense<0.000000e+00> : vector<2x16xf32>
    %206 = tpu.matmul %204, %205, %cst_72 {dimension_numbers = #tpu.dot_dimension_numbers<[1], [0], [0], [1], [0, 0, 1, 1], [], []>} : vector<2x16xf32>, vector<16x16xf32>, vector<2x16xf32> -> vector<2x16xf32>
    %cst_73 = arith.constant 3.125000e-02 : f32
    %207 = vector.broadcast %cst_73 : f32 to vector<2x16xf32>
    %208 = arith.mulf %206, %207 : vector<2x16xf32>
    %209 = vector.extract_strided_slice %208 {offsets = [0, 0], sizes = [1, 16], strides = [1, 1]} : vector<2x16xf32> to vector<1x16xf32>
    %210 = vector.extract_strided_slice %208 {offsets = [1, 0], sizes = [1, 16], strides = [1, 1]} : vector<2x16xf32> to vector<1x16xf32>
    %211 = arith.mulf %209, %209 : vector<1x16xf32>
    %212 = arith.subf %210, %211 : vector<1x16xf32>
    %cst_74 = arith.constant 0.000000e+00 : f32
    %213 = vector.broadcast %cst_74 : f32 to vector<1x16xf32>
    %214 = arith.maximumf %212, %213 : vector<1x16xf32>
    %c0_75 = arith.constant 0 : index
    %c0_76 = arith.constant 0 : index
    %215 = vector.load %arg12[%c0_75, %c0_76] : memref<2x16xf32, #tpu.memory_space<vmem>>, vector<1x16xf32>
    %cst_77 = arith.constant 9.99999974E-6 : f32
    %216 = vector.broadcast %cst_77 : f32 to vector<1x16xf32>
    %217 = arith.addf %214, %216 : vector<1x16xf32>
    %218 = math.rsqrt %217 : vector<1x16xf32>
    %219 = arith.mulf %215, %218 : vector<1x16xf32>
    %c1_78 = arith.constant 1 : index
    %c0_79 = arith.constant 0 : index
    %220 = vector.load %arg12[%c1_78, %c0_79] : memref<2x16xf32, #tpu.memory_space<vmem>>, vector<1x16xf32>
    %221 = arith.mulf %209, %219 : vector<1x16xf32>
    %222 = arith.subf %220, %221 : vector<1x16xf32>
    %223 = vector.broadcast %219 : vector<1x16xf32> to vector<8x16xf32>
    %224 = arith.mulf %198, %223 : vector<8x16xf32>
    %225 = vector.broadcast %222 : vector<1x16xf32> to vector<8x16xf32>
    %226 = arith.addf %224, %225 : vector<8x16xf32>
    %cst_80 = arith.constant 0.000000e+00 : f32
    %227 = vector.broadcast %cst_80 : f32 to vector<8x16xf32>
    %228 = arith.maximumf %226, %227 : vector<8x16xf32>
    %c0_81 = arith.constant 0 : index
    %c0_82 = arith.constant 0 : index
    %229 = vector.load %arg14[%c0_81, %c0_82] : memref<16x8xf32, #tpu.memory_space<vmem>>, vector<16x8xf32>
    %c0_83 = arith.constant 0 : index
    %c0_84 = arith.constant 0 : index
    %230 = vector.load %arg15[%c0_83, %c0_84] : memref<16x32xf32, #tpu.memory_space<vmem>>, vector<16x32xf32>
    %cst_85 = arith.constant dense<0.000000e+00> : vector<8x32xf32>
    %231 = tpu.matmul %228, %230, %cst_85 {dimension_numbers = #tpu.dot_dimension_numbers<[1], [0], [0], [1], [0, 0, 1, 1], [], []>} : vector<8x16xf32>, vector<16x32xf32>, vector<8x32xf32> -> vector<8x32xf32>
    %cst_86 = arith.constant dense<0.000000e+00> : vector<16x32xf32>
    %232 = tpu.matmul %229, %231, %cst_86 {dimension_numbers = #tpu.dot_dimension_numbers<[1], [0], [0], [1], [0, 0, 1, 1], [], []>} : vector<16x8xf32>, vector<8x32xf32>, vector<16x32xf32> -> vector<16x32xf32>
    %233 = tpu.iota {dimensions = array<i32: 0>} : vector<16x1xi32>
    %c8_i32_87 = arith.constant 8 : i32
    %c0_i32_88 = arith.constant 0 : i32
    %234 = arith.cmpi eq, %c8_i32_87, %c0_i32_88 : i32
    %c1_i32_89 = arith.constant 1 : i32
    %235 = arith.select %234, %c1_i32_89, %c8_i32_87 : i32
    %236 = vector.broadcast %235 : i32 to vector<16x1xi32>
    %237 = arith.remsi %233, %236 : vector<16x1xi32>
    %c0_i32_90 = arith.constant 0 : i32
    %238 = vector.broadcast %c0_i32_90 : i32 to vector<16x1xi32>
    %239 = arith.cmpi ne, %237, %238 : vector<16x1xi32>
    %c0_i32_91 = arith.constant 0 : i32
    %240 = vector.broadcast %c0_i32_91 : i32 to vector<16x1xi32>
    %241 = arith.cmpi slt, %237, %240 : vector<16x1xi32>
    %c0_i32_92 = arith.constant 0 : i32
    %242 = arith.cmpi slt, %235, %c0_i32_92 : i32
    %243 = vector.broadcast %242 : i1 to vector<16x1xi1>
    %244 = vector.broadcast %243 : vector<16x1xi1> to vector<16x1xi1>
    %245 = arith.xori %241, %244 : vector<16x1xi1>
    %246 = arith.andi %245, %239 : vector<16x1xi1>
    %247 = vector.broadcast %235 : i32 to vector<16x1xi32>
    %248 = arith.addi %237, %247 : vector<16x1xi32>
    %249 = arith.select %246, %248, %237 : vector<16x1xi1>, vector<16x1xi32>
    %c0_i32_93 = arith.constant 0 : i32
    %250 = vector.broadcast %c0_i32_93 : i32 to vector<16x1xi32>
    %251 = arith.cmpi eq, %249, %250 : vector<16x1xi32>
    %252 = vector.extract_strided_slice %232 {offsets = [15, 0], sizes = [1, 32], strides = [1, 1]} : vector<16x32xf32> to vector<1x32xf32>
    %253 = vector.extract_strided_slice %232 {offsets = [0, 0], sizes = [15, 32], strides = [1, 1]} : vector<16x32xf32> to vector<15x32xf32>
    %254 = tpu.concatenate %252, %253 in 0 : vector<1x32xf32>, vector<15x32xf32> -> vector<16x32xf32>
    %cst_94 = arith.constant 0.000000e+00 : f32
    %255 = vector.shape_cast %251 : vector<16x1xi1> to vector<16x1xi1>
    %256 = vector.broadcast %255 : vector<16x1xi1> to vector<16x32xi1>
    %257 = vector.broadcast %cst_94 : f32 to vector<16x32xf32>
    %258 = arith.select %256, %257, %254 : vector<16x32xi1>, vector<16x32xf32>
    %c7_i32_95 = arith.constant 7 : i32
    %259 = vector.broadcast %c7_i32_95 : i32 to vector<16x1xi32>
    %260 = arith.cmpi eq, %249, %259 : vector<16x1xi32>
    %261 = vector.extract_strided_slice %232 {offsets = [1, 0], sizes = [15, 32], strides = [1, 1]} : vector<16x32xf32> to vector<15x32xf32>
    %262 = vector.extract_strided_slice %232 {offsets = [0, 0], sizes = [1, 32], strides = [1, 1]} : vector<16x32xf32> to vector<1x32xf32>
    %263 = tpu.concatenate %261, %262 in 0 : vector<15x32xf32>, vector<1x32xf32> -> vector<16x32xf32>
    %cst_96 = arith.constant 0.000000e+00 : f32
    %264 = vector.shape_cast %260 : vector<16x1xi1> to vector<16x1xi1>
    %265 = vector.broadcast %264 : vector<16x1xi1> to vector<16x32xi1>
    %266 = vector.broadcast %cst_96 : f32 to vector<16x32xf32>
    %267 = arith.select %265, %266, %263 : vector<16x32xi1>, vector<16x32xf32>
    %268 = tpu.concatenate %258, %232, %267 in 1 : vector<16x32xf32>, vector<16x32xf32>, vector<16x32xf32> -> vector<16x96xf32>
    %c0_97 = arith.constant 0 : index
    %c0_98 = arith.constant 0 : index
    %269 = vector.load %arg16[%c0_97, %c0_98] : memref<96x32xf32, #tpu.memory_space<vmem>>, vector<96x32xf32>
    %cst_99 = arith.constant dense<0.000000e+00> : vector<16x32xf32>
    %270 = tpu.matmul %268, %269, %cst_99 {dimension_numbers = #tpu.dot_dimension_numbers<[1], [0], [0], [1], [0, 0, 1, 1], [], []>} : vector<16x96xf32>, vector<96x32xf32>, vector<16x32xf32> -> vector<16x32xf32>
    %cst_100 = arith.constant dense<0.000000e+00> : vector<32xf32>
    %271 = vector.multi_reduction <add>, %270, %cst_100 [0] : vector<16x32xf32> to vector<32xf32>
    %272 = vector.shape_cast %271 : vector<32xf32> to vector<1x32xf32>
    %273 = arith.mulf %270, %270 : vector<16x32xf32>
    %cst_101 = arith.constant dense<0.000000e+00> : vector<32xf32>
    %274 = vector.multi_reduction <add>, %273, %cst_101 [0] : vector<16x32xf32> to vector<32xf32>
    %275 = vector.shape_cast %274 : vector<32xf32> to vector<1x32xf32>
    %276 = tpu.concatenate %272, %275 in 0 : vector<1x32xf32>, vector<1x32xf32> -> vector<2x32xf32>
    %c0_102 = arith.constant 0 : index
    %c0_103 = arith.constant 0 : index
    %277 = vector.load %arg18[%c0_102, %c0_103] : memref<32x32xf32, #tpu.memory_space<vmem>>, vector<32x32xf32>
    %cst_104 = arith.constant dense<0.000000e+00> : vector<2x32xf32>
    %278 = tpu.matmul %276, %277, %cst_104 {dimension_numbers = #tpu.dot_dimension_numbers<[1], [0], [0], [1], [0, 0, 1, 1], [], []>} : vector<2x32xf32>, vector<32x32xf32>, vector<2x32xf32> -> vector<2x32xf32>
    %cst_105 = arith.constant 7.812500e-03 : f32
    %279 = vector.broadcast %cst_105 : f32 to vector<2x32xf32>
    %280 = arith.mulf %278, %279 : vector<2x32xf32>
    %281 = vector.extract_strided_slice %280 {offsets = [0, 0], sizes = [1, 32], strides = [1, 1]} : vector<2x32xf32> to vector<1x32xf32>
    %282 = vector.extract_strided_slice %280 {offsets = [1, 0], sizes = [1, 32], strides = [1, 1]} : vector<2x32xf32> to vector<1x32xf32>
    %283 = arith.mulf %281, %281 : vector<1x32xf32>
    %284 = arith.subf %282, %283 : vector<1x32xf32>
    %cst_106 = arith.constant 0.000000e+00 : f32
    %285 = vector.broadcast %cst_106 : f32 to vector<1x32xf32>
    %286 = arith.maximumf %284, %285 : vector<1x32xf32>
    %c0_107 = arith.constant 0 : index
    %c0_108 = arith.constant 0 : index
    %287 = vector.load %arg17[%c0_107, %c0_108] : memref<2x32xf32, #tpu.memory_space<vmem>>, vector<1x32xf32>
    %cst_109 = arith.constant 9.99999974E-6 : f32
    %288 = vector.broadcast %cst_109 : f32 to vector<1x32xf32>
    %289 = arith.addf %286, %288 : vector<1x32xf32>
    %290 = math.rsqrt %289 : vector<1x32xf32>
    %291 = arith.mulf %287, %290 : vector<1x32xf32>
    %c1_110 = arith.constant 1 : index
    %c0_111 = arith.constant 0 : index
    %292 = vector.load %arg17[%c1_110, %c0_111] : memref<2x32xf32, #tpu.memory_space<vmem>>, vector<1x32xf32>
    %293 = arith.mulf %281, %291 : vector<1x32xf32>
    %294 = arith.subf %292, %293 : vector<1x32xf32>
    %295 = vector.broadcast %291 : vector<1x32xf32> to vector<16x32xf32>
    %296 = arith.mulf %270, %295 : vector<16x32xf32>
    %297 = vector.broadcast %294 : vector<1x32xf32> to vector<16x32xf32>
    %298 = arith.addf %296, %297 : vector<16x32xf32>
    %cst_112 = arith.constant 0.000000e+00 : f32
    %299 = vector.broadcast %cst_112 : f32 to vector<16x32xf32>
    %300 = arith.maximumf %298, %299 : vector<16x32xf32>
    %c0_113 = arith.constant 0 : index
    %c0_114 = arith.constant 0 : index
    %301 = vector.load %arg19[%c0_113, %c0_114] : memref<32x16xf32, #tpu.memory_space<vmem>>, vector<32x16xf32>
    %c0_115 = arith.constant 0 : index
    %c0_116 = arith.constant 0 : index
    %302 = vector.load %arg20[%c0_115, %c0_116] : memref<32x64xf32, #tpu.memory_space<vmem>>, vector<32x64xf32>
    %cst_117 = arith.constant dense<0.000000e+00> : vector<16x64xf32>
    %303 = tpu.matmul %300, %302, %cst_117 {dimension_numbers = #tpu.dot_dimension_numbers<[1], [0], [0], [1], [0, 0, 1, 1], [], []>} : vector<16x32xf32>, vector<32x64xf32>, vector<16x64xf32> -> vector<16x64xf32>
    %cst_118 = arith.constant dense<0.000000e+00> : vector<32x64xf32>
    %304 = tpu.matmul %301, %303, %cst_118 {dimension_numbers = #tpu.dot_dimension_numbers<[1], [0], [0], [1], [0, 0, 1, 1], [], []>} : vector<32x16xf32>, vector<16x64xf32>, vector<32x64xf32> -> vector<32x64xf32>
    %305 = tpu.iota {dimensions = array<i32: 0>} : vector<32x1xi32>
    %c16_i32_119 = arith.constant 16 : i32
    %c0_i32_120 = arith.constant 0 : i32
    %306 = arith.cmpi eq, %c16_i32_119, %c0_i32_120 : i32
    %c1_i32_121 = arith.constant 1 : i32
    %307 = arith.select %306, %c1_i32_121, %c16_i32_119 : i32
    %308 = vector.broadcast %307 : i32 to vector<32x1xi32>
    %309 = arith.remsi %305, %308 : vector<32x1xi32>
    %c0_i32_122 = arith.constant 0 : i32
    %310 = vector.broadcast %c0_i32_122 : i32 to vector<32x1xi32>
    %311 = arith.cmpi ne, %309, %310 : vector<32x1xi32>
    %c0_i32_123 = arith.constant 0 : i32
    %312 = vector.broadcast %c0_i32_123 : i32 to vector<32x1xi32>
    %313 = arith.cmpi slt, %309, %312 : vector<32x1xi32>
    %c0_i32_124 = arith.constant 0 : i32
    %314 = arith.cmpi slt, %307, %c0_i32_124 : i32
    %315 = vector.broadcast %314 : i1 to vector<32x1xi1>
    %316 = vector.broadcast %315 : vector<32x1xi1> to vector<32x1xi1>
    %317 = arith.xori %313, %316 : vector<32x1xi1>
    %318 = arith.andi %317, %311 : vector<32x1xi1>
    %319 = vector.broadcast %307 : i32 to vector<32x1xi32>
    %320 = arith.addi %309, %319 : vector<32x1xi32>
    %321 = arith.select %318, %320, %309 : vector<32x1xi1>, vector<32x1xi32>
    %c0_i32_125 = arith.constant 0 : i32
    %322 = vector.broadcast %c0_i32_125 : i32 to vector<32x1xi32>
    %323 = arith.cmpi eq, %321, %322 : vector<32x1xi32>
    %324 = vector.extract_strided_slice %304 {offsets = [31, 0], sizes = [1, 64], strides = [1, 1]} : vector<32x64xf32> to vector<1x64xf32>
    %325 = vector.extract_strided_slice %304 {offsets = [0, 0], sizes = [31, 64], strides = [1, 1]} : vector<32x64xf32> to vector<31x64xf32>
    %326 = tpu.concatenate %324, %325 in 0 : vector<1x64xf32>, vector<31x64xf32> -> vector<32x64xf32>
    %cst_126 = arith.constant 0.000000e+00 : f32
    %327 = vector.shape_cast %323 : vector<32x1xi1> to vector<32x1xi1>
    %328 = vector.broadcast %327 : vector<32x1xi1> to vector<32x64xi1>
    %329 = vector.broadcast %cst_126 : f32 to vector<32x64xf32>
    %330 = arith.select %328, %329, %326 : vector<32x64xi1>, vector<32x64xf32>
    %c15_i32_127 = arith.constant 15 : i32
    %331 = vector.broadcast %c15_i32_127 : i32 to vector<32x1xi32>
    %332 = arith.cmpi eq, %321, %331 : vector<32x1xi32>
    %333 = vector.extract_strided_slice %304 {offsets = [1, 0], sizes = [31, 64], strides = [1, 1]} : vector<32x64xf32> to vector<31x64xf32>
    %334 = vector.extract_strided_slice %304 {offsets = [0, 0], sizes = [1, 64], strides = [1, 1]} : vector<32x64xf32> to vector<1x64xf32>
    %335 = tpu.concatenate %333, %334 in 0 : vector<31x64xf32>, vector<1x64xf32> -> vector<32x64xf32>
    %cst_128 = arith.constant 0.000000e+00 : f32
    %336 = vector.shape_cast %332 : vector<32x1xi1> to vector<32x1xi1>
    %337 = vector.broadcast %336 : vector<32x1xi1> to vector<32x64xi1>
    %338 = vector.broadcast %cst_128 : f32 to vector<32x64xf32>
    %339 = arith.select %337, %338, %335 : vector<32x64xi1>, vector<32x64xf32>
    %340 = tpu.concatenate %330, %304, %339 in 1 : vector<32x64xf32>, vector<32x64xf32>, vector<32x64xf32> -> vector<32x192xf32>
    %c0_129 = arith.constant 0 : index
    %c0_130 = arith.constant 0 : index
    %341 = vector.load %arg21[%c0_129, %c0_130] : memref<192x64xf32, #tpu.memory_space<vmem>>, vector<192x64xf32>
    %cst_131 = arith.constant dense<0.000000e+00> : vector<32x64xf32>
    %342 = tpu.matmul %340, %341, %cst_131 {dimension_numbers = #tpu.dot_dimension_numbers<[1], [0], [0], [1], [0, 0, 1, 1], [], []>} : vector<32x192xf32>, vector<192x64xf32>, vector<32x64xf32> -> vector<32x64xf32>
    %cst_132 = arith.constant dense<0.000000e+00> : vector<64xf32>
    %343 = vector.multi_reduction <add>, %342, %cst_132 [0] : vector<32x64xf32> to vector<64xf32>
    %344 = vector.shape_cast %343 : vector<64xf32> to vector<1x64xf32>
    %345 = arith.mulf %342, %342 : vector<32x64xf32>
    %cst_133 = arith.constant dense<0.000000e+00> : vector<64xf32>
    %346 = vector.multi_reduction <add>, %345, %cst_133 [0] : vector<32x64xf32> to vector<64xf32>
    %347 = vector.shape_cast %346 : vector<64xf32> to vector<1x64xf32>
    %348 = tpu.concatenate %344, %347 in 0 : vector<1x64xf32>, vector<1x64xf32> -> vector<2x64xf32>
    %c0_134 = arith.constant 0 : index
    %c0_135 = arith.constant 0 : index
    %349 = vector.load %arg23[%c0_134, %c0_135] : memref<64x64xf32, #tpu.memory_space<vmem>>, vector<64x64xf32>
    %cst_136 = arith.constant dense<0.000000e+00> : vector<2x64xf32>
    %350 = tpu.matmul %348, %349, %cst_136 {dimension_numbers = #tpu.dot_dimension_numbers<[1], [0], [0], [1], [0, 0, 1, 1], [], []>} : vector<2x64xf32>, vector<64x64xf32>, vector<2x64xf32> -> vector<2x64xf32>
    %cst_137 = arith.constant 0.001953125 : f32
    %351 = vector.broadcast %cst_137 : f32 to vector<2x64xf32>
    %352 = arith.mulf %350, %351 : vector<2x64xf32>
    %353 = vector.extract_strided_slice %352 {offsets = [0, 0], sizes = [1, 64], strides = [1, 1]} : vector<2x64xf32> to vector<1x64xf32>
    %354 = vector.extract_strided_slice %352 {offsets = [1, 0], sizes = [1, 64], strides = [1, 1]} : vector<2x64xf32> to vector<1x64xf32>
    %355 = arith.mulf %353, %353 : vector<1x64xf32>
    %356 = arith.subf %354, %355 : vector<1x64xf32>
    %cst_138 = arith.constant 0.000000e+00 : f32
    %357 = vector.broadcast %cst_138 : f32 to vector<1x64xf32>
    %358 = arith.maximumf %356, %357 : vector<1x64xf32>
    %c0_139 = arith.constant 0 : index
    %c0_140 = arith.constant 0 : index
    %359 = vector.load %arg22[%c0_139, %c0_140] : memref<2x64xf32, #tpu.memory_space<vmem>>, vector<1x64xf32>
    %cst_141 = arith.constant 9.99999974E-6 : f32
    %360 = vector.broadcast %cst_141 : f32 to vector<1x64xf32>
    %361 = arith.addf %358, %360 : vector<1x64xf32>
    %362 = math.rsqrt %361 : vector<1x64xf32>
    %363 = arith.mulf %359, %362 : vector<1x64xf32>
    %c1_142 = arith.constant 1 : index
    %c0_143 = arith.constant 0 : index
    %364 = vector.load %arg22[%c1_142, %c0_143] : memref<2x64xf32, #tpu.memory_space<vmem>>, vector<1x64xf32>
    %365 = arith.mulf %353, %363 : vector<1x64xf32>
    %366 = arith.subf %364, %365 : vector<1x64xf32>
    %367 = vector.broadcast %363 : vector<1x64xf32> to vector<32x64xf32>
    %368 = arith.mulf %342, %367 : vector<32x64xf32>
    %369 = vector.broadcast %366 : vector<1x64xf32> to vector<32x64xf32>
    %370 = arith.addf %368, %369 : vector<32x64xf32>
    %cst_144 = arith.constant 0.000000e+00 : f32
    %371 = vector.broadcast %cst_144 : f32 to vector<32x64xf32>
    %372 = arith.maximumf %370, %371 : vector<32x64xf32>
    %c0_145 = arith.constant 0 : index
    %c0_146 = arith.constant 0 : index
    %373 = vector.load %arg24[%c0_145, %c0_146] : memref<64x32xf32, #tpu.memory_space<vmem>>, vector<64x32xf32>
    %c0_147 = arith.constant 0 : index
    %c0_148 = arith.constant 0 : index
    %374 = vector.load %arg25[%c0_147, %c0_148] : memref<64x128xf32, #tpu.memory_space<vmem>>, vector<64x128xf32>
    %cst_149 = arith.constant dense<0.000000e+00> : vector<32x128xf32>
    %375 = tpu.matmul %372, %374, %cst_149 {dimension_numbers = #tpu.dot_dimension_numbers<[1], [0], [0], [1], [0, 0, 1, 1], [], []>} : vector<32x64xf32>, vector<64x128xf32>, vector<32x128xf32> -> vector<32x128xf32>
    %cst_150 = arith.constant dense<0.000000e+00> : vector<64x128xf32>
    %376 = tpu.matmul %373, %375, %cst_150 {dimension_numbers = #tpu.dot_dimension_numbers<[1], [0], [0], [1], [0, 0, 1, 1], [], []>} : vector<64x32xf32>, vector<32x128xf32>, vector<64x128xf32> -> vector<64x128xf32>
    %377 = tpu.iota {dimensions = array<i32: 0>} : vector<64x1xi32>
    %c32_i32 = arith.constant 32 : i32
    %c0_i32_151 = arith.constant 0 : i32
    %378 = arith.cmpi eq, %c32_i32, %c0_i32_151 : i32
    %c1_i32_152 = arith.constant 1 : i32
    %379 = arith.select %378, %c1_i32_152, %c32_i32 : i32
    %380 = vector.broadcast %379 : i32 to vector<64x1xi32>
    %381 = arith.remsi %377, %380 : vector<64x1xi32>
    %c0_i32_153 = arith.constant 0 : i32
    %382 = vector.broadcast %c0_i32_153 : i32 to vector<64x1xi32>
    %383 = arith.cmpi ne, %381, %382 : vector<64x1xi32>
    %c0_i32_154 = arith.constant 0 : i32
    %384 = vector.broadcast %c0_i32_154 : i32 to vector<64x1xi32>
    %385 = arith.cmpi slt, %381, %384 : vector<64x1xi32>
    %c0_i32_155 = arith.constant 0 : i32
    %386 = arith.cmpi slt, %379, %c0_i32_155 : i32
    %387 = vector.broadcast %386 : i1 to vector<64x1xi1>
    %388 = vector.broadcast %387 : vector<64x1xi1> to vector<64x1xi1>
    %389 = arith.xori %385, %388 : vector<64x1xi1>
    %390 = arith.andi %389, %383 : vector<64x1xi1>
    %391 = vector.broadcast %379 : i32 to vector<64x1xi32>
    %392 = arith.addi %381, %391 : vector<64x1xi32>
    %393 = arith.select %390, %392, %381 : vector<64x1xi1>, vector<64x1xi32>
    %c0_i32_156 = arith.constant 0 : i32
    %394 = vector.broadcast %c0_i32_156 : i32 to vector<64x1xi32>
    %395 = arith.cmpi eq, %393, %394 : vector<64x1xi32>
    %396 = vector.extract_strided_slice %376 {offsets = [63, 0], sizes = [1, 128], strides = [1, 1]} : vector<64x128xf32> to vector<1x128xf32>
    %397 = vector.extract_strided_slice %376 {offsets = [0, 0], sizes = [63, 128], strides = [1, 1]} : vector<64x128xf32> to vector<63x128xf32>
    %398 = tpu.concatenate %396, %397 in 0 : vector<1x128xf32>, vector<63x128xf32> -> vector<64x128xf32>
    %cst_157 = arith.constant 0.000000e+00 : f32
    %399 = vector.shape_cast %395 : vector<64x1xi1> to vector<64x1xi1>
    %400 = vector.broadcast %399 : vector<64x1xi1> to vector<64x128xi1>
    %401 = vector.broadcast %cst_157 : f32 to vector<64x128xf32>
    %402 = arith.select %400, %401, %398 : vector<64x128xi1>, vector<64x128xf32>
    %c31_i32 = arith.constant 31 : i32
    %403 = vector.broadcast %c31_i32 : i32 to vector<64x1xi32>
    %404 = arith.cmpi eq, %393, %403 : vector<64x1xi32>
    %405 = vector.extract_strided_slice %376 {offsets = [1, 0], sizes = [63, 128], strides = [1, 1]} : vector<64x128xf32> to vector<63x128xf32>
    %406 = vector.extract_strided_slice %376 {offsets = [0, 0], sizes = [1, 128], strides = [1, 1]} : vector<64x128xf32> to vector<1x128xf32>
    %407 = tpu.concatenate %405, %406 in 0 : vector<63x128xf32>, vector<1x128xf32> -> vector<64x128xf32>
    %cst_158 = arith.constant 0.000000e+00 : f32
    %408 = vector.shape_cast %404 : vector<64x1xi1> to vector<64x1xi1>
    %409 = vector.broadcast %408 : vector<64x1xi1> to vector<64x128xi1>
    %410 = vector.broadcast %cst_158 : f32 to vector<64x128xf32>
    %411 = arith.select %409, %410, %407 : vector<64x128xi1>, vector<64x128xf32>
    %412 = tpu.concatenate %402, %376, %411 in 1 : vector<64x128xf32>, vector<64x128xf32>, vector<64x128xf32> -> vector<64x384xf32>
    %c0_159 = arith.constant 0 : index
    %c0_160 = arith.constant 0 : index
    %413 = vector.load %arg26[%c0_159, %c0_160] : memref<384x32xf32, #tpu.memory_space<vmem>>, vector<384x32xf32>
    %cst_161 = arith.constant dense<0.000000e+00> : vector<64x32xf32>
    %414 = tpu.matmul %412, %413, %cst_161 {dimension_numbers = #tpu.dot_dimension_numbers<[1], [0], [0], [1], [0, 0, 1, 1], [], []>} : vector<64x384xf32>, vector<384x32xf32>, vector<64x32xf32> -> vector<64x32xf32>
    %cst_162 = arith.constant dense<0.000000e+00> : vector<32xf32>
    %415 = vector.multi_reduction <add>, %414, %cst_162 [0] : vector<64x32xf32> to vector<32xf32>
    %416 = vector.shape_cast %415 : vector<32xf32> to vector<1x32xf32>
    %417 = arith.mulf %414, %414 : vector<64x32xf32>
    %cst_163 = arith.constant dense<0.000000e+00> : vector<32xf32>
    %418 = vector.multi_reduction <add>, %417, %cst_163 [0] : vector<64x32xf32> to vector<32xf32>
    %419 = vector.shape_cast %418 : vector<32xf32> to vector<1x32xf32>
    %420 = tpu.concatenate %416, %419 in 0 : vector<1x32xf32>, vector<1x32xf32> -> vector<2x32xf32>
    %c0_164 = arith.constant 0 : index
    %c0_165 = arith.constant 0 : index
    %421 = vector.load %arg28[%c0_164, %c0_165] : memref<32x32xf32, #tpu.memory_space<vmem>>, vector<32x32xf32>
    %cst_166 = arith.constant dense<0.000000e+00> : vector<2x32xf32>
    %422 = tpu.matmul %420, %421, %cst_166 {dimension_numbers = #tpu.dot_dimension_numbers<[1], [0], [0], [1], [0, 0, 1, 1], [], []>} : vector<2x32xf32>, vector<32x32xf32>, vector<2x32xf32> -> vector<2x32xf32>
    %cst_167 = arith.constant 4.8828125E-4 : f32
    %423 = vector.broadcast %cst_167 : f32 to vector<2x32xf32>
    %424 = arith.mulf %422, %423 : vector<2x32xf32>
    %425 = vector.extract_strided_slice %424 {offsets = [0, 0], sizes = [1, 32], strides = [1, 1]} : vector<2x32xf32> to vector<1x32xf32>
    %426 = vector.extract_strided_slice %424 {offsets = [1, 0], sizes = [1, 32], strides = [1, 1]} : vector<2x32xf32> to vector<1x32xf32>
    %427 = arith.mulf %425, %425 : vector<1x32xf32>
    %428 = arith.subf %426, %427 : vector<1x32xf32>
    %cst_168 = arith.constant 0.000000e+00 : f32
    %429 = vector.broadcast %cst_168 : f32 to vector<1x32xf32>
    %430 = arith.maximumf %428, %429 : vector<1x32xf32>
    %c0_169 = arith.constant 0 : index
    %c0_170 = arith.constant 0 : index
    %431 = vector.load %arg27[%c0_169, %c0_170] : memref<2x32xf32, #tpu.memory_space<vmem>>, vector<1x32xf32>
    %cst_171 = arith.constant 9.99999974E-6 : f32
    %432 = vector.broadcast %cst_171 : f32 to vector<1x32xf32>
    %433 = arith.addf %430, %432 : vector<1x32xf32>
    %434 = math.rsqrt %433 : vector<1x32xf32>
    %435 = arith.mulf %431, %434 : vector<1x32xf32>
    %c1_172 = arith.constant 1 : index
    %c0_173 = arith.constant 0 : index
    %436 = vector.load %arg27[%c1_172, %c0_173] : memref<2x32xf32, #tpu.memory_space<vmem>>, vector<1x32xf32>
    %437 = arith.mulf %425, %435 : vector<1x32xf32>
    %438 = arith.subf %436, %437 : vector<1x32xf32>
    %439 = vector.broadcast %435 : vector<1x32xf32> to vector<64x32xf32>
    %440 = arith.mulf %414, %439 : vector<64x32xf32>
    %441 = vector.broadcast %438 : vector<1x32xf32> to vector<64x32xf32>
    %442 = arith.addf %440, %441 : vector<64x32xf32>
    %cst_174 = arith.constant 0.000000e+00 : f32
    %443 = vector.broadcast %cst_174 : f32 to vector<64x32xf32>
    %444 = arith.maximumf %442, %443 : vector<64x32xf32>
    %445 = vector.extract_strided_slice %444 {offsets = [1, 0], sizes = [63, 32], strides = [1, 1]} : vector<64x32xf32> to vector<63x32xf32>
    %446 = vector.extract_strided_slice %444 {offsets = [0, 0], sizes = [1, 32], strides = [1, 1]} : vector<64x32xf32> to vector<1x32xf32>
    %447 = tpu.concatenate %445, %446 in 0 : vector<63x32xf32>, vector<1x32xf32> -> vector<64x32xf32>
    %448 = arith.maximumf %444, %447 : vector<64x32xf32>
    %c0_175 = arith.constant 0 : index
    %c0_176 = arith.constant 0 : index
    %449 = vector.load %arg29[%c0_175, %c0_176] : memref<32x64xf32, #tpu.memory_space<vmem>>, vector<32x64xf32>
    %cst_177 = arith.constant dense<0.000000e+00> : vector<32x32xf32>
    %450 = tpu.matmul %449, %448, %cst_177 {dimension_numbers = #tpu.dot_dimension_numbers<[1], [0], [0], [1], [0, 0, 1, 1], [], []>} : vector<32x64xf32>, vector<64x32xf32>, vector<32x32xf32> -> vector<32x32xf32>
    %451 = vector.extract_strided_slice %450 {offsets = [0, 1], sizes = [32, 31], strides = [1, 1]} : vector<32x32xf32> to vector<32x31xf32>
    %452 = vector.extract_strided_slice %450 {offsets = [0, 0], sizes = [32, 1], strides = [1, 1]} : vector<32x32xf32> to vector<32x1xf32>
    %453 = tpu.concatenate %451, %452 in 1 : vector<32x31xf32>, vector<32x1xf32> -> vector<32x32xf32>
    %454 = arith.maximumf %450, %453 : vector<32x32xf32>
    %c0_178 = arith.constant 0 : index
    %c0_179 = arith.constant 0 : index
    %455 = vector.load %arg30[%c0_178, %c0_179] : memref<32x16xf32, #tpu.memory_space<vmem>>, vector<32x16xf32>
    %cst_180 = arith.constant dense<0.000000e+00> : vector<32x16xf32>
    %456 = tpu.matmul %454, %455, %cst_180 {dimension_numbers = #tpu.dot_dimension_numbers<[1], [0], [0], [1], [0, 0, 1, 1], [], []>} : vector<32x32xf32>, vector<32x16xf32>, vector<32x16xf32> -> vector<32x16xf32>
    %c0_181 = arith.constant 0 : index
    %c0_182 = arith.constant 0 : index
    %457 = vector.load %arg31[%c0_181, %c0_182] : memref<32x16xf32, #tpu.memory_space<vmem>>, vector<32x16xf32>
    tpu.vector_store %arg31[%c0_181, %c0_182], %456 {strides = array<i32>} : memref<32x16xf32, #tpu.memory_space<vmem>>, vector<32x16xf32>,
    return
  }
}

</mosaic_0001>

<bundles_post_ra>
// kernel: net_forward.1
= control target key start
LH: loop header
LB: loop body
LE: loop exit
PB: predicated region body
PF: predicated region fallthrough
CT: control target
= control target key end

     0   :  { %s2525_s6 = smov 1   ;;  %s2526_s10 = smov 2   ;;  %s3368_s0 = inlined_call_operand.smem [shape: u32[32], index: -1, kind: input, shape index: {}] }
   0x1   :  { %s2573_s5 = sld [smem:[%s3368_s0]]   ;;  %s2527_s14 = smov 3  }
   0x2   :  { %s2578_s9 = sld [smem:[%s3368_s0 + %s2525_s6]]   ;;  %s2528_s18 = smov 4  }
   0x3   :  { %s2583_s13 = sld [smem:[%s3368_s0 + %s2526_s10]]   ;;  %s2529_s22 = smov 5  }
   0x4   :  { %s2588_s17 = sld [smem:[%s3368_s0 + %s2527_s14]]   ;;  %s2530_s26 = smov 6  }
   0x5   :  { %s2593_s21 = sld [smem:[%s3368_s0 + %s2528_s18]]   ;;  %s2531_s30 = smov 7  }
   0x6   :  { %s2598_s25 = sld [smem:[%s3368_s0 + %s2529_s22]]   ;;  %s2532_s4 = smov 8  }
   0x7   :  { %s2603_s29 = sld [smem:[%s3368_s0 + %s2530_s26]]   ;;  %s2533_s10 = smov 9  }
   0x8   :  { %s2608_s3 = sld [smem:[%s3368_s0 + %s2531_s30]]   ;;  %s2534_s15 = smov 10  }
   0x9   :  { %s2613_s8 = sld [smem:[%s3368_s0 + %s2532_s4]]   ;;  %s2535_s20 = smov 11  }
   0xa   :  { %s2618_s14 = sld [smem:[%s3368_s0 + %s2533_s10]]   ;;  %s2536_s26 = smov 12  }
   0xb   :  { %s2623_s19 = sld [smem:[%s3368_s0 + %s2534_s15]]   ;;  %s2537_s1 = smov 13  }
   0xc   :  { %s2628_s24 = sld [smem:[%s3368_s0 + %s2535_s20]]   ;;  %s2538_s7 = smov 14  }
   0xd   :  { %s2633_s30 = sld [smem:[%s3368_s0 + %s2536_s26]]   ;;  %s2539_s15 = smov 15  }
   0xe   :  { %s2638_s6 = sld [smem:[%s3368_s0 + %s2537_s1]]   ;;  %s2540_s22 = smov 16  }
   0xf   :  { %s2643_s12 = sld [smem:[%s3368_s0 + %s2538_s7]]   ;;  %s2541_s28 = smov 17  }
  0x10   :  { %s2648_s20 = sld [smem:[%s3368_s0 + %s2539_s15]]   ;;  %s2542_s7 = smov 18  }
  0x11   :  { %s2653_s27 = sld [smem:[%s3368_s0 + %s2540_s22]]   ;;  %s2543_s15 = smov 19  }
  0x12   :  { %s2658_s4 = sld [smem:[%s3368_s0 + %s2541_s28]]   ;;  %s2544_s22 = smov 20  }
  0x13   :  { %3385 = sst [smem:[#allocation5_spill]] %s2633_s30  ;;  %s2545_s28 = smov 21  }
  0x14   :  { %s2668_s30 = sld [smem:[%s3368_s0 + %s2543_s15]]   ;;  %s2547_s15 = smov 23  }
  0x15   :  { %3386 = sst [smem:[#allocation6_spill]] %s2643_s12 }
  0x16   :  { %s2663_s12 = sld [smem:[%s3368_s0 + %s2542_s7]]   ;;  %s2546_s7 = smov 22  }
  0x17   :  { %3387 = sst [smem:[#allocation7_spill]] %s2653_s27 }
  0x18   :  { %3388 = sst [smem:[#allocation8_spill]] %s2658_s4 }
  0x19   :  { %s2673_s27 = sld [smem:[%s3368_s0 + %s2544_s22]]   ;;  %s2548_s22 = smov 24  }
  0x1a   :  { %3390 = sst [smem:[#allocation10_spill]] %s2668_s30 }
  0x1b   :  { %s2678_s4 = sld [smem:[%s3368_s0 + %s2545_s28]]   ;;  %s2549_s28 = smov 25  }
  0x1c   :  { %3389 = sst [smem:[#allocation9_spill]] %s2663_s12 }
  0x1d   :  { %s2683_s12 = sld [smem:[%s3368_s0 + %s2546_s7]]   ;;  %s2550_s7 = smov 26  }
  0x1e   :  { %s2688_s30 = sld [smem:[%s3368_s0 + %s2547_s15]]   ;;  %s2551_s15 = smov 27  }
  0x1f   :  { %3391 = sst [smem:[#allocation11_spill]] %s2673_s27 }
  0x20   :  { %s2693_s27 = sld [smem:[%s3368_s0 + %s2548_s22]]   ;;  %s2552_s22 = smov 28  }
  0x21   :  { %3392 = sst [smem:[#allocation12_spill]] %s2678_s4 }
  0x22   :  { %s2698_s4 = sld [smem:[%s3368_s0 + %s2549_s28]]   ;;  %s2553_s28 = smov 29  }
  0x23   :  { %3393 = sst [smem:[#allocation13_spill]] %s2683_s12 }
  0x24   :  { %3394 = sst [smem:[#allocation14_spill]] %s2688_s30 }
  0x25   :  { %s2703_s12 = sld [smem:[%s3368_s0 + %s2550_s7]]   ;;  %s2554_s7 = smov 30  }
  0x26   :  { %3395 = sst [smem:[#allocation15_spill]] %s2693_s27 }
  0x27   :  { %s2708_s30 = sld [smem:[%s3368_s0 + %s2551_s15]]   ;;  %s2555_s15 = smov 31  }
  0x28   :  { %3396 = sst [smem:[#allocation16_spill]] %s2698_s4 }
  0x29   :  { %s2713_s27 = sld [smem:[%s3368_s0 + %s2552_s22]]  }
  0x2a   :  { %s2718_s4 = sld [smem:[%s3368_s0 + %s2553_s28]]  }
  0x2b   :  { %3397 = sst [smem:[#allocation17_spill]] %s2703_s12 }
  0x2c   :  { %s2723_s12 = sld [smem:[%s3368_s0 + %s2554_s7]]  }
  0x2d   :  { %3398 = sst [smem:[#allocation18_spill]] %s2708_s30 }
  0x2e   :  { %s2728_s30 = sld [smem:[%s3368_s0 + %s2555_s15]]  }
  0x2f   :  { %v131_v0 = vld [vmem:[%s2573_s5] sm:$0xff]  ;;  %v2732_v1 = vld [vmem:[%s2573_s5 + $0x8] sm:$0xff]  ;;  %v2735_v2 = vld [vmem:[%s2573_s5 + $0x10] sm:$0xff]  ;;  %v135_v3 = vlaneseq  ;;  %s2556_s22 = smov 16  }
  0x30   :  { %252 = vrot.lane.b32.xlu0 %v131_v0, %s2556_s22  ;;  %v227_v4 = vrot.slane %v131_v0, 1  ;;  %254 = vrot.lane.b32.xlu1 %v2732_v1, %s2556_s22  ;;  %v295_v5 = vld [vmem:[%s2578_s9 + $0x28] sm:$0xff]  ;;  %v228_v6 = vrot.slane %v2732_v1, 1  ;;  %v230_v8 = vrot.slane %v2735_v2, 1  ;;  %v2744_v9 = vld [vmem:[%s2573_s5 + $0x18] sm:$0xff] }
  0x31   :  { %v2740_v7 = vshrl.u32 %v135_v3, 7  ;;  %256 = vrot.lane.b32.xlu2 %v2735_v2, %s2556_s22  ;;  %319 = vmatpush.msra.mxu0 %v295_v5 }
  0x32   :  { %68 = vsyncpa [#allocation3], 0  ;;  %vm226_vm0 = vcmask 1046528   ;;  %v232_v12 = vrot.slane %v2744_v9, 1  ;;  %s2557_s0 = smov 32   ;;  %v199_v23 = vrot.slane %v131_v0, 7 }
  0x33   :  { %v2748_v10 = vadd.s32 8, %v2740_v7  ;;  %v2751_v11 = vadd.s32 24, %v2740_v7  ;;  %v229_v13 = vsel %vm226_vm0, %v227_v4, %v228_v6  ;;  %v231_v15 = vsel %vm226_vm0, %v228_v6, %v230_v8  ;;  %v294_v27 = vld [vmem:[%s2578_s9 + $0x20] sm:$0xff]  ;;  %v293_v29 = vld [vmem:[%s2578_s9 + $0x18] sm:$0xff]  ;;  %v292_v30 = vld [vmem:[%s2578_s9 + $0x10] sm:$0xff]  ;;  %s2558_s5 = smov 63  }
  0x34   :  { %v233_v16 = vsel %vm226_vm0, %v230_v8, %v232_v12  ;;  %v239_v21 = vsel %vm226_vm0, %v232_v12, %v227_v4  ;;  %v193_v24 = vrot.slane %v2744_v9, 7  ;;  %vm3383_vm3 = vcmask 1040384   ;;  %320 = vmatpush.msra.mxu0 %v294_v27  ;;  %v291_v31 = vld [vmem:[%s2578_s9 + $0x8] sm:$0xff]  ;;  %v290_v32 = vld [vmem:[%s2578_s9] sm:$0xff]  ;;  %v377_v59 = vld [vmem:[%s2588_s17 + $0x38] sm:$0xff]  ;;  %s2559_s9 = smov 127  }
  0x35   :  { %v151_v14 = vand.u32 15, %v2748_v10  ;;  %v165_v18 = vand.u32 15, %v2751_v11  ;;  %v200_v25 = vrot.slane %v2732_v1, 7  ;;  %v144_v33 = vand.u32 15, %v2740_v7  ;;  %389 = vmatpush.msra.mxu3 %v377_v59  ;;  %v376_v60 = vld [vmem:[%s2588_s17 + $0x30] sm:$0xff]  ;;  %v375_v61 = vld [vmem:[%s2588_s17 + $0x28] sm:$0xff] }
  0x36   :  { %v209_v26 = vsel %vm3383_vm3, %v193_v24, %v199_v23  ;;  %321 = vmatpush.msra.mxu0 %v293_v29  ;;  %vm280_vm5 = vcmask 130048   ;;  %vm285_vm6 = vcmask 261120   ;;  %vm296_vm7 = vcmask 392192   ;;  %v374_v63 = vld [vmem:[%s2588_s17 + $0x20] sm:$0xff]  ;;  %v373_v0 = vld [vmem:[%s2588_s17 + $0x18] sm:$0xff]  ;;  %v372_v1 = vld [vmem:[%s2588_s17 + $0x10] sm:$0xff] }
  0x37   :  { %vm2758_vm1 = vcmp.eq.s32.totalorder %v151_v14, 15  ;;  %vm2768_vm2 = vcmp.eq.s32.totalorder %v165_v18, 15  ;;  %v201_v28 = vsel %vm3383_vm3, %v199_v23, %v200_v25  ;;  %vm2787_vm4 = vcmp.eq.s32.totalorder %v144_v33, 0  ;;  %390 = vmatpush.msra.mxu3 %v376_v60  ;;  %v370_v3 = vld [vmem:[%s2588_s17] sm:$0xff]  ;;  %s3438_s23 = sld [smem:[#allocation15_spill]]  ;;  %s2561_s28 = smov 31  }
  0x38   :  { %268 = vrot.lane.b32.xlu0 %v229_v13, %s2557_s0  ;;  %v249_v19 = vsel %vm2758_vm1, 0.0, %v231_v15  ;;  %v251_v22 = vsel %vm2768_vm2, 0.0, %v239_v21  ;;  %322 = vmatpush.msra.mxu0 %v292_v30  ;;  %v218_v37 = vsel %vm2787_vm4, 0.0, %v209_v26  ;;  %v138_v40 = vadd.s32 16, %v2740_v7  ;;  %s3439_s26 = sld [smem:[#allocation17_spill]]  ;;  %s2338_s1 = sshll.u32 %s2728_s30, 4  ;;  %s2339_s1 = int_to_ptr.hbm [resolvable:$true] %s2338_s1 }
  0x39   :  { %270 = vrot.lane.b32.xlu1 %v249_v19, %s2557_s0  ;;  %272 = vrot.lane.b32.xlu2 %v233_v16, %s2557_s0  ;;  %v202_v44 = vrot.slane %v2735_v2, 7  ;;  %v371_v2 = vld [vmem:[%s2588_s17 + $0x8] sm:$0xff]  ;;  %vm338_vm9 = vcmask 523264   ;;  %vm507_vm13 = vcmask 515072   ;;  %s3417_s17 = sld [smem:[#allocation5_spill]]  ;;  %s2511_s2 = sshra.s32 %s2339_s1, 4  ;;  %s2512_s2 = int_to_ptr.hbm [resolvable:$true] %s2511_s2 }
  0x3a   :  { %323 = vmatpush.msra.mxu0 %v291_v31  ;;  %v158_v42 = vand.u32 15, %v138_v40  ;;  %391 = vmatpush.msra.mxu3 %v375_v61  ;;  %s2513_s7 = scalar_lea.hbm %s2512_s2, 32  ;;  %s2515_s10 = scalar_lea.hbm %s2728_s30, 32 }
  0x3b   :  { %v203_v48 = vsel %vm3383_vm3, %v200_v25, %v202_v44  ;;  %v204_v54 = vsel %vm3383_vm3, %v202_v44, %v193_v24  ;;  %p2514_p0 = scmp.ne.s32.totalorder %s2512_s2, %s2513_s7  ;;  %p2516_p1 = scmp.lt.s32.totalorder %s2512_s2, %s2728_s30 }
  0x3c   :  { %324 = vmatpush.msra.mxu0 %v290_v32  ;;  %vm2799_vm8 = vcmp.eq.s32.totalorder %v158_v42, 0  ;;  %392 = vmatpush.msra.mxu3 %v374_v63  ;;  %v424_v63 = vld [vmem:[%s2583_s13 + $0x1] sm:$0x1]  ;;  %p2517_p2 = scmp.lt.s32.totalorder %s2515_s10, %s2513_s7 }
  0x3d   :  { %v220_v50 = vsel %vm2799_vm8, 0.0, %v203_v48 }
  0x3e   :  { %393 = vmatpush.msra.mxu3 %v373_v0  ;;  %p2518_p3 = por %p2517_p2, %p2516_p1 }
  0x40   :  { %258 = vrot.lane.b32.xlu0 %v2744_v9, %s2556_s22  ;;  %394 = vmatpush.msra.mxu3 %v372_v1  ;;  %p2519_p4 = pnand %p2518_p3, %p2514_p0 }
  0x41   :  { %274 = vrot.lane.b32.xlu1 %v251_v22, %s2557_s0 }
  0x42   :  { %395 = vmatpush.msra.mxu3 %v371_v2 }
  0x44   :  { %396 = vmatpush.msra.mxu3 %v370_v3 }
  0x8b   :  { %v257_v43 = vpop.permute.xlu2 %256 }
  0x8c   :  { %v283_v51 = vsel %vm280_vm5, %v220_v50, %v257_v43 }
  0x93   :  { %v273_v52 = vpop.permute.xlu2 %272 }
  0x94   :  { %v288_v53 = vsel %vm285_vm6, %v283_v51, %v273_v52 }
  0xa2   :  { %v253_v34 = vpop.permute.xlu0 %252  ;;  %v255_v36 = vpop.permute.xlu1 %254 }
  0xa3   :  { %v281_v38 = vsel %vm280_vm5, %v218_v37, %v253_v34  ;;  %v282_v45 = vsel %vm280_vm5, %v201_v28, %v255_v36 }
  0xaa   :  { %v269_v39 = vpop.permute.xlu0 %268 }
  0xab   :  { %v286_v41 = vsel %vm285_vm6, %v281_v38, %v269_v39  ;;  %v271_v46 = vpop.permute.xlu1 %270 }
  0xac   :  { %2381 = vmatmul.msk.f32.vlgmr.msra.gmra.mxu0 %vm296_vm7, %v286_v41  ;;  %v287_v49 = vsel %vm285_vm6, %v282_v45, %v271_v46 }
  0xb2   :  { %v259_v55 = vpop.permute.xlu0 %258 }
  0xb3   :  { %v284_v56 = vsel %vm280_vm5, %v204_v54, %v259_v55  ;;  %v275_v57 = vpop.permute.xlu1 %274 }
  0xb4   :  { %2382 = vmatmul.msk.f32.gmra.mxu0 %vm296_vm7, %v287_v49  ;;  %v289_v58 = vsel %vm285_vm6, %v284_v56, %v275_v57 }
  0xbc   :  { %2383 = vmatmul.msk.f32.gmra.mxu0 %vm296_vm7, %v288_v53 }
  0xc4   :  { %2384 = vmatmul.msk.f32.gmra.mxu0 %vm296_vm7, %v289_v58  ;;  %v408_v58 = vld [vmem:[%s2583_s13] sm:$0x1]  ;;  %s2560_s13 = smov 64  }
 0x129   :  { %v2818_v62 = vpop.f32.mrf.mxu0 }
 0x12a   :  { %v352_v8 = vmul.f32 %v2818_v62, %v2818_v62  ;;  %v339_v13 = vsel %vm338_vm9, %v2818_v62, 0.0 }
 0x12c   :  { %v356_v18 = vsel %vm338_vm9, %v352_v8, 0.0 }
 0x131   :  { %v2825_v4 = vpop.f32.mrf.mxu0 }
 0x132   :  { %v353_v6 = vmul.f32 %v2825_v4, %v2825_v4  ;;  %v340_v9 = vsel %vm338_vm9, %v2825_v4, 0.0 }
 0x133   :  { %v341_v16 = vadd.f32 %v340_v9, %v339_v13 }
 0x134   :  { %v357_v14 = vsel %vm338_vm9, %v353_v6, 0.0 }
 0x135   :  { %v358_v21 = vadd.f32 %v357_v14, %v356_v18 }
 0x139   :  { %v2827_v5 = vpop.f32.mrf.mxu0 }
 0x13a   :  { %v354_v12 = vmul.f32 %v2827_v5, %v2827_v5  ;;  %v342_v15 = vsel %vm338_vm9, %v2827_v5, 0.0 }
 0x13b   :  { %v343_v22 = vadd.f32 %v342_v15, %v341_v16 }
 0x13c   :  { %v359_v19 = vsel %vm338_vm9, %v354_v12, 0.0 }
 0x13d   :  { %v360_v26 = vadd.f32 %v359_v19, %v358_v21 }
 0x141   :  { %v335_v23 = vpop.f32.mrf.mxu0 }
 0x142   :  { %v344_v24 = vsel %vm338_vm9, %v335_v23, 0.0  ;;  %v355_v25 = vmul.f32 %v335_v23, %v335_v23 }
 0x143   :  { %v345_v27 = vadd.f32 %v344_v24, %v343_v22 }
 0x144   :  { %v361_v28 = vsel %vm338_vm9, %v355_v25, 0.0 }
 0x145   :  { %v346_v29 = vrot.slane %v345_v27, 4  ;;  %v362_v30 = vadd.f32 %v361_v28, %v360_v26 }
 0x147   :  { %v347_v31 = vadd.f32 %v346_v29, %v345_v27  ;;  %v363_v32 = vrot.slane %v362_v30, 4 }
 0x149   :  { %v348_v33 = vrot.slane %v347_v31, 2  ;;  %v364_v34 = vadd.f32 %v363_v32, %v362_v30  ;;  %v462_v32 = vld [vmem:[%s2593_s21] sm:$0xff] }
 0x14b   :  { %v349_v36 = vadd.f32 %v348_v33, %v347_v31  ;;  %v365_v37 = vrot.slane %v364_v34, 2  ;;  %v463_v33 = vld [vmem:[%s2593_s21 + $0x8] sm:$0xff]  ;;  %s3418_s21 = sld [smem:[#allocation6_spill]] }
 0x14d   :  { %v350_v38 = vrot.slane %v349_v36, 1  ;;  %v366_v39 = vadd.f32 %v365_v37, %v364_v34  ;;  %v519_v37 = vld [vmem:[%s2598_s25 + $0x38] sm:$0xff] }
 0x14e   :  { %534 = vmatpush.msrb.mxu3 %v519_v37  ;;  %v691_v37 = vld [vmem:[%s2613_s8 + $0x28] sm:$0xff] }
 0x14f   :  { %v367_v40 = vrot.slane %v366_v39, 1  ;;  %v351_v41 = vadd.f32 %v350_v38, %v349_v36  ;;  %v518_v38 = vld [vmem:[%s2598_s25 + $0x30] sm:$0xff] }
 0x150   :  { %535 = vmatpush.msrb.mxu3 %v518_v38  ;;  %v690_v38 = vld [vmem:[%s2613_s8 + $0x20] sm:$0xff] }
 0x151   :  { %v368_v42 = vadd.f32 %v367_v40, %v366_v39  ;;  %v517_v39 = vld [vmem:[%s2598_s25 + $0x28] sm:$0xff]  ;;  %v516_v40 = vld [vmem:[%s2598_s25 + $0x20] sm:$0xff] }
 0x152   :  { %536 = vmatpush.msrb.mxu3 %v517_v39  ;;  %v689_v39 = vld [vmem:[%s2613_s8 + $0x18] sm:$0xff] }
 0x153   :  { %v369_v43 = vsel %vm3383_vm3, %v351_v41, %v368_v42  ;;  %v515_v41 = vld [vmem:[%s2598_s25 + $0x18] sm:$0xff]  ;;  %v514_v42 = vld [vmem:[%s2598_s25 + $0x10] sm:$0xff] }
 0x154   :  { %2385 = vmatmul.msk.f32.vlgmr.msra.gmra.mxu3 %vm338_vm9, %v369_v43  ;;  %v513_v43 = vld [vmem:[%s2598_s25 + $0x8] sm:$0xff] }
 0x155   :  { %537 = vmatpush.msrb.mxu3 %v516_v40  ;;  %v688_v40 = vld [vmem:[%s2613_s8 + $0x10] sm:$0xff] }
 0x157   :  { %538 = vmatpush.msrb.mxu3 %v515_v41  ;;  %v687_v41 = vld [vmem:[%s2613_s8 + $0x8] sm:$0xff] }
 0x159   :  { %539 = vmatpush.msrb.mxu3 %v514_v42  ;;  %v686_v42 = vld [vmem:[%s2613_s8] sm:$0xff] }
 0x15b   :  { %540 = vmatpush.msrb.mxu3 %v513_v43 }
 0x1d7   :  { %v398_v44 = vpop.f32.mrf.mxu3 }
 0x1d8   :  { %v401_v45 = vmul.f32 0.001953125, %v398_v44  ;;  %v512_v44 = vld [vmem:[%s2598_s25] sm:$0xff]  ;;  %s3419_s25 = sld [smem:[#allocation7_spill]] }
 0x1d9   :  { %541 = vmatpush.msrb.mxu3 %v512_v44 }
 0x1da   :  { %v402_v46 = vmul.f32 %v401_v45, %v401_v45 }
 0x1dc   :  { %v404_v48 = vrot.slane %v402_v46, 7 }
 0x1de   :  { %v406_v49 = vsub.f32 %v401_v45, %v404_v48 }
 0x1e0   :  { %v407_v50 = vmax.f32 %v406_v49, 0.0 }
 0x1e2   :  { %v409_v51 = vadd.f32 1e-05, %v407_v50 }
 0x1e4   :  { %2487 = vrsqrt.f32 %v409_v51  ;;  %vm416_vm11 = vweird.f32 %v409_v51 }
 0x1ea   :  { %v2488_v52 = vpop.eup %2487 }
 0x1eb   :  { %v411_v53 = vmul.f32 %v2488_v52, %v409_v51  ;;  %vm417_vm10 = vweird.f32 %v2488_v52 }
 0x1ec   :  { %vm418_vm12 = vmor %vm416_vm11, %vm417_vm10  ;;  %vm3384_vm10 = vcmask 785408  }
 0x1ed   :  { %v412_v54 = vmul.f32 %v2488_v52, %v411_v53 }
 0x1ef   :  { %v413_v55 = vmul.f32 0.5, %v412_v54 }
 0x1f1   :  { %v414_v56 = vsub.f32 1.5, %v413_v55  ;;  %v560_v55 = vand.u32 7, %v2748_v10 }
 0x1f3   :  { %v415_v57 = vmul.f32 %v2488_v52, %v414_v56  ;;  %v553_v56 = vand.u32 7, %v2740_v7  ;;  %vm2881_vm14 = vcmp.eq.s32.totalorder %v560_v55, 7  ;;  %vm2919_vm11 = vcmp.eq.s32.totalorder %v560_v55, 0 }
 0x1f5   :  { %v419_v59 = vsel %vm418_vm12, %v2488_v52, %v415_v57  ;;  %vm2885_vm15 = vcmp.eq.s32.totalorder %v553_v56, 7  ;;  %vm2909_vm7 = vcmp.eq.s32.totalorder %v553_v56, 0 }
 0x1f6   :  { %v421_v60 = vrot.slane %v419_v59, 1 }
 0x1f8   :  { %v423_v61 = vmul.f32 %v421_v60, %v408_v58  ;;  %v1071_v60 = vld [vmem:[%s3419_s25 + $0x38] sm:$0xff] }
 0x1fa   :  { %v425_v0 = vmul.f32 %v423_v61, %v401_v45  ;;  %v427_v1 = vperm.slane %v423_v61, 0  ;;  %v1070_v61 = vld [vmem:[%s3419_s25 + $0x30] sm:$0xff] }
 0x1fc   :  { %v426_v2 = vsub.f32 %v424_v63, %v425_v0  ;;  %v428_v3 = vmul.f32 %v427_v1, %v2818_v62  ;;  %v431_v8 = vmul.f32 %v427_v1, %v335_v23  ;;  %v430_v9 = vmul.f32 %v427_v1, %v2827_v5 }
 0x1fd   :  { %v429_v12 = vmul.f32 %v427_v1, %v2825_v4 }
 0x1fe   :  { %v432_v6 = vperm.slane %v426_v2, 0  ;;  %v634_v2 = vld [vmem:[%s2603_s29 + $0x58] sm:$0xff] }
 0x200   :  { %v433_v13 = vadd.f32 %v432_v6, %v428_v3  ;;  %v436_v14 = vadd.f32 %v432_v6, %v431_v8  ;;  %v435_v15 = vadd.f32 %v432_v6, %v430_v9  ;;  %v434_v16 = vadd.f32 %v432_v6, %v429_v12  ;;  %v633_v3 = vld [vmem:[%s2603_s29 + $0x50] sm:$0xff]  ;;  %v632_v6 = vld [vmem:[%s2603_s29 + $0x48] sm:$0xff]  ;;  %v631_v8 = vld [vmem:[%s2603_s29 + $0x40] sm:$0xff] }
 0x201   :  { %v630_v9 = vld [vmem:[%s2603_s29 + $0x38] sm:$0xff]  ;;  %v629_v12 = vld [vmem:[%s2603_s29 + $0x30] sm:$0xff] }
 0x202   :  { %v437_v18 = vmax.f32 %v433_v13, 0.0  ;;  %v440_v19 = vmax.f32 %v436_v14, 0.0  ;;  %v439_v21 = vmax.f32 %v435_v15, 0.0  ;;  %v438_v22 = vmax.f32 %v434_v16, 0.0  ;;  %v628_v13 = vld [vmem:[%s2603_s29 + $0x28] sm:$0xff]  ;;  %v627_v14 = vld [vmem:[%s2603_s29 + $0x20] sm:$0xff] }
 0x203   :  { %v626_v15 = vld [vmem:[%s2603_s29 + $0x18] sm:$0xff]  ;;  %v625_v16 = vld [vmem:[%s2603_s29 + $0x10] sm:$0xff] }
 0x204   :  { %v445_v24 = vrot.slane %v437_v18, 1  ;;  %v450_v25 = vrot.slane %v440_v19, 1  ;;  %v448_v26 = vrot.slane %v439_v21, 1  ;;  %v446_v62 = vrot.slane %v438_v22, 1 }
 0x206   :  { %v457_v23 = vsel %vm226_vm0, %v450_v25, %v445_v24  ;;  %v451_v5 = vsel %vm226_vm0, %v448_v26, %v450_v25  ;;  %v449_v4 = vsel %vm226_vm0, %v446_v62, %v448_v26  ;;  %v447_v29 = vsel %vm226_vm0, %v445_v24, %v446_v62 }
 0x207   :  { %v461_v27 = vmax.f32 %v440_v19, %v457_v23  ;;  %v460_v28 = vmax.f32 %v439_v21, %v451_v5  ;;  %v459_v30 = vmax.f32 %v438_v22, %v449_v4  ;;  %v458_v31 = vmax.f32 %v437_v18, %v447_v29  ;;  %v624_v18 = vld [vmem:[%s2603_s29 + $0x8] sm:$0xff]  ;;  %v623_v19 = vld [vmem:[%s2603_s29] sm:$0xff]  ;;  %s3420_s29 = sld [smem:[#allocation9_spill]] }
 0x209   :  { %482 = vmatpush.msra.mxu2 %v461_v27 }
 0x20b   :  { %483 = vmatpush.msra.mxu2 %v460_v28 }
 0x20d   :  { %484 = vmatpush.msra.mxu2 %v459_v30 }
 0x20f   :  { %485 = vmatpush.msra.mxu2 %v458_v31 }
 0x210   :  { %2386 = vmatmul.msk.f32.vlgmr.msra.gmra.mxu2 %vm285_vm6, %v462_v32 }
 0x211   :  { %646 = vmatpush.msrb.mxu2 %v634_v2 }
 0x213   :  { %647 = vmatpush.msrb.mxu2 %v633_v3 }
 0x215   :  { %648 = vmatpush.msrb.mxu2 %v632_v6 }
 0x217   :  { %649 = vmatpush.msrb.mxu2 %v631_v8 }
 0x218   :  { %2387 = vmatmul.msk.f32.gmra.mxu2 %vm285_vm6, %v463_v33 }
 0x219   :  { %650 = vmatpush.msrb.mxu2 %v630_v9 }
 0x21b   :  { %651 = vmatpush.msrb.mxu2 %v629_v12 }
 0x21d   :  { %652 = vmatpush.msrb.mxu2 %v628_v13 }
 0x21f   :  { %653 = vmatpush.msrb.mxu2 %v627_v14 }
 0x221   :  { %654 = vmatpush.msrb.mxu2 %v626_v15 }
 0x223   :  { %655 = vmatpush.msrb.mxu2 %v625_v16 }
 0x225   :  { %656 = vmatpush.msrb.mxu2 %v624_v18 }
 0x227   :  { %657 = vmatpush.msrb.mxu2 %v623_v19 }
 0x293   :  { %v487_v34 = vpop.f32.mrf.mxu2 }
 0x294   :  { %501 = vrot.lane.b32.xlu0 %v487_v34, %s2558_s5  ;;  %495 = vrot.lane.b32.xlu2 %v487_v34, %s2559_s9 }
 0x29b   :  { %v490_v36 = vpop.f32.mrf.mxu2 }
 0x29c   :  { %503 = vrot.lane.b32.xlu2 %v490_v36, %s2558_s5  ;;  %497 = vrot.lane.b32.xlu1 %v490_v36, %s2559_s9 }
 0x2ee   :  { %v496_v45 = vpop.permute.xlu2 %495 }
 0x2f6   :  { %v504_v50 = vpop.permute.xlu2 %503 }
 0x306   :  { %v502_v46 = vpop.permute.xlu0 %501 }
 0x307   :  { %v508_v48 = vsel %vm507_vm13, %v496_v45, %v502_v46 }
 0x308   :  { %v510_v49 = vmax.f32 %v487_v34, %v508_v48  ;;  %v693_v34 = vld [vmem:[%s2613_s8 + $0x38] sm:$0xff] }
 0x309   :  { %705 = vmatpush.msra.mxu1 %v693_v34 }
 0x30a   :  { %2388 = vmatmul.msk.f32.vlgmr.msrb.gmra.mxu3 %vm338_vm9, %v510_v49 }
 0x30e   :  { %v498_v51 = vpop.permute.xlu1 %497 }
 0x30f   :  { %v509_v52 = vsel %vm507_vm13, %v498_v51, %v504_v50 }
 0x310   :  { %v511_v53 = vmax.f32 %v490_v36, %v509_v52  ;;  %v692_v36 = vld [vmem:[%s2613_s8 + $0x30] sm:$0xff]  ;;  %s3427_s8 = sld [smem:[#allocation8_spill]] }
 0x311   :  { %706 = vmatpush.msra.mxu1 %v692_v36 }
 0x312   :  { %2389 = vmatmul.msk.f32.gmra.mxu3 %vm338_vm9, %v511_v53 }
 0x313   :  { %707 = vmatpush.msra.mxu1 %v691_v37 }
 0x315   :  { %708 = vmatpush.msra.mxu1 %v690_v38 }
 0x317   :  { %709 = vmatpush.msra.mxu1 %v689_v39 }
 0x319   :  { %710 = vmatpush.msra.mxu1 %v688_v40 }
 0x31b   :  { %711 = vmatpush.msra.mxu1 %v687_v41 }
 0x31d   :  { %712 = vmatpush.msra.mxu1 %v686_v42 }
 0x38d   :  { %v543_v54 = vpop.f32.mrf.mxu3 }
 0x38e   :  { %605 = vrot.lane.b32.xlu0 %v543_v54, %s2557_s0  ;;  %v592_v58 = vrot.slane %v543_v54, 1  ;;  %v579_v22 = vrot.slane %v543_v54, 7 }
 0x395   :  { %v546_v57 = vpop.f32.mrf.mxu3 }
 0x396   :  { %v593_v59 = vrot.slane %v546_v57, 1  ;;  %607 = vrot.lane.b32.xlu2 %v546_v57, %s2557_s0  ;;  %v576_v21 = vrot.slane %v546_v57, 7 }
 0x398   :  { %v598_v10 = vsel %vm226_vm0, %v593_v59, %v592_v58  ;;  %v594_v63 = vsel %vm226_vm0, %v592_v58, %v593_v59  ;;  %v583_v25 = vsel %vm3383_vm3, %v576_v21, %v579_v22  ;;  %v580_v28 = vsel %vm3383_vm3, %v579_v22, %v576_v21 }
 0x399   :  { %v604_v0 = vsel %vm2881_vm14, 0.0, %v598_v10  ;;  %v603_v1 = vsel %vm2885_vm15, 0.0, %v594_v63  ;;  %v588_v62 = vsel %vm2909_vm7, 0.0, %v583_v25  ;;  %v589_v31 = vsel %vm2919_vm11, 0.0, %v580_v28  ;;  %v740_v28 = vld [vmem:[%s2608_s3 + $0x1] sm:$0x1] }
 0x39a   :  { %615 = vrot.lane.b32.xlu0 %v604_v0, %s2560_s13  ;;  %613 = vrot.lane.b32.xlu1 %v603_v1, %s2560_s13 }
 0x3f0   :  { %v608_v29 = vpop.permute.xlu2 %607 }
 0x3f1   :  { %v620_v32 = vsel %vm285_vm6, %v589_v31, %v608_v29 }
 0x400   :  { %v606_v26 = vpop.permute.xlu0 %605 }
 0x401   :  { %v619_v23 = vsel %vm285_vm6, %v588_v62, %v606_v26  ;;  %v724_v62 = vld [vmem:[%s2608_s3] sm:$0x1]  ;;  %s3425_s3 = sld [smem:[#allocation11_spill]] }
 0x40c   :  { %v614_v5 = vpop.permute.xlu1 %613  ;;  %v616_v30 = vpop.permute.xlu0 %615 }
 0x40d   :  { %v621_v27 = vsel %vm338_vm9, %v619_v23, %v614_v5  ;;  %v622_v33 = vsel %vm338_vm9, %v620_v32, %v616_v30 }
 0x40e   :  { %2390 = vmatmul.msk.f32.vlgmr.msrb.gmra.mxu2 %vm3384_vm10, %v621_v27 }
 0x416   :  { %2391 = vmatmul.msk.f32.gmra.mxu2 %vm3384_vm10, %v622_v33 }
 0x491   :  { %v659_v43 = vpop.f32.mrf.mxu2 }
 0x492   :  { %v674_v44 = vmul.f32 %v659_v43, %v659_v43  ;;  %v665_v46 = vsel %vm338_vm9, %v659_v43, 0.0 }
 0x494   :  { %v676_v51 = vsel %vm338_vm9, %v674_v44, 0.0 }
 0x499   :  { %v662_v45 = vpop.f32.mrf.mxu2 }
 0x49a   :  { %v666_v48 = vsel %vm338_vm9, %v662_v45, 0.0  ;;  %v675_v49 = vmul.f32 %v662_v45, %v662_v45 }
 0x49b   :  { %v667_v50 = vadd.f32 %v666_v48, %v665_v46 }
 0x49c   :  { %v677_v52 = vsel %vm338_vm9, %v675_v49, 0.0  ;;  %v802_v49 = vld [vmem:[%s2623_s19 + $0x38] sm:$0xff] }
 0x49d   :  { %v668_v53 = vrot.slane %v667_v50, 4  ;;  %v678_v54 = vadd.f32 %v677_v52, %v676_v51  ;;  %814 = vmatpush.msrb.mxu0 %v802_v49  ;;  %v800_v51 = vld [vmem:[%s2623_s19 + $0x28] sm:$0xff]  ;;  %v799_v52 = vld [vmem:[%s2623_s19 + $0x20] sm:$0xff] }
 0x49f   :  { %v669_v55 = vadd.f32 %v668_v53, %v667_v50  ;;  %v679_v56 = vrot.slane %v678_v54, 4  ;;  %v801_v50 = vld [vmem:[%s2623_s19 + $0x30] sm:$0xff]  ;;  %v798_v53 = vld [vmem:[%s2623_s19 + $0x18] sm:$0xff] }
 0x4a0   :  { %815 = vmatpush.msrb.mxu0 %v801_v50 }
 0x4a1   :  { %v670_v57 = vrot.slane %v669_v55, 2  ;;  %v680_v58 = vadd.f32 %v679_v56, %v678_v54  ;;  %v797_v54 = vld [vmem:[%s2623_s19 + $0x10] sm:$0xff]  ;;  %v795_v56 = vld [vmem:[%s2623_s19] sm:$0xff] }
 0x4a2   :  { %816 = vmatpush.msrb.mxu0 %v800_v51 }
 0x4a3   :  { %v671_v59 = vadd.f32 %v670_v57, %v669_v55  ;;  %v681_v10 = vrot.slane %v680_v58, 2  ;;  %v796_v55 = vld [vmem:[%s2623_s19 + $0x8] sm:$0xff]  ;;  %s3429_s19 = sld [smem:[#allocation10_spill]] }
 0x4a4   :  { %817 = vmatpush.msrb.mxu0 %v799_v52 }
 0x4a5   :  { %v672_v63 = vrot.slane %v671_v59, 1  ;;  %v682_v0 = vadd.f32 %v681_v10, %v680_v58 }
 0x4a6   :  { %818 = vmatpush.msrb.mxu0 %v798_v53 }
 0x4a7   :  { %v683_v1 = vrot.slane %v682_v0, 1  ;;  %v673_v2 = vadd.f32 %v672_v63, %v671_v59  ;;  %v873_v63 = vld [vmem:[%s2628_s24 + $0x58] sm:$0xff] }
 0x4a8   :  { %819 = vmatpush.msrb.mxu0 %v797_v54  ;;  %881 = vmatpush.msrb.mxu1 %v873_v63  ;;  %v972_v54 = vld [vmem:[%s2648_s20 + $0x8] sm:$0xff] }
 0x4a9   :  { %v684_v3 = vadd.f32 %v683_v1, %v682_v0  ;;  %v872_v0 = vld [vmem:[%s2628_s24 + $0x50] sm:$0xff]  ;;  %v871_v1 = vld [vmem:[%s2628_s24 + $0x48] sm:$0xff]  ;;  %990 = vmatpush.msra.mxu2 %v972_v54 }
 0x4aa   :  { %820 = vmatpush.msrb.mxu0 %v796_v55  ;;  %882 = vmatpush.msrb.mxu1 %v872_v0 }
 0x4ab   :  { %v685_v6 = vsel %vm3383_vm3, %v673_v2, %v684_v3  ;;  %v870_v2 = vld [vmem:[%s2628_s24 + $0x40] sm:$0xff]  ;;  %v869_v3 = vld [vmem:[%s2628_s24 + $0x38] sm:$0xff] }
 0x4ac   :  { %2392 = vmatmul.msk.f32.vlgmr.msra.gmra.mxu1 %vm338_vm9, %v685_v6  ;;  %821 = vmatpush.msrb.mxu0 %v795_v56  ;;  %v868_v6 = vld [vmem:[%s2628_s24 + $0x30] sm:$0xff]  ;;  %v971_v56 = vld [vmem:[%s2648_s20] sm:$0xff]  ;;  %s3437_s20 = sld [smem:[#allocation13_spill]] }
 0x4ad   :  { %883 = vmatpush.msrb.mxu1 %v871_v1  ;;  %991 = vmatpush.msra.mxu2 %v971_v56  ;;  %v945_v1 = vld [vmem:[%s3417_s17] sm:$0x1]  ;;  %v1128_v56 = vld [vmem:[%s3420_s29 + $0x10] sm:$0xff] }
 0x4af   :  { %884 = vmatpush.msrb.mxu1 %v870_v2 }
 0x4b1   :  { %885 = vmatpush.msrb.mxu1 %v869_v3 }
 0x4b3   :  { %886 = vmatpush.msrb.mxu1 %v868_v6 }
 0x529   :  { %v714_v8 = vpop.f32.mrf.mxu1 }
 0x52a   :  { %v717_v9 = vmul.f32 0.0078125, %v714_v8  ;;  %v867_v8 = vld [vmem:[%s2628_s24 + $0x28] sm:$0xff] }
 0x52b   :  { %887 = vmatpush.msrb.mxu1 %v867_v8  ;;  %v961_v8 = vld [vmem:[%s3417_s17 + $0x1] sm:$0x1] }
 0x52c   :  { %v718_v12 = vmul.f32 %v717_v9, %v717_v9 }
 0x52e   :  { %v720_v13 = vrot.slane %v718_v12, 7  ;;  %v865_v12 = vld [vmem:[%s2628_s24 + $0x18] sm:$0xff] }
 0x530   :  { %v722_v14 = vsub.f32 %v717_v9, %v720_v13  ;;  %v864_v13 = vld [vmem:[%s2628_s24 + $0x10] sm:$0xff] }
 0x532   :  { %v723_v15 = vmax.f32 %v722_v14, 0.0  ;;  %v830_v14 = vand.u32 3, %v2740_v7 }
 0x534   :  { %v725_v16 = vadd.f32 1e-05, %v723_v15 }
 0x536   :  { %2489 = vrsqrt.f32 %v725_v16  ;;  %vm732_vm3 = vweird.f32 %v725_v16 }
 0x53c   :  { %v2490_v18 = vpop.eup %2489 }
 0x53d   :  { %v727_v19 = vmul.f32 %v2490_v18, %v725_v16  ;;  %vm733_vm12 = vweird.f32 %v2490_v18 }
 0x53e   :  { %vm734_vm10 = vmor %vm732_vm3, %vm733_vm12  ;;  %vm846_vm3 = vcmp.eq.s32.totalorder %v830_v14, 3  ;;  %vm3416_vm12 = vcmask 1040384  }
 0x53f   :  { %v728_v21 = vmul.f32 %v2490_v18, %v727_v19  ;;  %v863_v19 = vld [vmem:[%s2628_s24 + $0x8] sm:$0xff] }
 0x541   :  { %v729_v22 = vmul.f32 0.5, %v728_v21  ;;  %v862_v21 = vld [vmem:[%s2628_s24] sm:$0xff] }
 0x543   :  { %v730_v25 = vsub.f32 1.5, %v729_v22 }
 0x545   :  { %v731_v26 = vmul.f32 %v2490_v18, %v730_v25 }
 0x547   :  { %v735_v23 = vsel %vm734_vm10, %v2490_v18, %v731_v26  ;;  %vm3415_vm10 = vcmask 785408  }
 0x548   :  { %v737_v5 = vrot.slane %v735_v23, 1 }
 0x54a   :  { %v739_v27 = vmul.f32 %v737_v5, %v724_v62 }
 0x54c   :  { %v741_v29 = vmul.f32 %v739_v27, %v717_v9  ;;  %v743_v30 = vperm.slane %v739_v27, 0  ;;  %v866_v9 = vld [vmem:[%s2628_s24 + $0x20] sm:$0xff]  ;;  %v914_v27 = vld [vmem:[%s2638_s6 + $0x8] sm:$0xff]  ;;  %s3433_s24 = sld [smem:[#allocation14_spill]] }
 0x54d   :  { %888 = vmatpush.msrb.mxu1 %v866_v9 }
 0x54e   :  { %v742_v31 = vsub.f32 %v740_v28, %v741_v29  ;;  %v744_v32 = vmul.f32 %v743_v30, %v659_v43  ;;  %v745_v33 = vmul.f32 %v743_v30, %v662_v45  ;;  %v762_v45 = vld [vmem:[%s2618_s14] sm:$0xff]  ;;  %s3428_s14 = sld [smem:[#allocation12_spill]] }
 0x54f   :  { %889 = vmatpush.msrb.mxu1 %v865_v12  ;;  %v913_v28 = vld [vmem:[%s2638_s6] sm:$0xff]  ;;  %s3435_s6 = sld [smem:[#allocation16_spill]] }
 0x550   :  { %v746_v34 = vperm.slane %v742_v31, 0 }
 0x551   :  { %890 = vmatpush.msrb.mxu1 %v864_v13 }
 0x552   :  { %v747_v36 = vadd.f32 %v746_v34, %v744_v32  ;;  %v748_v37 = vadd.f32 %v746_v34, %v745_v33  ;;  %v1450_v47 = vld [vmem:[%s3433_s24 + $0x30] sm:$0xff] }
 0x553   :  { %891 = vmatpush.msrb.mxu1 %v863_v19  ;;  %v969_v19 = vld [vmem:[%s3418_s21] sm:$0xff] }
 0x554   :  { %v749_v38 = vmax.f32 %v747_v36, 0.0  ;;  %v750_v39 = vmax.f32 %v748_v37, 0.0 }
 0x555   :  { %892 = vmatpush.msrb.mxu1 %v862_v21 }
 0x556   :  { %v753_v40 = vrot.slane %v749_v38, 1  ;;  %v754_v41 = vrot.slane %v750_v39, 1 }
 0x558   :  { %v759_v42 = vsel %vm226_vm0, %v754_v41, %v753_v40  ;;  %v755_v44 = vsel %vm226_vm0, %v753_v40, %v754_v41 }
 0x559   :  { %v761_v46 = vmax.f32 %v750_v39, %v759_v42  ;;  %v760_v43 = vmax.f32 %v749_v38, %v755_v44 }
 0x55b   :  { %780 = vmatpush.msra.mxu3 %v761_v46 }
 0x55d   :  { %781 = vmatpush.msra.mxu3 %v760_v43 }
 0x55e   :  { %2393 = vmatmul.msk.f32.vlgmr.msra.gmra.mxu3 %vm280_vm5, %v762_v45 }
 0x55f   :  { %932 = vmatpush.msrb.mxu3 %v914_v27 }
 0x561   :  { %933 = vmatpush.msrb.mxu3 %v913_v28 }
 0x5e1   :  { %v783_v48 = vpop.f32.mrf.mxu3 }
 0x5e2   :  { %790 = vrot.lane.b32.xlu2 %v783_v48, %s2558_s5  ;;  %787 = vrot.lane.b32.xlu1 %v783_v48, %s2559_s9 }
 0x63c   :  { %v791_v57 = vpop.permute.xlu2 %790 }
 0x654   :  { %v788_v58 = vpop.permute.xlu1 %787 }
 0x655   :  { %v793_v59 = vsel %vm507_vm13, %v788_v58, %v791_v57  ;;  %vm838_vm13 = vcmp.eq.s32.totalorder %v830_v14, 0 }
 0x656   :  { %v794_v10 = vmax.f32 %v783_v48, %v793_v59 }
 0x658   :  { %2394 = vmatmul.msk.f32.vlgmr.msrb.gmra.mxu0 %vm338_vm9, %v794_v10 }
 0x6d5   :  { %v823_v15 = vpop.f32.mrf.mxu0 }
 0x6d6   :  { %v847_v16 = vrot.slane %v823_v15, 1  ;;  %853 = vrot.lane.b32.xlu0 %v823_v15, %s2557_s0  ;;  %v840_v22 = vrot.slane %v823_v15, 7 }
 0x6d8   :  { %v852_v18 = vsel %vm846_vm3, 0.0, %v847_v16  ;;  %v845_v26 = vsel %vm838_vm13, 0.0, %v840_v22  ;;  %v970_v22 = vld [vmem:[%s3418_s21 + $0x8] sm:$0xff] }
 0x6d9   :  { %857 = vrot.lane.b32.xlu1 %v852_v18, %s2560_s13 }
 0x748   :  { %v854_v25 = vpop.permute.xlu0 %853 }
 0x749   :  { %v860_v62 = vsel %vm285_vm6, %v845_v26, %v854_v25 }
 0x74b   :  { %v858_v23 = vpop.permute.xlu1 %857 }
 0x74c   :  { %v861_v5 = vsel %vm338_vm9, %v860_v62, %v858_v23 }
 0x74d   :  { %2395 = vmatmul.msk.f32.vlgmr.msrb.gmra.mxu1 %vm3415_vm10, %v861_v5 }
 0x7ca   :  { %v894_v29 = vpop.f32.mrf.mxu1 }
 0x7cb   :  { %v897_v30 = vsel %vm280_vm5, %v894_v29, 0.0  ;;  %v904_v31 = vmul.f32 %v894_v29, %v894_v29 }
 0x7cc   :  { %v898_v32 = vrot.slane %v897_v30, 4 }
 0x7cd   :  { %v905_v33 = vsel %vm280_vm5, %v904_v31, 0.0  ;;  %v1074_v31 = vld [vmem:[%s3419_s25 + $0x50] sm:$0xff] }
 0x7ce   :  { %v899_v34 = vadd.f32 %v898_v32, %v897_v30  ;;  %v906_v36 = vrot.slane %v905_v33, 4  ;;  %v1075_v30 = vld [vmem:[%s3419_s25 + $0x58] sm:$0xff]  ;;  %v1073_v32 = vld [vmem:[%s3419_s25 + $0x48] sm:$0xff] }
 0x7cf   :  { %1086 = vmatpush.msra.mxu0 %v1075_v30 }
 0x7d0   :  { %v900_v37 = vrot.slane %v899_v34, 2  ;;  %v907_v38 = vadd.f32 %v906_v36, %v905_v33  ;;  %v1072_v33 = vld [vmem:[%s3419_s25 + $0x40] sm:$0xff] }
 0x7d1   :  { %1087 = vmatpush.msra.mxu0 %v1074_v31  ;;  %v1068_v36 = vld [vmem:[%s3419_s25 + $0x20] sm:$0xff]  ;;  %v1193_v31 = vld [vmem:[%s3425_s3 + $0x10] sm:$0xff] }
 0x7d2   :  { %v901_v39 = vadd.f32 %v900_v37, %v899_v34  ;;  %v908_v40 = vrot.slane %v907_v38, 2  ;;  %v1069_v34 = vld [vmem:[%s3419_s25 + $0x28] sm:$0xff]  ;;  %v1067_v37 = vld [vmem:[%s3419_s25 + $0x18] sm:$0xff] }
 0x7d3   :  { %1088 = vmatpush.msra.mxu0 %v1073_v32 }
 0x7d4   :  { %v902_v41 = vrot.slane %v901_v39, 1  ;;  %v909_v42 = vadd.f32 %v908_v40, %v907_v38  ;;  %v1066_v38 = vld [vmem:[%s3419_s25 + $0x10] sm:$0xff]  ;;  %v1064_v40 = vld [vmem:[%s3419_s25] sm:$0xff] }
 0x7d5   :  { %1089 = vmatpush.msra.mxu0 %v1072_v33  ;;  %v1192_v33 = vld [vmem:[%s3425_s3 + $0x8] sm:$0xff] }
 0x7d6   :  { %v910_v44 = vrot.slane %v909_v42, 1  ;;  %v903_v46 = vadd.f32 %v902_v41, %v901_v39  ;;  %v1065_v39 = vld [vmem:[%s3419_s25 + $0x8] sm:$0xff] }
 0x7d7   :  { %1090 = vmatpush.msra.mxu0 %v1071_v60 }
 0x7d8   :  { %v911_v43 = vadd.f32 %v910_v44, %v909_v42 }
 0x7d9   :  { %1091 = vmatpush.msra.mxu0 %v1070_v61  ;;  %v1191_v61 = vld [vmem:[%s3425_s3] sm:$0xff] }
 0x7da   :  { %v912_v45 = vsel %vm3416_vm12, %v903_v46, %v911_v43  ;;  %vm996_vm12 = vcmask 64512  }
 0x7db   :  { %2396 = vmatmul.msk.f32.vlgmr.msrb.gmra.mxu3 %vm280_vm5, %v912_v45  ;;  %1092 = vmatpush.msra.mxu0 %v1069_v34 }
 0x7dd   :  { %1093 = vmatpush.msra.mxu0 %v1068_v36 }
 0x7df   :  { %1094 = vmatpush.msra.mxu0 %v1067_v37 }
 0x7e1   :  { %1095 = vmatpush.msra.mxu0 %v1066_v38 }
 0x7e3   :  { %1096 = vmatpush.msra.mxu0 %v1065_v39 }
 0x7e5   :  { %1097 = vmatpush.msra.mxu0 %v1064_v40 }
 0x85e   :  { %v935_v48 = vpop.f32.mrf.mxu3 }
 0x85f   :  { %v938_v49 = vmul.f32 0.03125, %v935_v48 }
 0x861   :  { %v939_v50 = vmul.f32 %v938_v49, %v938_v49 }
 0x863   :  { %v941_v51 = vrot.slane %v939_v50, 7 }
 0x865   :  { %v943_v52 = vsub.f32 %v938_v49, %v941_v51 }
 0x867   :  { %v944_v53 = vmax.f32 %v943_v52, 0.0 }
 0x869   :  { %v946_v55 = vadd.f32 1e-05, %v944_v53 }
 0x86b   :  { %2491 = vrsqrt.f32 %v946_v55  ;;  %vm953_vm13 = vweird.f32 %v946_v55 }
 0x871   :  { %v2492_v57 = vpop.eup %2491 }
 0x872   :  { %v948_v58 = vmul.f32 %v2492_v57, %v946_v55  ;;  %vm954_vm3 = vweird.f32 %v2492_v57  ;;  %v1129_v55 = vld [vmem:[%s3420_s29 + $0x18] sm:$0xff] }
 0x873   :  { %vm955_vm10 = vmor %vm953_vm13, %vm954_vm3  ;;  %vm3423_vm3 = vcmask 785408   ;;  %1145 = vmatpush.msrb.mxu2 %v1129_v55 }
 0x874   :  { %v949_v59 = vmul.f32 %v2492_v57, %v948_v58  ;;  %v1126_v58 = vld [vmem:[%s3420_s29] sm:$0xff] }
 0x875   :  { %1146 = vmatpush.msrb.mxu2 %v1128_v56 }
 0x876   :  { %v950_v10 = vmul.f32 0.5, %v949_v59 }
 0x878   :  { %v951_v63 = vsub.f32 1.5, %v950_v10 }
 0x87a   :  { %v952_v0 = vmul.f32 %v2492_v57, %v951_v63 }
 0x87c   :  { %v956_v2 = vsel %vm955_vm10, %v2492_v57, %v952_v0  ;;  %v1127_v57 = vld [vmem:[%s3420_s29 + $0x8] sm:$0xff] }
 0x87d   :  { %v958_v3 = vrot.slane %v956_v2, 1  ;;  %1147 = vmatpush.msrb.mxu2 %v1127_v57  ;;  %v1342_v57 = vld [vmem:[%s3428_s14 + $0xb8] sm:$0xff] }
 0x87f   :  { %v960_v6 = vmul.f32 %v958_v3, %v945_v1  ;;  %1148 = vmatpush.msrb.mxu2 %v1126_v58  ;;  %v1341_v58 = vld [vmem:[%s3428_s14 + $0xb0] sm:$0xff] }
 0x881   :  { %v962_v9 = vmul.f32 %v960_v6, %v938_v49  ;;  %v964_v12 = vperm.slane %v960_v6, 0 }
 0x883   :  { %v963_v13 = vsub.f32 %v961_v8, %v962_v9  ;;  %v965_v14 = vmul.f32 %v964_v12, %v894_v29 }
 0x885   :  { %v966_v15 = vperm.slane %v963_v13, 0 }
 0x887   :  { %v967_v16 = vadd.f32 %v966_v15, %v965_v14 }
 0x889   :  { %v968_v18 = vmax.f32 %v967_v16, 0.0 }
 0x88b   :  { %2397 = vmatmul.msk.f32.vlgmr.msra.gmra.mxu2 %vm280_vm5, %v968_v18 }
 0x90e   :  { %v993_v21 = vpop.f32.mrf.mxu2 }
 0x90f   :  { %1018 = vmatpush.msra.mxu3 %v993_v21 }
 0x910   :  { %2398 = vmatmul.msk.f32.vlgmr.msra.gmra.mxu3 %vm996_vm12, %v969_v19 }
 0x918   :  { %2399 = vmatmul.msk.f32.gmra.mxu3 %vm996_vm12, %v970_v22 }
 0x993   :  { %v1020_v25 = vpop.f32.mrf.mxu3 }
 0x994   :  { %1046 = vrot.lane.b32.xlu2 %v1020_v25, %s2557_s0  ;;  %v1037_v62 = vrot.slane %v1020_v25, 1  ;;  %v1030_v42 = vrot.slane %v1020_v25, 7 }
 0x99b   :  { %v1023_v26 = vpop.f32.mrf.mxu3 }
 0x99c   :  { %v1038_v23 = vrot.slane %v1023_v26, 1  ;;  %1048 = vrot.lane.b32.xlu1 %v1023_v26, %s2557_s0  ;;  %v1027_v41 = vrot.slane %v1023_v26, 7 }
 0x99e   :  { %v1043_v5 = vsel %vm226_vm0, %v1038_v23, %v1037_v62  ;;  %v1039_v27 = vsel %vm226_vm0, %v1037_v62, %v1038_v23 }
 0x99f   :  { %v1045_v28 = vsel %vm2881_vm14, 0.0, %v1043_v5  ;;  %v1044_v29 = vsel %vm2885_vm15, 0.0, %v1039_v27  ;;  %vm3421_vm14 = vcmask 1040384  }
 0x9a0   :  { %1056 = vrot.lane.b32.xlu2 %v1045_v28, %s2560_s13  ;;  %1054 = vrot.lane.b32.xlu0 %v1044_v29, %s2560_s13  ;;  %v1034_v44 = vsel %vm3421_vm14, %v1027_v41, %v1030_v42  ;;  %vm3422_vm15 = vmmov %vm3421_vm14  ;;  %v1194_v29 = vld [vmem:[%s3425_s3 + $0x18] sm:$0xff] }
 0x9a1   :  { %v1035_v43 = vsel %vm2909_vm7, 0.0, %v1034_v44  ;;  %v1031_v50 = vsel %vm3422_vm15, %v1030_v42, %v1027_v41  ;;  %vm3424_vm7 = vmmov %vm3423_vm3  ;;  %1213 = vmatpush.msra.mxu1 %v1194_v29  ;;  %v1160_v41 = vld [vmem:[%s3427_s8] sm:$0x1] }
 0x9a2   :  { %v1036_v52 = vsel %vm2919_vm11, 0.0, %v1031_v50  ;;  %vm3426_vm11 = vmmov %vm3421_vm14 }
 0x9a3   :  { %1214 = vmatpush.msra.mxu1 %v1193_v31  ;;  %vm3430_vm14 = vmmov %vm3426_vm11  ;;  %v1327_v31 = vld [vmem:[%s3428_s14 + $0x40] sm:$0xff] }
 0x9a4   :  { %vm3431_vm15 = vmmov %vm3426_vm11 }
 0x9a5   :  { %1215 = vmatpush.msra.mxu1 %v1192_v33  ;;  %v1326_v33 = vld [vmem:[%s3428_s14 + $0x38] sm:$0xff] }
 0x9a7   :  { %1216 = vmatpush.msra.mxu1 %v1191_v61 }
 0x9a9   :  { %1392 = vmatpush.msrb.mxu1 %v1342_v57 }
 0x9ab   :  { %1393 = vmatpush.msrb.mxu1 %v1341_v58  ;;  %v1451_v58 = vld [vmem:[%s3433_s24 + $0x38] sm:$0xff] }
 0x9ac   :  { %1463 = vmatpush.msrb.mxu0 %v1451_v58 }
 0x9ae   :  { %1464 = vmatpush.msrb.mxu0 %v1450_v47 }
 0x9ee   :  { %v1047_v46 = vpop.permute.xlu2 %1046 }
 0x9ef   :  { %v1060_v45 = vsel %vm285_vm6, %v1035_v43, %v1047_v46  ;;  %v1176_v43 = vld [vmem:[%s3427_s8 + $0x1] sm:$0x1] }
 0x9fa   :  { %v1057_v54 = vpop.permute.xlu2 %1056 }
 0xa0e   :  { %v1049_v51 = vpop.permute.xlu1 %1048 }
 0xa0f   :  { %v1061_v53 = vsel %vm285_vm6, %v1036_v52, %v1049_v51 }
 0xa10   :  { %v1063_v24 = vsel %vm338_vm9, %v1061_v53, %v1057_v54 }
 0xa12   :  { %v1055_v48 = vpop.permute.xlu0 %1054 }
 0xa13   :  { %v1062_v49 = vsel %vm338_vm9, %v1060_v45, %v1055_v48 }
 0xa14   :  { %2400 = vmatmul.msk.f32.vlgmr.msra.gmra.mxu0 %vm3423_vm3, %v1062_v49 }
 0xa1c   :  { %2401 = vmatmul.msk.f32.gmra.mxu0 %vm3424_vm7, %v1063_v24 }
 0xa91   :  { %v1099_v59 = vpop.f32.mrf.mxu0 }
 0xa92   :  { %v1114_v10 = vmul.f32 %v1099_v59, %v1099_v59  ;;  %v1105_v4 = vsel %vm285_vm6, %v1099_v59, 0.0 }
 0xa94   :  { %v1116_v3 = vsel %vm285_vm6, %v1114_v10, 0.0  ;;  %v1187_v10 = vld [vmem:[%s3429_s19] sm:$0xff] }
 0xa99   :  { %v1102_v63 = vpop.f32.mrf.mxu0 }
 0xa9a   :  { %v1106_v0 = vsel %vm285_vm6, %v1102_v63, 0.0  ;;  %v1115_v1 = vmul.f32 %v1102_v63, %v1102_v63 }
 0xa9b   :  { %v1107_v2 = vadd.f32 %v1106_v0, %v1105_v4  ;;  %v1189_v4 = vld [vmem:[%s3429_s19 + $0x10] sm:$0xff]  ;;  %v1190_v0 = vld [vmem:[%s3429_s19 + $0x18] sm:$0xff] }
 0xa9c   :  { %v1117_v6 = vsel %vm285_vm6, %v1115_v1, 0.0  ;;  %v1340_v1 = vld [vmem:[%s3428_s14 + $0xa8] sm:$0xff] }
 0xa9d   :  { %v1108_v8 = vrot.slane %v1107_v2, 4  ;;  %v1118_v9 = vadd.f32 %v1117_v6, %v1116_v3  ;;  %1394 = vmatpush.msrb.mxu1 %v1340_v1  ;;  %v1338_v3 = vld [vmem:[%s3428_s14 + $0x98] sm:$0xff]  ;;  %v1337_v6 = vld [vmem:[%s3428_s14 + $0x90] sm:$0xff] }
 0xa9e   :  { %v1446_v1 = vld [vmem:[%s3433_s24 + $0x10] sm:$0xff] }
 0xa9f   :  { %v1109_v12 = vadd.f32 %v1108_v8, %v1107_v2  ;;  %v1119_v13 = vrot.slane %v1118_v9, 4  ;;  %v1339_v2 = vld [vmem:[%s3428_s14 + $0xa0] sm:$0xff]  ;;  %v1336_v8 = vld [vmem:[%s3428_s14 + $0x88] sm:$0xff] }
 0xaa0   :  { %1395 = vmatpush.msrb.mxu1 %v1339_v2 }
 0xaa1   :  { %v1110_v14 = vrot.slane %v1109_v12, 2  ;;  %v1120_v15 = vadd.f32 %v1119_v13, %v1118_v9  ;;  %v1335_v9 = vld [vmem:[%s3428_s14 + $0x80] sm:$0xff]  ;;  %v1334_v13 = vld [vmem:[%s3428_s14 + $0x78] sm:$0xff] }
 0xaa2   :  { %1396 = vmatpush.msrb.mxu1 %v1338_v3  ;;  %1355 = vmatpush.msrb.mxu3 %v1334_v13  ;;  %v1445_v3 = vld [vmem:[%s3433_s24 + $0x8] sm:$0xff] }
 0xaa3   :  { %v1111_v16 = vadd.f32 %v1110_v14, %v1109_v12  ;;  %v1121_v18 = vrot.slane %v1120_v15, 2  ;;  %v1333_v14 = vld [vmem:[%s3428_s14 + $0x70] sm:$0xff] }
 0xaa4   :  { %1397 = vmatpush.msrb.mxu1 %v1337_v6  ;;  %1356 = vmatpush.msrb.mxu3 %v1333_v14  ;;  %v1444_v6 = vld [vmem:[%s3433_s24] sm:$0xff] }
 0xaa5   :  { %v1112_v19 = vrot.slane %v1111_v16, 1  ;;  %v1122_v21 = vadd.f32 %v1121_v18, %v1120_v15  ;;  %v1332_v15 = vld [vmem:[%s3428_s14 + $0x68] sm:$0xff] }
 0xaa6   :  { %1398 = vmatpush.msrb.mxu1 %v1336_v8  ;;  %1357 = vmatpush.msrb.mxu3 %v1332_v15 }
 0xaa7   :  { %v1123_v22 = vrot.slane %v1122_v21, 1  ;;  %v1113_v25 = vadd.f32 %v1112_v19, %v1111_v16 }
 0xaa8   :  { %1399 = vmatpush.msrb.mxu1 %v1335_v9 }
 0xaa9   :  { %v1124_v26 = vadd.f32 %v1123_v22, %v1122_v21 }
 0xaab   :  { %v1125_v62 = vsel %vm3426_vm11, %v1113_v25, %v1124_v26  ;;  %v1331_v25 = vld [vmem:[%s3428_s14 + $0x60] sm:$0xff] }
 0xaac   :  { %2402 = vmatmul.msk.f32.vlgmr.msrb.gmra.mxu2 %vm285_vm6, %v1125_v62  ;;  %v1330_v62 = vld [vmem:[%s3428_s14 + $0x58] sm:$0xff]  ;;  %1358 = vmatpush.msrb.mxu3 %v1331_v25 }
 0xaae   :  { %1359 = vmatpush.msrb.mxu3 %v1330_v62 }
 0xb2f   :  { %v1150_v23 = vpop.f32.mrf.mxu2 }
 0xb30   :  { %v1153_v5 = vmul.f32 0.0078125, %v1150_v23 }
 0xb32   :  { %v1154_v27 = vmul.f32 %v1153_v5, %v1153_v5 }
 0xb34   :  { %v1156_v28 = vrot.slane %v1154_v27, 7  ;;  %v1328_v27 = vld [vmem:[%s3428_s14 + $0x48] sm:$0xff] }
 0xb36   :  { %v1158_v30 = vsub.f32 %v1153_v5, %v1156_v28 }
 0xb38   :  { %v1159_v32 = vmax.f32 %v1158_v30, 0.0 }
 0xb3a   :  { %v1161_v60 = vadd.f32 1e-05, %v1159_v32 }
 0xb3c   :  { %2493 = vrsqrt.f32 %v1161_v60  ;;  %vm1168_vm10 = vweird.f32 %v1161_v60 }
 0xb42   :  { %v2494_v34 = vpop.eup %2493 }
 0xb43   :  { %v1163_v36 = vmul.f32 %v2494_v34, %v1161_v60  ;;  %vm1169_vm13 = vweird.f32 %v2494_v34 }
 0xb44   :  { %vm1170_vm12 = vmor %vm1168_vm10, %vm1169_vm13 }
 0xb45   :  { %v1164_v37 = vmul.f32 %v2494_v34, %v1163_v36  ;;  %v1324_v36 = vld [vmem:[%s3428_s14 + $0x28] sm:$0xff] }
 0xb47   :  { %v1165_v38 = vmul.f32 0.5, %v1164_v37 }
 0xb49   :  { %v1166_v39 = vsub.f32 1.5, %v1165_v38 }
 0xb4b   :  { %v1167_v40 = vmul.f32 %v2494_v34, %v1166_v39 }
 0xb4d   :  { %v1171_v42 = vsel %vm1170_vm12, %v2494_v34, %v1167_v40  ;;  %v1325_v34 = vld [vmem:[%s3428_s14 + $0x30] sm:$0xff] }
 0xb4e   :  { %v1173_v44 = vrot.slane %v1171_v42, 1  ;;  %v1322_v42 = vld [vmem:[%s3428_s14 + $0x18] sm:$0xff] }
 0xb50   :  { %v1175_v46 = vmul.f32 %v1173_v44, %v1160_v41  ;;  %v1323_v41 = vld [vmem:[%s3428_s14 + $0x20] sm:$0xff]  ;;  %v1321_v44 = vld [vmem:[%s3428_s14 + $0x10] sm:$0xff] }
 0xb52   :  { %v1177_v45 = vmul.f32 %v1175_v46, %v1153_v5  ;;  %v1179_v48 = vperm.slane %v1175_v46, 0  ;;  %v1329_v5 = vld [vmem:[%s3428_s14 + $0x50] sm:$0xff]  ;;  %v1320_v46 = vld [vmem:[%s3428_s14 + $0x8] sm:$0xff] }
 0xb53   :  { %1360 = vmatpush.msrb.mxu3 %v1329_v5 }
 0xb54   :  { %v1178_v49 = vsub.f32 %v1176_v43, %v1177_v45  ;;  %v1180_v50 = vmul.f32 %v1179_v48, %v1099_v59  ;;  %v1181_v54 = vmul.f32 %v1179_v48, %v1102_v63  ;;  %v1188_v63 = vld [vmem:[%s3429_s19 + $0x8] sm:$0xff]  ;;  %v1319_v43 = vld [vmem:[%s3428_s14] sm:$0xff] }
 0xb55   :  { %1361 = vmatpush.msrb.mxu3 %v1328_v27 }
 0xb56   :  { %v1182_v51 = vperm.slane %v1178_v49, 0 }
 0xb57   :  { %1362 = vmatpush.msrb.mxu3 %v1327_v31 }
 0xb58   :  { %v1183_v52 = vadd.f32 %v1182_v51, %v1180_v50  ;;  %v1184_v24 = vadd.f32 %v1182_v51, %v1181_v54 }
 0xb59   :  { %1363 = vmatpush.msrb.mxu3 %v1326_v33 }
 0xb5a   :  { %v1185_v53 = vmax.f32 %v1183_v52, 0.0  ;;  %v1186_v55 = vmax.f32 %v1184_v24, 0.0 }
 0xb5b   :  { %1364 = vmatpush.msrb.mxu3 %v1325_v34 }
 0xb5c   :  { %2403 = vmatmul.msk.f32.vlgmr.msra.gmra.mxu1 %vm285_vm6, %v1185_v53 }
 0xb5d   :  { %1365 = vmatpush.msrb.mxu3 %v1324_v36 }
 0xb5f   :  { %1366 = vmatpush.msrb.mxu3 %v1323_v41 }
 0xb61   :  { %1367 = vmatpush.msrb.mxu3 %v1322_v42 }
 0xb63   :  { %1368 = vmatpush.msrb.mxu3 %v1321_v44 }
 0xb64   :  { %2404 = vmatmul.msk.f32.gmra.mxu1 %vm285_vm6, %v1186_v55 }
 0xb65   :  { %1369 = vmatpush.msrb.mxu3 %v1320_v46 }
 0xb67   :  { %1370 = vmatpush.msrb.mxu3 %v1319_v43 }
 0xbd9   :  { %v1218_v56 = vpop.f32.mrf.mxu1 }
 0xbe1   :  { %v1221_v59 = vpop.f32.mrf.mxu1 }
 0xbe2   :  { %1250 = vmatpush.msra.mxu2 %v1221_v59 }
 0xbe4   :  { %1251 = vmatpush.msra.mxu2 %v1218_v56 }
 0xbe5   :  { %2405 = vmatmul.msk.f32.vlgmr.msra.gmra.mxu2 %vm280_vm5, %v1187_v10  ;;  %v1449_v10 = vld [vmem:[%s3433_s24 + $0x28] sm:$0xff] }
 0xbe6   :  { %1465 = vmatpush.msrb.mxu0 %v1449_v10 }
 0xbed   :  { %2406 = vmatmul.msk.f32.gmra.mxu2 %vm280_vm5, %v1188_v63 }
 0xbf5   :  { %2407 = vmatmul.msk.f32.gmra.mxu2 %vm280_vm5, %v1189_v4  ;;  %v1448_v4 = vld [vmem:[%s3433_s24 + $0x20] sm:$0xff] }
 0xbf6   :  { %1466 = vmatpush.msrb.mxu0 %v1448_v4 }
 0xbfd   :  { %2408 = vmatmul.msk.f32.gmra.mxu2 %vm280_vm5, %v1190_v0  ;;  %v1447_v0 = vld [vmem:[%s3433_s24 + $0x18] sm:$0xff] }
 0xbfe   :  { %1467 = vmatpush.msrb.mxu0 %v1447_v0 }
 0xc00   :  { %1468 = vmatpush.msrb.mxu0 %v1446_v1 }
 0xc02   :  { %1469 = vmatpush.msrb.mxu0 %v1445_v3  ;;  %v1482_v3 = vld [vmem:[%s3437_s20] sm:$0x1] }
 0xc04   :  { %1470 = vmatpush.msrb.mxu0 %v1444_v6 }
 0xc68   :  { %v1253_v12 = vpop.f32.mrf.mxu2 }
 0xc69   :  { %1303 = vrot.lane.b32.xlu0 %v1253_v12, %s2560_s13  ;;  %v1271_v18 = vrot.slane %v1253_v12, 7  ;;  %v1286_v19 = vrot.slane %v1253_v12, 1 }
 0xc70   :  { %v1256_v16 = vpop.f32.mrf.mxu2 }
 0xc71   :  { %v1272_v21 = vrot.slane %v1256_v16, 7  ;;  %v1287_v22 = vrot.slane %v1256_v16, 1  ;;  %1305 = vrot.lane.b32.xlu1 %v1256_v16, %s2560_s13 }
 0xc73   :  { %v1288_v26 = vsel %vm226_vm0, %v1286_v19, %v1287_v22  ;;  %v1273_v23 = vsel %vm3430_vm14, %v1271_v18, %v1272_v21 }
 0xc74   :  { %2409 = vmatmul.msk.f32.vlgmr.msrb.gmra.mxu1 %vm338_vm9, %v1288_v26 }
 0xc78   :  { %v1259_v28 = vpop.f32.mrf.mxu2 }
 0xc79   :  { %v1274_v29 = vrot.slane %v1259_v28, 7  ;;  %v1289_v30 = vrot.slane %v1259_v28, 1  ;;  %1307 = vrot.lane.b32.xlu2 %v1259_v28, %s2560_s13 }
 0xc7b   :  { %v1290_v32 = vsel %vm226_vm0, %v1287_v22, %v1289_v30  ;;  %v1275_v60 = vsel %vm3431_vm15, %v1272_v21, %v1274_v29 }
 0xc7c   :  { %v1300_v61 = vsel %vm2758_vm1, 0.0, %v1290_v32  ;;  %vm3432_vm1 = vmmov %vm3426_vm11  ;;  %v1284_v54 = vsel %vm2799_vm8, 0.0, %v1275_v60 }
 0xc7d   :  { %2410 = vmatmul.msk.f32.gmra.mxu1 %vm338_vm9, %v1300_v61  ;;  %vm3440_vm10 = vmmov %vm3432_vm1 }
 0xc7e   :  { %vm3441_vm14 = vmmov %vm3432_vm1 }
 0xc7f   :  { %vm3442_vm15 = vmmov %vm3432_vm1 }
 0xc80   :  { %v1262_v37 = vpop.f32.mrf.mxu2 }
 0xc81   :  { %v1291_v38 = vrot.slane %v1262_v37, 1  ;;  %1309 = vrot.lane.b32.xlu0 %v1262_v37, %s2560_s13  ;;  %v1266_v45 = vrot.slane %v1262_v37, 7 }
 0xc83   :  { %v1292_v17 = vsel %vm226_vm0, %v1289_v30, %v1291_v38  ;;  %v1298_v39 = vsel %vm226_vm0, %v1291_v38, %v1286_v19  ;;  %v1281_v48 = vsel %vm3432_vm1, %v1266_v45, %v1271_v18 }
 0xc84   :  { %v1302_v40 = vsel %vm2768_vm2, 0.0, %v1298_v39  ;;  %v1282_v20 = vsel %vm2787_vm4, 0.0, %v1281_v48  ;;  %vm3434_vm2 = vmmov %vm3432_vm1 }
 0xc85   :  { %2411 = vmatmul.msk.f32.gmra.mxu1 %vm338_vm9, %v1292_v17  ;;  %v1276_v55 = vsel %vm3434_vm2, %v1274_v29, %v1266_v45  ;;  %vm3436_vm4 = vmmov %vm3432_vm1 }
 0xc8d   :  { %2412 = vmatmul.msk.f32.gmra.mxu1 %vm338_vm9, %v1302_v40 }
 0xcd3   :  { %v1308_v53 = vpop.permute.xlu2 %1307 }
 0xcd4   :  { %v1317_v24 = vsel %vm338_vm9, %v1284_v54, %v1308_v53  ;;  %v1527_v54 = vld [vmem:[%s3435_s6 + $0x20] sm:$0xff] }
 0xcdb   :  { %v1304_v49 = vpop.permute.xlu0 %1303 }
 0xcdc   :  { %v1315_v50 = vsel %vm338_vm9, %v1282_v20, %v1304_v49  ;;  %v1530_v49 = vld [vmem:[%s3435_s6 + $0x38] sm:$0xff] }
 0xcdd   :  { %1371 = vmatmul.f32.vlgmr.msrb.gmra.mxu3 %v1315_v50  ;;  %1551 = vmatpush.msrb.mxu2 %v1530_v49  ;;  %v1529_v50 = vld [vmem:[%s3435_s6 + $0x30] sm:$0xff]  ;;  %v1884_v49 = vld [vmem:[%s3439_s26 + $0xc8] sm:$0xff] }
 0xcdf   :  { %1552 = vmatpush.msrb.mxu2 %v1529_v50  ;;  %v1883_v50 = vld [vmem:[%s3439_s26 + $0xc0] sm:$0xff] }
 0xce3   :  { %v1306_v51 = vpop.permute.xlu1 %1305 }
 0xce4   :  { %v1316_v52 = vsel %vm338_vm9, %v1273_v23, %v1306_v51 }
 0xce5   :  { %1374 = vmatmul.f32.gmra.mxu3 %v1316_v52  ;;  %v1528_v52 = vld [vmem:[%s3435_s6 + $0x28] sm:$0xff] }
 0xce6   :  { %1553 = vmatpush.msrb.mxu2 %v1528_v52  ;;  %v1520_v52 = vld [vmem:[%s3438_s23 + $0x28] sm:$0xff] }
 0xce8   :  { %1554 = vmatpush.msrb.mxu2 %v1527_v54  ;;  %v1899_v54 = vld [vmem:[%s3439_s26 + $0x140] sm:$0xff] }
 0xced   :  { %1377 = vmatmul.f32.gmra.mxu3 %v1317_v24 }
 0xcf1   :  { %v1401_v57 = vpop.f32.mrf.mxu1 }
 0xcf3   :  { %v1310_v35 = vpop.permute.xlu0 %1309 }
 0xcf4   :  { %v1318_v56 = vsel %vm338_vm9, %v1276_v55, %v1310_v35  ;;  %v1526_v35 = vld [vmem:[%s3435_s6 + $0x18] sm:$0xff] }
 0xcf5   :  { %1380 = vmatmul.f32.gmra.mxu3 %v1318_v56  ;;  %1555 = vmatpush.msrb.mxu2 %v1526_v35  ;;  %v1525_v56 = vld [vmem:[%s3435_s6 + $0x10] sm:$0xff]  ;;  %v1898_v35 = vld [vmem:[%s3439_s26 + $0x138] sm:$0xff] }
 0xcf7   :  { %1556 = vmatpush.msrb.mxu2 %v1525_v56  ;;  %v1897_v56 = vld [vmem:[%s3439_s26 + $0x130] sm:$0xff] }
 0xcfa   :  { %v1404_v63 = vpop.f32.mrf.mxu1 }
 0xd02   :  { %v1407_v8 = vpop.f32.mrf.mxu1 }
 0xd0a   :  { %v1410_v26 = vpop.f32.mrf.mxu1 }
 0xd60   :  { %v1372_v59 = vpop.f32.mrf.mxu3 }
 0xd61   :  { %v3114_v13 = vadd.f32 %v1401_v57, %v1372_v59  ;;  %v1524_v57 = vld [vmem:[%s3435_s6 + $0x8] sm:$0xff]  ;;  %v1523_v59 = vld [vmem:[%s3435_s6] sm:$0xff] }
 0xd62   :  { %1557 = vmatpush.msrb.mxu2 %v1524_v57  ;;  %v1879_v57 = vld [vmem:[%s3439_s26 + $0xa0] sm:$0xff] }
 0xd63   :  { %v1426_v16 = vmul.f32 %v3114_v13, %v3114_v13  ;;  %v1413_v21 = vsel %vm338_vm9, %v3114_v13, 0.0 }
 0xd64   :  { %1558 = vmatpush.msrb.mxu2 %v1523_v59  ;;  %v1878_v59 = vld [vmem:[%s3439_s26 + $0x98] sm:$0xff] }
 0xd65   :  { %v1430_v5 = vsel %vm338_vm9, %v1426_v16, 0.0 }
 0xd68   :  { %v1375_v2 = vpop.f32.mrf.mxu3 }
 0xd69   :  { %v3112_v9 = vadd.f32 %v1404_v63, %v1375_v2 }
 0xd6b   :  { %v1427_v15 = vmul.f32 %v3112_v9, %v3112_v9  ;;  %v1414_v18 = vsel %vm338_vm9, %v3112_v9, 0.0 }
 0xd6c   :  { %v1415_v62 = vadd.f32 %v1414_v18, %v1413_v21 }
 0xd6d   :  { %v1431_v22 = vsel %vm338_vm9, %v1427_v15, 0.0  ;;  %v1498_v15 = vld [vmem:[%s3437_s20 + $0x1] sm:$0x1] }
 0xd6e   :  { %v1432_v29 = vadd.f32 %v1431_v22, %v1430_v5 }
 0xd70   :  { %v1378_v12 = vpop.f32.mrf.mxu3 }
 0xd71   :  { %v3116_v14 = vadd.f32 %v1407_v8, %v1378_v12 }
 0xd73   :  { %v1428_v19 = vmul.f32 %v3116_v14, %v3116_v14  ;;  %v1416_v25 = vsel %vm338_vm9, %v3116_v14, 0.0 }
 0xd74   :  { %v1417_v30 = vadd.f32 %v1416_v25, %v1415_v62 }
 0xd75   :  { %v1433_v27 = vsel %vm338_vm9, %v1428_v19, 0.0 }
 0xd76   :  { %v1434_v33 = vadd.f32 %v1433_v27, %v1432_v29 }
 0xd78   :  { %v1381_v23 = vpop.f32.mrf.mxu3 }
 0xd79   :  { %v3133_v28 = vadd.f32 %v1410_v26, %v1381_v23 }
 0xd7b   :  { %v1418_v31 = vsel %vm338_vm9, %v3133_v28, 0.0  ;;  %v1429_v32 = vmul.f32 %v3133_v28, %v3133_v28 }
 0xd7c   :  { %v1419_v60 = vadd.f32 %v1418_v31, %v1417_v30 }
 0xd7d   :  { %v1435_v61 = vsel %vm338_vm9, %v1429_v32, 0.0 }
 0xd7e   :  { %v1420_v34 = vrot.slane %v1419_v60, 4  ;;  %v1436_v36 = vadd.f32 %v1435_v61, %v1434_v33 }
 0xd80   :  { %v1421_v37 = vadd.f32 %v1420_v34, %v1419_v60  ;;  %v1437_v38 = vrot.slane %v1436_v36, 4  ;;  %v1517_v34 = vld [vmem:[%s3438_s23 + $0x10] sm:$0xff] }
 0xd82   :  { %v1422_v17 = vrot.slane %v1421_v37, 2  ;;  %v1438_v39 = vadd.f32 %v1437_v38, %v1436_v36  ;;  %v1518_v36 = vld [vmem:[%s3438_s23 + $0x18] sm:$0xff]  ;;  %v1889_v38 = vld [vmem:[%s3439_s26 + $0xf0] sm:$0xff] }
 0xd84   :  { %v1423_v40 = vadd.f32 %v1422_v17, %v1421_v37  ;;  %v1439_v41 = vrot.slane %v1438_v39, 2  ;;  %v1890_v37 = vld [vmem:[%s3439_s26 + $0xf8] sm:$0xff]  ;;  %v1888_v17 = vld [vmem:[%s3439_s26 + $0xe8] sm:$0xff] }
 0xd85   :  { %1948 = vmatpush.msra.mxu3 %v1890_v37 }
 0xd86   :  { %v1424_v42 = vrot.slane %v1423_v40, 1  ;;  %v1440_v44 = vadd.f32 %v1439_v41, %v1438_v39  ;;  %v1906_v39 = vld [vmem:[%s3439_s26 + $0x178] sm:$0xff]  ;;  %v1887_v41 = vld [vmem:[%s3439_s26 + $0xe0] sm:$0xff] }
 0xd87   :  { %1949 = vmatpush.msra.mxu3 %v1889_v38  ;;  %1989 = vmatpush.msra.mxu2 %v1906_v39  ;;  %v1666_v38 = vand.u32 31, %v2751_v11  ;;  %v1645_v11 = vand.u32 31, %v2740_v7 }
 0xd88   :  { %v1441_v46 = vrot.slane %v1440_v44, 1  ;;  %v1425_v43 = vadd.f32 %v1424_v42, %v1423_v40  ;;  %v1905_v40 = vld [vmem:[%s3439_s26 + $0x170] sm:$0xff]  ;;  %v1904_v42 = vld [vmem:[%s3439_s26 + $0x168] sm:$0xff] }
 0xd89   :  { %1950 = vmatpush.msra.mxu3 %v1888_v17  ;;  %1990 = vmatpush.msra.mxu2 %v1905_v40  ;;  %vm2445_vm11 = vcmp.ne.s32.totalorder %v1666_v38, 31  ;;  %vm2443_vm13 = vcmp.ne.s32.totalorder %v1645_v11, 0 }
 0xd8a   :  { %v1442_v45 = vadd.f32 %v1441_v46, %v1440_v44  ;;  %v1519_v44 = vld [vmem:[%s3438_s23 + $0x20] sm:$0xff]  ;;  %v1886_v46 = vld [vmem:[%s3439_s26 + $0xd8] sm:$0xff] }
 0xd8b   :  { %1951 = vmatpush.msra.mxu3 %v1887_v41  ;;  %1991 = vmatpush.msra.mxu2 %v1904_v42 }
 0xd8c   :  { %v1443_v48 = vsel %vm3436_vm4, %v1425_v43, %v1442_v45  ;;  %v1903_v43 = vld [vmem:[%s3439_s26 + $0x160] sm:$0xff]  ;;  %v1885_v45 = vld [vmem:[%s3439_s26 + $0xd0] sm:$0xff]  ;;  %vm3443_vm4 = vmmov %vm3432_vm1 }
 0xd8d   :  { %2413 = vmatmul.msk.f32.vlgmr.msrb.gmra.mxu0 %vm338_vm9, %v1443_v48  ;;  %v1902_v48 = vld [vmem:[%s3439_s26 + $0x158] sm:$0xff]  ;;  %1952 = vmatpush.msra.mxu3 %v1886_v46 }
 0xd8e   :  { %1992 = vmatpush.msra.mxu2 %v1903_v43 }
 0xd8f   :  { %1953 = vmatpush.msra.mxu3 %v1885_v45 }
 0xd90   :  { %1993 = vmatpush.msra.mxu2 %v1902_v48 }
 0xd91   :  { %1954 = vmatpush.msra.mxu3 %v1884_v49 }
 0xd93   :  { %1955 = vmatpush.msra.mxu3 %v1883_v50 }
 0xe0a   :  { %v1472_v20 = vpop.f32.mrf.mxu0 }
 0xe0b   :  { %v1475_v51 = vmul.f32 0.001953125, %v1472_v20  ;;  %v1901_v20 = vld [vmem:[%s3439_s26 + $0x150] sm:$0xff] }
 0xe0c   :  { %1994 = vmatpush.msra.mxu2 %v1901_v20 }
 0xe0d   :  { %v1476_v53 = vmul.f32 %v1475_v51, %v1475_v51 }
 0xe0f   :  { %v1478_v24 = vrot.slane %v1476_v53, 7  ;;  %v1882_v53 = vld [vmem:[%s3439_s26 + $0xb8] sm:$0xff] }
 0xe10   :  { %1956 = vmatpush.msra.mxu3 %v1882_v53 }
 0xe11   :  { %v1480_v55 = vsub.f32 %v1475_v51, %v1478_v24  ;;  %v1881_v24 = vld [vmem:[%s3439_s26 + $0xb0] sm:$0xff] }
 0xe12   :  { %1957 = vmatpush.msra.mxu3 %v1881_v24 }
 0xe13   :  { %v1481_v58 = vmax.f32 %v1480_v55, 0.0  ;;  %v1880_v55 = vld [vmem:[%s3439_s26 + $0xa8] sm:$0xff] }
 0xe14   :  { %1958 = vmatpush.msra.mxu3 %v1880_v55 }
 0xe15   :  { %v1483_v47 = vadd.f32 1e-05, %v1481_v58  ;;  %v1521_v58 = vld [vmem:[%s3438_s23 + $0x30] sm:$0xff] }
 0xe16   :  { %1959 = vmatpush.msra.mxu3 %v1879_v57 }
 0xe17   :  { %2495 = vrsqrt.f32 %v1483_v47  ;;  %vm1490_vm3 = vweird.f32 %v1483_v47 }
 0xe18   :  { %1960 = vmatpush.msra.mxu3 %v1878_v59  ;;  %v1637_v59 = vadd.s32 32, %v2740_v7 }
 0xe1d   :  { %v2496_v10 = vpop.eup %2495 }
 0xe1e   :  { %v1485_v63 = vmul.f32 %v2496_v10, %v1483_v47  ;;  %vm1491_vm8 = vweird.f32 %v2496_v10  ;;  %v1877_v47 = vld [vmem:[%s3439_s26 + $0x90] sm:$0xff] }
 0xe1f   :  { %vm1492_vm7 = vmor %vm1490_vm3, %vm1491_vm8  ;;  %1961 = vmatpush.msra.mxu3 %v1877_v47 }
 0xe20   :  { %v1486_v4 = vmul.f32 %v2496_v10, %v1485_v63  ;;  %v1522_v63 = vld [vmem:[%s3438_s23 + $0x38] sm:$0xff]  ;;  %vm3444_vm8 = vmmov %vm3432_vm1 }
 0xe21   :  { %vm3445_vm3 = vmmov %vm3432_vm1 }
 0xe22   :  { %v1487_v0 = vmul.f32 0.5, %v1486_v4  ;;  %v1875_v4 = vld [vmem:[%s3439_s26 + $0x80] sm:$0xff] }
 0xe24   :  { %v1488_v1 = vsub.f32 1.5, %v1487_v0  ;;  %v1896_v0 = vld [vmem:[%s3439_s26 + $0x128] sm:$0xff] }
 0xe26   :  { %v1489_v2 = vmul.f32 %v2496_v10, %v1488_v1  ;;  %v1895_v1 = vld [vmem:[%s3439_s26 + $0x120] sm:$0xff] }
 0xe28   :  { %v1493_v6 = vsel %vm1492_vm7, %v2496_v10, %v1489_v2  ;;  %v1876_v10 = vld [vmem:[%s3439_s26 + $0x88] sm:$0xff]  ;;  %v1894_v2 = vld [vmem:[%s3439_s26 + $0x118] sm:$0xff]  ;;  %vm3446_vm7 = vmmov %vm3432_vm1 }
 0xe29   :  { %v1495_v8 = vrot.slane %v1493_v6, 1  ;;  %1962 = vmatpush.msra.mxu3 %v1876_v10  ;;  %v1892_v6 = vld [vmem:[%s3439_s26 + $0x108] sm:$0xff]  ;;  %v1673_v10 = vand.u32 31, %v1637_v59 }
 0xe2b   :  { %v1497_v12 = vmul.f32 %v1495_v8, %v1482_v3  ;;  %1963 = vmatpush.msra.mxu3 %v1875_v4  ;;  %v1893_v3 = vld [vmem:[%s3439_s26 + $0x110] sm:$0xff]  ;;  %v1891_v8 = vld [vmem:[%s3439_s26 + $0x100] sm:$0xff]  ;;  %vm2444_vm2 = vcmp.ne.s32.totalorder %v1673_v10, 0 }
 0xe2d   :  { %v1499_v16 = vmul.f32 %v1497_v12, %v1475_v51  ;;  %v1501_v18 = vperm.slane %v1497_v12, 0  ;;  %v1900_v51 = vld [vmem:[%s3439_s26 + $0x148] sm:$0xff]  ;;  %v1874_v12 = vld [vmem:[%s3439_s26 + $0x78] sm:$0xff] }
 0xe2e   :  { %1995 = vmatpush.msra.mxu2 %v1900_v51  ;;  %1907 = vmatpush.msra.mxu1 %v1874_v12  ;;  %v1640_v51 = vadd.s32 56, %v2740_v7 }
 0xe2f   :  { %v1500_v19 = vsub.f32 %v1498_v15, %v1499_v16  ;;  %v1502_v22 = vmul.f32 %v1501_v18, %v3114_v13  ;;  %v1503_v62 = vmul.f32 %v1501_v18, %v3112_v9  ;;  %v1504_v27 = vmul.f32 %v1501_v18, %v3116_v14  ;;  %v1515_v14 = vld [vmem:[%s3438_s23] sm:$0xff]  ;;  %v1873_v15 = vld [vmem:[%s3439_s26 + $0x70] sm:$0xff] }
 0xe30   :  { %v1505_v13 = vmul.f32 %v1501_v18, %v3133_v28  ;;  %v1516_v28 = vld [vmem:[%s3438_s23 + $0x8] sm:$0xff]  ;;  %1996 = vmatpush.msra.mxu2 %v1899_v54  ;;  %1908 = vmatpush.msra.mxu1 %v1873_v15  ;;  %v1694_v54 = vand.u32 31, %v1640_v51 }
 0xe31   :  { %v1506_v21 = vperm.slane %v1500_v19, 0  ;;  %v1872_v18 = vld [vmem:[%s3439_s26 + $0x68] sm:$0xff]  ;;  %v1871_v19 = vld [vmem:[%s3439_s26 + $0x60] sm:$0xff] }
 0xe32   :  { %1997 = vmatpush.msra.mxu2 %v1898_v35  ;;  %1909 = vmatpush.msra.mxu1 %v1872_v18  ;;  %vm2446_vm12 = vcmp.ne.s32.totalorder %v1694_v54, 31 }
 0xe33   :  { %v1507_v25 = vadd.f32 %v1506_v21, %v1502_v22  ;;  %v1508_v23 = vadd.f32 %v1506_v21, %v1503_v62  ;;  %v1509_v29 = vadd.f32 %v1506_v21, %v1504_v27  ;;  %v1510_v31 = vadd.f32 %v1506_v21, %v1505_v13  ;;  %v1870_v21 = vld [vmem:[%s3439_s26 + $0x58] sm:$0xff]  ;;  %v1869_v22 = vld [vmem:[%s3439_s26 + $0x50] sm:$0xff] }
 0xe34   :  { %1998 = vmatpush.msra.mxu2 %v1897_v56  ;;  %1910 = vmatpush.msra.mxu1 %v1871_v19 }
 0xe35   :  { %v1511_v26 = vmax.f32 %v1507_v25, 0.0  ;;  %v1512_v5 = vmax.f32 %v1508_v23, 0.0  ;;  %v1513_v30 = vmax.f32 %v1509_v29, 0.0  ;;  %v1514_v32 = vmax.f32 %v1510_v31, 0.0  ;;  %v1868_v23 = vld [vmem:[%s3439_s26 + $0x48] sm:$0xff]  ;;  %v1866_v29 = vld [vmem:[%s3439_s26 + $0x38] sm:$0xff] }
 0xe36   :  { %1999 = vmatpush.msra.mxu2 %v1896_v0  ;;  %1911 = vmatpush.msra.mxu1 %v1870_v21 }
 0xe37   :  { %2414 = vmatmul.msk.f32.vlgmr.msrb.gmra.mxu2 %vm338_vm9, %v1511_v26 }
 0xe38   :  { %2000 = vmatpush.msra.mxu2 %v1895_v1  ;;  %1912 = vmatpush.msra.mxu1 %v1869_v22 }
 0xe3a   :  { %2001 = vmatpush.msra.mxu2 %v1894_v2  ;;  %1913 = vmatpush.msra.mxu1 %v1868_v23 }
 0xe3c   :  { %2002 = vmatpush.msra.mxu2 %v1893_v3 }
 0xe3e   :  { %2003 = vmatpush.msra.mxu2 %v1892_v6 }
 0xe3f   :  { %2415 = vmatmul.msk.f32.gmra.mxu2 %vm338_vm9, %v1512_v5  ;;  %v1867_v5 = vld [vmem:[%s3439_s26 + $0x40] sm:$0xff] }
 0xe40   :  { %2004 = vmatpush.msra.mxu2 %v1891_v8  ;;  %1914 = vmatpush.msra.mxu1 %v1867_v5 }
 0xe42   :  { %1915 = vmatpush.msra.mxu1 %v1866_v29 }
 0xe47   :  { %2416 = vmatmul.msk.f32.gmra.mxu2 %vm338_vm9, %v1513_v30  ;;  %v1865_v30 = vld [vmem:[%s3439_s26 + $0x30] sm:$0xff] }
 0xe48   :  { %1916 = vmatpush.msra.mxu1 %v1865_v30 }
 0xe4f   :  { %2417 = vmatmul.msk.f32.gmra.mxu2 %vm338_vm9, %v1514_v32  ;;  %v1864_v32 = vld [vmem:[%s3439_s26 + $0x28] sm:$0xff] }
 0xe50   :  { %1917 = vmatpush.msra.mxu1 %v1864_v32  ;;  %v2084_v32 = vld [vmem:[%s2713_s27 + $0x18] sm:$0xff] }
 0xeba   :  { %v1560_v9 = vpop.f32.mrf.mxu2 }
 0xec2   :  { %v1563_v33 = vpop.f32.mrf.mxu2 }
 0xeca   :  { %v1566_v60 = vpop.f32.mrf.mxu2 }
 0xed2   :  { %v1569_v61 = vpop.f32.mrf.mxu2 }
 0xed3   :  { %1608 = vmatpush.msra.mxu0 %v1569_v61  ;;  %v1861_v61 = vld [vmem:[%s3439_s26 + $0x10] sm:$0xff] }
 0xed5   :  { %1609 = vmatpush.msra.mxu0 %v1566_v60  ;;  %v1862_v60 = vld [vmem:[%s3439_s26 + $0x18] sm:$0xff] }
 0xed7   :  { %1610 = vmatpush.msra.mxu0 %v1563_v33 }
 0xed9   :  { %1611 = vmatpush.msra.mxu0 %v1560_v9  ;;  %v1863_v9 = vld [vmem:[%s3439_s26 + $0x20] sm:$0xff] }
 0xeda   :  { %2418 = vmatmul.msk.f32.vlgmr.msra.gmra.mxu0 %vm285_vm6, %v1515_v14  ;;  %1918 = vmatpush.msra.mxu1 %v1863_v9  ;;  %v2083_v9 = vld [vmem:[%s2713_s27 + $0x10] sm:$0xff] }
 0xedc   :  { %1919 = vmatpush.msra.mxu1 %v1862_v60 }
 0xede   :  { %1920 = vmatpush.msra.mxu1 %v1861_v61 }
 0xee2   :  { %2419 = vmatmul.msk.f32.gmra.mxu0 %vm285_vm6, %v1516_v28 }
 0xeea   :  { %2420 = vmatmul.msk.f32.gmra.mxu0 %vm285_vm6, %v1517_v34  ;;  %v1860_v34 = vld [vmem:[%s3439_s26 + $0x8] sm:$0xff] }
 0xeeb   :  { %1921 = vmatpush.msra.mxu1 %v1860_v34 }
 0xef2   :  { %2421 = vmatmul.msk.f32.gmra.mxu0 %vm285_vm6, %v1518_v36  ;;  %v1859_v36 = vld [vmem:[%s3439_s26] sm:$0xff] }
 0xef3   :  { %1922 = vmatpush.msra.mxu1 %v1859_v36  ;;  %v2081_v36 = vld [vmem:[%s2713_s27] sm:$0xff] }
 0xef5   :  { %2100 = vmatpush.msrb.mxu1 %v2084_v32 }
 0xef7   :  { %2101 = vmatpush.msrb.mxu1 %v2083_v9 }
 0xefa   :  { %2422 = vmatmul.msk.f32.gmra.mxu0 %vm285_vm6, %v1519_v44 }
 0xf02   :  { %2423 = vmatmul.msk.f32.gmra.mxu0 %vm285_vm6, %v1520_v52 }
 0xf0a   :  { %2424 = vmatmul.msk.f32.gmra.mxu0 %vm285_vm6, %v1521_v58 }
 0xf12   :  { %2425 = vmatmul.msk.f32.gmra.mxu0 %vm285_vm6, %v1522_v63 }
 0xf57   :  { %v3210_v16 = vpop.f32.mrf.mxu0 }
 0xf58   :  { %1964 = vmatmul.f32.vlgmr.msra.gmra.mxu3 %v3210_v16  ;;  %v1810_v26 = vrot.slane %v3210_v16, 1  ;;  %v1755_v48 = vrot.slane %v3210_v16, 7 }
 0xf5f   :  { %v3217_v25 = vpop.f32.mrf.mxu0 }
 0xf60   :  { %v1811_v62 = vrot.slane %v3217_v25, 1  ;;  %1967 = vmatmul.f32.gmra.mxu3 %v3217_v25  ;;  %v1756_v24 = vrot.slane %v3217_v25, 7 }
 0xf62   :  { %v1812_v27 = vsel %vm226_vm0, %v1810_v26, %v1811_v62  ;;  %v1757_v35 = vsel %vm3441_vm14, %v1755_v48, %v1756_v24 }
 0xf63   :  { %2005 = vmatmul.f32.vlgmr.msra.gmra.mxu2 %v1812_v27 }
 0xf67   :  { %v3229_v13 = vpop.f32.mrf.mxu0 }
 0xf68   :  { %v1813_v31 = vrot.slane %v3229_v13, 1  ;;  %1970 = vmatmul.f32.gmra.mxu3 %v3229_v13  ;;  %v1758_v56 = vrot.slane %v3229_v13, 7 }
 0xf6a   :  { %v1814_v33 = vsel %vm226_vm0, %v1811_v62, %v1813_v31  ;;  %v1759_v57 = vsel %vm3442_vm15, %v1756_v24, %v1758_v56 }
 0xf6b   :  { %2008 = vmatmul.f32.gmra.mxu2 %v1814_v33 }
 0xf6f   :  { %v1622_v14 = vpop.f32.mrf.mxu0 }
 0xf70   :  { %v1815_v28 = vrot.slane %v1622_v14, 1  ;;  %1973 = vmatmul.f32.gmra.mxu3 %v1622_v14  ;;  %v1760_v58 = vrot.slane %v1622_v14, 7  ;;  %v2082_v14 = vld [vmem:[%s2713_s27 + $0x8] sm:$0xff]  ;;  %s3448_s27 = sld [smem:[#allocation18_spill]] }
 0xf71   :  { %2102 = vmatpush.msrb.mxu1 %v2082_v14 }
 0xf72   :  { %v1816_v37 = vsel %vm226_vm0, %v1813_v31, %v1815_v28  ;;  %v1761_v47 = vsel %vm3432_vm1, %v1758_v56, %v1760_v58 }
 0xf73   :  { %2011 = vmatmul.f32.gmra.mxu2 %v1816_v37  ;;  %2103 = vmatpush.msrb.mxu1 %v2081_v36 }
 0xf77   :  { %v1625_v17 = vpop.f32.mrf.mxu0 }
 0xf78   :  { %v1817_v39 = vrot.slane %v1625_v17, 1  ;;  %1976 = vmatmul.f32.gmra.mxu3 %v1625_v17  ;;  %v1762_v63 = vrot.slane %v1625_v17, 7 }
 0xf7a   :  { %v1818_v40 = vsel %vm226_vm0, %v1815_v28, %v1817_v39  ;;  %v1763_v4 = vsel %vm3443_vm4, %v1760_v58, %v1762_v63 }
 0xf7b   :  { %2431 = vmatmul.msk.f32.gmra.mxu2 %vm2445_vm11, %v1818_v40  ;;  %vm3447_vm11 = vmmov %vm3432_vm1 }
 0xf7f   :  { %v1628_v41 = vpop.f32.mrf.mxu0 }
 0xf80   :  { %v1819_v42 = vrot.slane %v1628_v41, 1  ;;  %1979 = vmatmul.f32.gmra.mxu3 %v1628_v41  ;;  %v1764_v0 = vrot.slane %v1628_v41, 7 }
 0xf82   :  { %v1820_v44 = vsel %vm226_vm0, %v1817_v39, %v1819_v42  ;;  %v1765_v1 = vsel %vm3444_vm8, %v1762_v63, %v1764_v0 }
 0xf83   :  { %2017 = vmatmul.f32.gmra.mxu2 %v1820_v44 }
 0xf87   :  { %v1631_v46 = vpop.f32.mrf.mxu0 }
 0xf88   :  { %v1821_v43 = vrot.slane %v1631_v46, 1  ;;  %1982 = vmatmul.f32.gmra.mxu3 %v1631_v46  ;;  %v1766_v2 = vrot.slane %v1631_v46, 7 }
 0xf8a   :  { %v1822_v45 = vsel %vm226_vm0, %v1819_v42, %v1821_v43  ;;  %v1767_v3 = vsel %vm3445_vm3, %v1764_v0, %v1766_v2 }
 0xf8b   :  { %2020 = vmatmul.f32.gmra.mxu2 %v1822_v45 }
 0xf8f   :  { %v1634_v49 = vpop.f32.mrf.mxu0 }
 0xf90   :  { %v1746_v20 = vrot.slane %v1634_v49, 7  ;;  %v1823_v50 = vrot.slane %v1634_v49, 1  ;;  %1985 = vmatmul.f32.gmra.mxu3 %v1634_v49 }
 0xf92   :  { %v1777_v52 = vsel %vm3440_vm10, %v1746_v20, %v1755_v48  ;;  %v1824_v53 = vsel %vm226_vm0, %v1821_v43, %v1823_v50  ;;  %v1834_v55 = vsel %vm226_vm0, %v1823_v50, %v1810_v26  ;;  %v1768_v6 = vsel %vm3446_vm7, %v1766_v2, %v1746_v20 }
 0xf93   :  { %2427 = vmatmul.msk.f32.vlgmr.msra.gmra.mxu1 %vm2443_vm13, %v1777_v52  ;;  %2023 = vmatmul.f32.gmra.mxu2 %v1824_v53 }
 0xf9b   :  { %1926 = vmatmul.f32.gmra.mxu1 %v1757_v35  ;;  %2433 = vmatmul.msk.f32.gmra.mxu2 %vm2446_vm12, %v1834_v55 }
 0xfa3   :  { %1929 = vmatmul.f32.gmra.mxu1 %v1759_v57 }
 0xfab   :  { %1932 = vmatmul.f32.gmra.mxu1 %v1761_v47 }
 0xfb3   :  { %2429 = vmatmul.msk.f32.gmra.mxu1 %vm2444_vm2, %v1763_v4 }
 0xfbb   :  { %1938 = vmatmul.f32.gmra.mxu1 %v1765_v1 }
 0xfc3   :  { %1941 = vmatmul.f32.gmra.mxu1 %v1767_v3 }
 0xfcb   :  { %1944 = vmatmul.f32.gmra.mxu1 %v1768_v6 }
 0xfdb   :  { %v1965_v7 = vpop.f32.mrf.mxu3 }
 0xfe3   :  { %v1968_v12 = vpop.f32.mrf.mxu3 }
 0xfe6   :  { %v2006_v8 = vpop.f32.mrf.mxu2 }
 0xfeb   :  { %v1971_v18 = vpop.f32.mrf.mxu3 }
 0xfee   :  { %v2009_v15 = vpop.f32.mrf.mxu2 }
 0xff3   :  { %v1974_v22 = vpop.f32.mrf.mxu3 }
 0xff6   :  { %v2012_v19 = vpop.f32.mrf.mxu2 }
 0xffb   :  { %v1977_v23 = vpop.f32.mrf.mxu3 }
 0xffe   :  { %v2015_v26 = vpop.f32.mrf.mxu2 }
0x1003   :  { %v1980_v29 = vpop.f32.mrf.mxu3 }
0x1006   :  { %v2018_v5 = vpop.f32.mrf.mxu2 }
0x100b   :  { %v1983_v41 = vpop.f32.mrf.mxu3 }
0x100e   :  { %v2021_v13 = vpop.f32.mrf.mxu2 }
0x1010   :  { %v1924_v16 = vpop.f32.mrf.mxu1 }
0x1011   :  { %v1966_v31 = vadd.f32 %v1965_v7, %v1924_v16 }
0x1013   :  { %v3268_v34 = vadd.f32 %v2006_v8, %v1966_v31  ;;  %v1986_v3 = vpop.f32.mrf.mxu3 }
0x1015   :  { %v2051_v42 = vmul.f32 %v3268_v34, %v3268_v34  ;;  %v2030_v45 = vsel %vm285_vm6, %v3268_v34, 0.0 }
0x1016   :  { %v2024_v11 = vpop.f32.mrf.mxu2 }
0x1017   :  { %v2059_v53 = vsel %vm285_vm6, %v2051_v42, 0.0 }
0x1018   :  { %v1927_v21 = vpop.f32.mrf.mxu1 }
0x1019   :  { %v1969_v30 = vadd.f32 %v1968_v12, %v1927_v21 }
0x101b   :  { %v3265_v60 = vadd.f32 %v2009_v15, %v1969_v30 }
0x101d   :  { %v2052_v17 = vmul.f32 %v3265_v60, %v3265_v60  ;;  %v2031_v44 = vsel %vm285_vm6, %v3265_v60, 0.0 }
0x101e   :  { %v2032_v54 = vadd.f32 %v2031_v44, %v2030_v45 }
0x101f   :  { %v2060_v48 = vsel %vm285_vm6, %v2052_v17, 0.0 }
0x1020   :  { %v1930_v25 = vpop.f32.mrf.mxu1  ;;  %v2061_v57 = vadd.f32 %v2060_v48, %v2059_v53 }
0x1021   :  { %v1972_v33 = vadd.f32 %v1971_v18, %v1930_v25  ;;  %v2027_v18 = vpop.f32.mrf.mxu2 }
0x1023   :  { %v3271_v37 = vadd.f32 %v2012_v19, %v1972_v33 }
0x1025   :  { %v2053_v46 = vmul.f32 %v3271_v37, %v3271_v37  ;;  %v2033_v20 = vsel %vm285_vm6, %v3271_v37, 0.0 }
0x1026   :  { %v2034_v58 = vadd.f32 %v2033_v20, %v2032_v54 }
0x1027   :  { %v2062_v24 = vsel %vm285_vm6, %v2053_v46, 0.0 }
0x1028   :  { %v1933_v62 = vpop.f32.mrf.mxu1  ;;  %v2063_v63 = vadd.f32 %v2062_v24, %v2061_v57 }
0x1029   :  { %v1975_v28 = vadd.f32 %v1974_v22, %v1933_v62 }
0x102b   :  { %v3275_v39 = vadd.f32 %v2015_v26, %v1975_v28 }
0x102d   :  { %v2054_v50 = vmul.f32 %v3275_v39, %v3275_v39  ;;  %v2035_v35 = vsel %vm285_vm6, %v3275_v39, 0.0 }
0x102e   :  { %v2036_v4 = vadd.f32 %v2035_v35, %v2034_v58 }
0x102f   :  { %v2064_v59 = vsel %vm285_vm6, %v2054_v50, 0.0 }
0x1030   :  { %v1936_v27 = vpop.f32.mrf.mxu1  ;;  %v2065_v6 = vadd.f32 %v2064_v59, %v2063_v63 }
0x1031   :  { %v1978_v38 = vadd.f32 %v1977_v23, %v1936_v27 }
0x1033   :  { %v3283_v43 = vadd.f32 %v2018_v5, %v1978_v38 }
0x1035   :  { %v2055_v55 = vmul.f32 %v3283_v43, %v3283_v43  ;;  %v2037_v47 = vsel %vm285_vm6, %v3283_v43, 0.0 }
0x1036   :  { %v2038_v7 = vadd.f32 %v2037_v47, %v2036_v4  ;;  %v2131_v47 = vld [vmem:[%s3448_s27 + $0x1] sm:$0x1] }
0x1037   :  { %v2066_v0 = vsel %vm285_vm6, %v2055_v55, 0.0  ;;  %v2115_v55 = vld [vmem:[%s3448_s27] sm:$0x1] }
0x1038   :  { %v1939_v61 = vpop.f32.mrf.mxu1  ;;  %v2067_v19 = vadd.f32 %v2066_v0, %v2065_v6 }
0x1039   :  { %v1981_v40 = vadd.f32 %v1980_v29, %v1939_v61 }
0x103b   :  { %v3292_v51 = vadd.f32 %v2021_v13, %v1981_v40 }
0x103d   :  { %v2056_v10 = vmul.f32 %v3292_v51, %v3292_v51  ;;  %v2039_v1 = vsel %vm285_vm6, %v3292_v51, 0.0 }
0x103e   :  { %v2040_v21 = vadd.f32 %v2039_v1, %v2038_v7 }
0x103f   :  { %v2068_v12 = vsel %vm285_vm6, %v2056_v10, 0.0 }
0x1040   :  { %v1942_v49 = vpop.f32.mrf.mxu1  ;;  %v2069_v26 = vadd.f32 %v2068_v12, %v2067_v19 }
0x1041   :  { %v1984_v52 = vadd.f32 %v1983_v41, %v1942_v49 }
0x1043   :  { %v3300_v56 = vadd.f32 %v2024_v11, %v1984_v52 }
0x1045   :  { %v2057_v2 = vmul.f32 %v3300_v56, %v3300_v56  ;;  %v2041_v15 = vsel %vm285_vm6, %v3300_v56, 0.0 }
0x1046   :  { %v2042_v62 = vadd.f32 %v2041_v15, %v2040_v21 }
0x1047   :  { %v2070_v22 = vsel %vm285_vm6, %v2057_v2, 0.0 }
0x1048   :  { %v1945_v8 = vpop.f32.mrf.mxu1  ;;  %v2071_v27 = vadd.f32 %v2070_v22, %v2069_v26 }
0x1049   :  { %v1987_v16 = vadd.f32 %v1986_v3, %v1945_v8 }
0x104b   :  { %v2028_v25 = vadd.f32 %v2027_v18, %v1987_v16 }
0x104d   :  { %v2043_v23 = vsel %vm285_vm6, %v2028_v25, 0.0  ;;  %v2058_v5 = vmul.f32 %v2028_v25, %v2028_v25 }
0x104e   :  { %v2044_v29 = vadd.f32 %v2043_v23, %v2042_v62 }
0x104f   :  { %v2072_v30 = vsel %vm285_vm6, %v2058_v5, 0.0 }
0x1050   :  { %v2045_v13 = vrot.slane %v2044_v29, 4  ;;  %v2073_v31 = vadd.f32 %v2072_v30, %v2071_v27 }
0x1052   :  { %v2046_v32 = vadd.f32 %v2045_v13, %v2044_v29  ;;  %v2074_v9 = vrot.slane %v2073_v31, 4 }
0x1054   :  { %v2047_v33 = vrot.slane %v2046_v32, 2  ;;  %v2075_v61 = vadd.f32 %v2074_v9, %v2073_v31 }
0x1056   :  { %v2048_v14 = vadd.f32 %v2047_v33, %v2046_v32  ;;  %v2076_v28 = vrot.slane %v2075_v61, 2 }
0x1058   :  { %v2049_v36 = vrot.slane %v2048_v14, 1  ;;  %v2077_v38 = vadd.f32 %v2076_v28, %v2075_v61 }
0x105a   :  { %v2078_v17 = vrot.slane %v2077_v38, 1  ;;  %v2050_v40 = vadd.f32 %v2049_v36, %v2048_v14 }
0x105c   :  { %v2079_v41 = vadd.f32 %v2078_v17, %v2077_v38 }
0x105e   :  { %v2080_v42 = vsel %vm3447_vm11, %v2050_v40, %v2079_v41 }
0x105f   :  { %2434 = vmatmul.msk.f32.vlgmr.msrb.gmra.mxu1 %vm285_vm6, %v2080_v42 }
0x10dc   :  { %v2105_v44 = vpop.f32.mrf.mxu1 }
0x10dd   :  { %v2108_v46 = vmul.f32 0.00048828125, %v2105_v44 }
0x10df   :  { %v2109_v45 = vmul.f32 %v2108_v46, %v2108_v46 }
0x10e1   :  { %v2111_v11 = vrot.slane %v2109_v45, 7 }
0x10e3   :  { %v2113_v48 = vsub.f32 %v2108_v46, %v2111_v11 }
0x10e5   :  { %v2114_v49 = vmax.f32 %v2113_v48, 0.0 }
0x10e7   :  { %v2116_v20 = vadd.f32 1e-05, %v2114_v49 }
0x10e9   :  { %2497 = vrsqrt.f32 %v2116_v20  ;;  %vm2123_vm10 = vweird.f32 %v2116_v20 }
0x10ef   :  { %v2498_v50 = vpop.eup %2497 }
0x10f0   :  { %v2118_v52 = vmul.f32 %v2498_v50, %v2116_v20  ;;  %vm2124_vm13 = vweird.f32 %v2498_v50  ;;  %v2201_v20 = vld [vmem:[%s2718_s4] sm:$0xff] }
0x10f1   :  { %vm2125_vm12 = vmor %vm2123_vm10, %vm2124_vm13 }
0x10f2   :  { %v2119_v53 = vmul.f32 %v2498_v50, %v2118_v52  ;;  %v2203_v52 = vld [vmem:[%s2718_s4 + $0x10] sm:$0xff] }
0x10f4   :  { %v2120_v54 = vmul.f32 0.5, %v2119_v53  ;;  %v2204_v53 = vld [vmem:[%s2718_s4 + $0x18] sm:$0xff] }
0x10f6   :  { %v2121_v24 = vsub.f32 1.5, %v2120_v54  ;;  %v2286_v54 = vld [vmem:[%s2723_s12 + $0x18] sm:$0xff] }
0x10f7   :  { %2311 = vmatpush.msra.mxu1 %v2286_v54 }
0x10f8   :  { %v2122_v35 = vmul.f32 %v2498_v50, %v2121_v24  ;;  %v2285_v24 = vld [vmem:[%s2723_s12 + $0x10] sm:$0xff] }
0x10f9   :  { %2312 = vmatpush.msra.mxu1 %v2285_v24 }
0x10fa   :  { %v2126_v57 = vsel %vm2125_vm12, %v2498_v50, %v2122_v35  ;;  %v2202_v50 = vld [vmem:[%s2718_s4 + $0x8] sm:$0xff] }
0x10fb   :  { %v2128_v58 = vrot.slane %v2126_v57, 1 }
0x10fd   :  { %v2130_v59 = vmul.f32 %v2128_v58, %v2115_v55 }
0x10ff   :  { %v2132_v10 = vmul.f32 %v2130_v59, %v2108_v46  ;;  %v2134_v63 = vperm.slane %v2130_v59, 0  ;;  %v2284_v59 = vld [vmem:[%s2723_s12 + $0x8] sm:$0xff] }
0x1100   :  { %2313 = vmatpush.msra.mxu1 %v2284_v59 }
0x1101   :  { %v2133_v4 = vsub.f32 %v2131_v47, %v2132_v10  ;;  %v2135_v0 = vmul.f32 %v2134_v63, %v3268_v34  ;;  %v2142_v2 = vmul.f32 %v2134_v63, %v2028_v25  ;;  %v2141_v3 = vmul.f32 %v2134_v63, %v3300_v56  ;;  %v2283_v47 = vld [vmem:[%s2723_s12] sm:$0xff]  ;;  %s2562_s12 = smov [#allocation2]  }
0x1102   :  { %v2140_v6 = vmul.f32 %v2134_v63, %v3292_v51  ;;  %v2139_v7 = vmul.f32 %v2134_v63, %v3283_v43  ;;  %v2138_v8 = vmul.f32 %v2134_v63, %v3275_v39  ;;  %v2137_v12 = vmul.f32 %v2134_v63, %v3271_v37  ;;  %2314 = vmatpush.msra.mxu1 %v2283_v47  ;;  %s2336_s4 = sshll.u32 %s2562_s12, 4  ;;  %s2337_s4 = int_to_ptr.vmem [resolvable:$true] %s2336_s4 }
0x1103   :  { %v2143_v1 = vperm.slane %v2133_v4, 0  ;;  %v2136_v34 = vmul.f32 %v2134_v63, %v3265_v60 }
0x1105   :  { %v2144_v15 = vadd.f32 %v2143_v1, %v2135_v0  ;;  %v2151_v16 = vadd.f32 %v2143_v1, %v2142_v2  ;;  %v2150_v18 = vadd.f32 %v2143_v1, %v2141_v3  ;;  %v2149_v19 = vadd.f32 %v2143_v1, %v2140_v6 }
0x1106   :  { %v2148_v21 = vadd.f32 %v2143_v1, %v2139_v7  ;;  %v2147_v22 = vadd.f32 %v2143_v1, %v2138_v8  ;;  %v2146_v26 = vadd.f32 %v2143_v1, %v2137_v12  ;;  %v2145_v43 = vadd.f32 %v2143_v1, %v2136_v34 }
0x1107   :  { %v2152_v25 = vmax.f32 %v2144_v15, 0.0  ;;  %v2159_v62 = vmax.f32 %v2151_v16, 0.0  ;;  %v2158_v56 = vmax.f32 %v2150_v18, 0.0  ;;  %v2157_v23 = vmax.f32 %v2149_v19, 0.0 }
0x1108   :  { %v2156_v51 = vmax.f32 %v2148_v21, 0.0  ;;  %v2155_v5 = vmax.f32 %v2147_v22, 0.0  ;;  %v2154_v32 = vmax.f32 %v2146_v26, 0.0  ;;  %v2153_v61 = vmax.f32 %v2145_v43, 0.0 }
0x1109   :  { %v2168_v27 = vrot.slane %v2152_v25, 1  ;;  %v2181_v39 = vrot.slane %v2159_v62, 1  ;;  %v2179_v29 = vrot.slane %v2158_v56, 1  ;;  %v2177_v37 = vrot.slane %v2157_v23, 1 }
0x110a   :  { %v2175_v31 = vrot.slane %v2156_v51, 1  ;;  %v2173_v33 = vrot.slane %v2155_v5, 1  ;;  %v2171_v36 = vrot.slane %v2154_v32, 1  ;;  %v2169_v40 = vrot.slane %v2153_v61, 1 }
0x110b   :  { %v2192_v30 = vsel %vm226_vm0, %v2181_v39, %v2168_v27  ;;  %v2182_v13 = vsel %vm226_vm0, %v2179_v29, %v2181_v39  ;;  %v2180_v60 = vsel %vm226_vm0, %v2177_v37, %v2179_v29 }
0x110c   :  { %v2200_v9 = vmax.f32 %v2159_v62, %v2192_v30  ;;  %v2199_v14 = vmax.f32 %v2158_v56, %v2182_v13  ;;  %v2178_v28 = vsel %vm226_vm0, %v2175_v31, %v2177_v37  ;;  %v2198_v38 = vmax.f32 %v2157_v23, %v2180_v60 }
0x110d   :  { %v2176_v17 = vsel %vm226_vm0, %v2173_v33, %v2175_v31  ;;  %v2197_v41 = vmax.f32 %v2156_v51, %v2178_v28  ;;  %v2174_v42 = vsel %vm226_vm0, %v2171_v36, %v2173_v33  ;;  %v2172_v46 = vsel %vm226_vm0, %v2169_v40, %v2171_v36 }
0x110e   :  { %2225 = vmatpush.msrb.mxu0 %v2200_v9  ;;  %v2196_v44 = vmax.f32 %v2155_v5, %v2176_v17  ;;  %v2195_v45 = vmax.f32 %v2154_v32, %v2174_v42  ;;  %v2170_v11 = vsel %vm226_vm0, %v2168_v27, %v2169_v40  ;;  %v2194_v48 = vmax.f32 %v2153_v61, %v2172_v46 }
0x110f   :  { %v2193_v49 = vmax.f32 %v2152_v25, %v2170_v11  ;;  %vm2274_vm0 = vcmask 252928  }
0x1110   :  { %2226 = vmatpush.msrb.mxu0 %v2199_v14 }
0x1112   :  { %2227 = vmatpush.msrb.mxu0 %v2198_v38 }
0x1114   :  { %2228 = vmatpush.msrb.mxu0 %v2197_v41 }
0x1116   :  { %2229 = vmatpush.msrb.mxu0 %v2196_v44 }
0x1118   :  { %2230 = vmatpush.msrb.mxu0 %v2195_v45 }
0x111a   :  { %2231 = vmatpush.msrb.mxu0 %v2194_v48 }
0x111c   :  { %2232 = vmatpush.msrb.mxu0 %v2193_v49 }
0x111d   :  { %2435 = vmatmul.msk.f32.vlgmr.msrb.gmra.mxu0 %vm338_vm9, %v2201_v20 }
0x1125   :  { %2436 = vmatmul.msk.f32.gmra.mxu0 %vm338_vm9, %v2202_v50 }
0x112d   :  { %2437 = vmatmul.msk.f32.gmra.mxu0 %vm338_vm9, %v2203_v52 }
0x1135   :  { %2438 = vmatmul.msk.f32.gmra.mxu0 %vm338_vm9, %v2204_v53 }
0x119a   :  { %v2234_v35 = vpop.f32.mrf.mxu0 }
0x119b   :  { %2250 = vrot.lane.b32.xlu1 %v2234_v35, %s2559_s9  ;;  %2262 = vrot.lane.b32.xlu2 %v2234_v35, %s2561_s28 }
0x11a2   :  { %v2237_v55 = vpop.f32.mrf.mxu0 }
0x11a3   :  { %2264 = vrot.lane.b32.xlu1 %v2237_v55, %s2561_s28  ;;  %2252 = vrot.lane.b32.xlu0 %v2237_v55, %s2559_s9 }
0x11aa   :  { %v2240_v57 = vpop.f32.mrf.mxu0 }
0x11ab   :  { %2266 = vrot.lane.b32.xlu0 %v2240_v57, %s2561_s28  ;;  %2254 = vrot.lane.b32.xlu2 %v2240_v57, %s2559_s9 }
0x11b2   :  { %v2243_v58 = vpop.f32.mrf.mxu0 }
0x11b3   :  { %2256 = vrot.lane.b32.xlu1 %v2243_v58, %s2559_s9  ;;  %2268 = vrot.lane.b32.xlu2 %v2243_v58, %s2561_s28 }
0x11f5   :  { %v2263_v10 = vpop.permute.xlu2 %2262 }
0x1205   :  { %v2255_v7 = vpop.permute.xlu2 %2254 }
0x120d   :  { %v2251_v63 = vpop.permute.xlu1 %2250  ;;  %v2269_v16 = vpop.permute.xlu2 %2268 }
0x120e   :  { %v2275_v4 = vsel %vm2274_vm0, %v2251_v63, %v2263_v10 }
0x120f   :  { %v2279_v0 = vmax.f32 %v2234_v35, %v2275_v4 }
0x1211   :  { %2439 = vmatmul.msk.f32.vlgmr.msra.gmra.mxu1 %vm285_vm6, %v2279_v0 }
0x1215   :  { %v2265_v1 = vpop.permute.xlu1 %2264  ;;  %v2253_v2 = vpop.permute.xlu0 %2252 }
0x1216   :  { %v2276_v3 = vsel %vm2274_vm0, %v2253_v2, %v2265_v1 }
0x1217   :  { %v2280_v6 = vmax.f32 %v2237_v55, %v2276_v3 }
0x1219   :  { %2440 = vmatmul.msk.f32.gmra.mxu1 %vm285_vm6, %v2280_v6 }
0x121d   :  { %v2267_v8 = vpop.permute.xlu0 %2266 }
0x121e   :  { %v2277_v12 = vsel %vm2274_vm0, %v2255_v7, %v2267_v8 }
0x121f   :  { %v2281_v15 = vmax.f32 %v2240_v57, %v2277_v12 }
0x1221   :  { %2441 = vmatmul.msk.f32.gmra.mxu1 %vm285_vm6, %v2281_v15 }
0x1225   :  { %v2257_v18 = vpop.permute.xlu1 %2256 }
0x1226   :  { %v2278_v19 = vsel %vm2274_vm0, %v2257_v18, %v2269_v16 }
0x1227   :  { %v2282_v21 = vmax.f32 %v2243_v58, %v2278_v19 }
0x1229   :  { %2442 = vmatmul.msk.f32.gmra.mxu1 %vm285_vm6, %v2282_v21 }
0x128e   :  { %v2316_v22 = vpop.f32.mrf.mxu1 }
0x128f   :  { %2328 = vst.msk [vmem:[#allocation2] sm:$0xff] %vm280_vm5, %v2316_v22 }
0x1296   :  { %v2319_v26 = vpop.f32.mrf.mxu1 }
0x1297   :  { %2329 = vst.msk [vmem:[#allocation2 + $0x8] sm:$0xff] %vm280_vm5, %v2319_v26 }
0x129e   :  { %v2322_v34 = vpop.f32.mrf.mxu1 }
0x129f   :  { %2330 = vst.msk [vmem:[#allocation2 + $0x10] sm:$0xff] %vm280_vm5, %v2322_v34 }
0x12a6   :  { %v2325_v25 = vpop.f32.mrf.mxu1 }
0x12a7   :  { %2331 = vst.msk [vmem:[#allocation2 + $0x18] sm:$0xff] %vm280_vm5, %v2325_v25 }
0x12a8   :  { %2522 = shalt.err (!%p2519_p4)
}
0x12a9   :  { %s2563_s11 = smov 128   ;;  %s2564_s15 = smov 8  }
0x12aa   :  { %2344 = dma.vmem_to_hbm [thread:$0]  %s2337_s4, 512, %s2339_s1, [#allocation3], %s2563_s11, %s2563_s11, %s2564_s15  }
0x12ab   :  { %2523 = dma.done.wait [#allocation3], 512  }
0x12ac   :  { %2524 = vsyncadd [#allocation3], 4294966784 }
0x12ad   :  { %2349 = vsyncpa [#allocation3], 1 }

</bundles_post_ra>
